<compile_context>
chip_gen: v5e
topology: v5e:2x2
jax: 0.10.0
libtpu: 0.0.40
codegen_flags: <defaults>
</compile_context>

<pallas_src>
import functools
import math

import jax
import jax.numpy as jnp
from jax.experimental import pallas as pl
from jax.experimental.pallas import tpu as pltpu


def _decoder_block_kernel(x_ref, w_ref, shift_ref, o_ref, *, R, Wo):
    """Fused 3x3 'same' conv (9 per-tap MXU matmuls, one running f32
    accumulator) + folded BN + ReLU, storing the final NHWC tile.

    x_ref:     (R+2, Wp, Ct)   bf16  zero-padded activation row tile (1-row halo)
    w_ref:     (9, Ct, Coutp)  bf16  BN-scale-folded conv weight, tap-major
    shift_ref: (1, Coutp)      f32   folded BN shift (conv bias folded in)
    o_ref:     (R, Wo, Coutp)  bf16  final output tile (lane-dense Coutp)
    """
    Ct = x_ref.shape[-1]
    Coutp = o_ref.shape[-1]

    acc = None
    for ky in range(3):
        for kx in range(3):
            # Static halo slice: output rows [0,R) need padded rows ky..ky+R-1
            # and padded cols kx..kx+Wo-1 for tap (ky, kx).
            xs = x_ref[ky:ky + R, kx:kx + Wo, :].reshape(R * Wo, Ct)
            part = jnp.dot(xs, w_ref[ky * 3 + kx],
                           preferred_element_type=jnp.float32)
            acc = part if acc is None else acc + part   # running accumulator

    y = jnp.maximum(acc + shift_ref[...], 0.0)          # add + ReLU epilogue
    o_ref[...] = y.reshape(R, Wo, Coutp).astype(o_ref.dtype)


def _choose_row_block(Ho, Wp, Wo, Ct, Coutp, *,
                      budget_bytes=40 * 1024 * 1024, max_rows=128):
    """Largest divisor R of Ho whose double-buffered working set fits budget
    (budget chosen to be safe on v7x's 64 MiB physical VMEM)."""
    for R in range(min(Ho, max_rows), 0, -1):
        if Ho % R:
            continue
        in_blk = (R + 2) * Wp * Ct * 2          # bf16 activation tile
        out_blk = R * Wo * Coutp * 2            # bf16 output tile
        acc = R * Wo * Coutp * 4                # f32 accumulator value
        wgt = 9 * Ct * Coutp * 2                # bf16 weights (resident)
        if 2 * (in_blk + out_blk) + acc + wgt <= budget_bytes:
            return R
    return 1


def decoder_block_forward(x, skip, params, row_block=None):
    """x: (B, H, W, in_c) NHWC ; skip: (B, 2H, 2W, skip_c) NHWC."""
    B, H, W, Cin = x.shape
    Bs, Ho, Wo, Cs = skip.shape
    assert Bs == B and Ho == 2 * H and Wo == 2 * W
    Ct = Cin + Cs
    Cout = params["out_c"]
    Coutp = params["w_tap"].shape[-1]
    Wp = Wo + 2

    R = row_block if row_block is not None else _choose_row_block(Ho, Wp, Wo, Ct, Coutp)
    assert Ho % R == 0, f"row block {R} must divide Ho={Ho}"
    NB = Ho // R

    # --- XLA data prep (cheap, fused): 2x nearest upsample, channel concat,
    #     1 px zero pad, bf16 cast, overlapped row tiles with a 1-row halo. ---
    xu = jnp.repeat(jnp.repeat(x, 2, axis=1), 2, axis=2)            # (B, Ho, Wo, Cin)
    xcat = jnp.concatenate([xu, skip.astype(x.dtype)], axis=-1)     # (B, Ho, Wo, Ct)
    xpad = jnp.pad(xcat, ((0, 0), (1, 1), (1, 1), (0, 0))).astype(jnp.bfloat16)
    xt = jnp.stack([xpad[:, j * R:j * R + R + 2] for j in range(NB)],
                   axis=1)                                          # (B, NB, R+2, Wp, Ct)

    kernel = functools.partial(_decoder_block_kernel, R=R, Wo=Wo)

    flops = 2 * B * NB * R * Wo * 9 * Ct * Coutp
    bytes_accessed = (xt.size * 2 + params["w_tap"].size * 2
                      + params["shift_eff"].size * 4
                      + B * NB * R * Wo * Coutp * 2)

    out = pl.pallas_call(
        kernel,
        out_shape=jax.ShapeDtypeStruct((B, NB, R, Wo, Coutp), jnp.bfloat16),
        grid=(B, NB),
        in_specs=[
            pl.BlockSpec((None, None, R + 2, Wp, Ct), lambda b, j: (b, j, 0, 0, 0)),
            pl.BlockSpec((9, Ct, Coutp), lambda b, j: (0, 0, 0)),
            pl.BlockSpec((1, Coutp), lambda b, j: (0, 0)),
        ],
        out_specs=pl.BlockSpec((None, None, R, Wo, Coutp),
                               lambda b, j: (b, j, 0, 0, 0)),
        compiler_params=pltpu.CompilerParams(
            dimension_semantics=("parallel", "parallel"),
            vmem_limit_bytes=64 * 1024 * 1024),
        cost_estimate=pl.CostEstimate(flops=flops, transcendentals=0,
                                      bytes_accessed=bytes_accessed),
    )(xt, params["w_tap"], params["shift_eff"])

    out = out.reshape(B, Ho, Wo, Coutp)       # contiguous (free) reshape
    if Coutp != Cout:
        out = out[..., :Cout]                 # drop lane-pad channels
    return out


def decoder_block_reference(x, skip, params):
    """Pure-JAX f32 reference (independent of the tiling / folding tricks)."""
    xu = jnp.repeat(jnp.repeat(x, 2, axis=1), 2, axis=2)
    xcat = jnp.concatenate([xu, skip], axis=-1)
    y = jax.lax.conv_general_dilated(
        xcat, params["w_hwio"], window_strides=(1, 1), padding="SAME",
        dimension_numbers=("NHWC", "HWIO", "NHWC"),
        precision=jax.lax.Precision.HIGHEST)
    y = (y + params["bias"]) * params["scale"] + params["shift"]
    return jnp.maximum(y, 0.0)


def init_params(key, in_c, skip_c, out_c):
    Ct = in_c + skip_c
    Coutp = ((out_c + 127) // 128) * 128      # lane-dense MXU N / store width
    k_w, k_b, k_g, k_bt, k_m, k_v = jax.random.split(key, 6)
    # PyTorch Conv2d default init: U(-1/sqrt(fan_in), 1/sqrt(fan_in)), fan_in = Ct*3*3
    bound = 1.0 / math.sqrt(Ct * 9)
    w_oihw = jax.random.uniform(k_w, (out_c, Ct, 3, 3), jnp.float32, -bound, bound)
    bias = jax.random.uniform(k_b, (out_c,), jnp.float32, -bound, bound)
    # BatchNorm (inference-mode folding from running stats)
    gamma = jax.random.uniform(k_g, (out_c,), jnp.float32, 0.5, 1.5)
    beta = jax.random.uniform(k_bt, (out_c,), jnp.float32, -0.1, 0.1)
    mean = 0.1 * jax.random.normal(k_m, (out_c,), jnp.float32)
    var = jax.random.uniform(k_v, (out_c,), jnp.float32, 0.5, 1.5)
    eps = 1e-5
    scale = gamma / jnp.sqrt(var + eps)
    shift = beta - mean * scale

    w_hwio = jnp.transpose(w_oihw, (2, 3, 1, 0))                 # (3, 3, Ct, Cout) f32

    # Fold BN scale into the conv weight in f32, pad output channels to Coutp,
    # then do a single bf16 cast (tap-major layout for per-tap MXU matmuls).
    w_fold = w_hwio * scale[None, None, None, :]
    w_fold = jnp.pad(w_fold, ((0, 0), (0, 0), (0, 0), (0, Coutp - out_c)))
    w_tap = w_fold.reshape(9, Ct, Coutp).astype(jnp.bfloat16)

    shift_eff = shift + scale * bias                              # fold conv bias
    shift_eff = jnp.pad(shift_eff, (0, Coutp - out_c)).reshape(1, Coutp)

    return {"w_tap": w_tap, "shift_eff": shift_eff, "w_hwio": w_hwio,
            "bias": bias, "scale": scale, "shift": shift, "out_c": out_c}


if __name__ == "__main__":
    key = jax.random.PRNGKey(0)
    k_x, k_s, k_p = jax.random.split(key, 3)

    B, H, W = 2, 16, 16
    in_c, skip_c, out_c = 8, 8, 32        # DecoderBlock(in_c=8, skip_c=8, out_c=32)

    x = jax.random.normal(k_x, (B, H, W, in_c), jnp.float32)               # NHWC
    skip = jax.random.normal(k_s, (B, 2 * H, 2 * W, skip_c), jnp.float32)  # NHWC
    params = init_params(k_p, in_c, skip_c, out_c)

    # row_block=8 -> 4 row tiles per image: exercises the halo / tiling path.
    fwd = jax.jit(lambda a, b: decoder_block_forward(a, b, params, row_block=8))
    out = fwd(x, skip)
    jax.block_until_ready(out)

    assert out.shape == (B, 2 * H, 2 * W, out_c)
    out_f = out.astype(jnp.float32)
    assert bool(jnp.all(jnp.isfinite(out_f)))

    ref = decoder_block_reference(x, skip, params)
    err = float(jnp.max(jnp.abs(out_f - ref)))
    rel = err / (float(jnp.max(jnp.abs(ref))) + 1.0)
    assert rel < 2e-2, f"mismatch vs reference: max_abs={err}, rel={rel}"
    print("KERNEL_OK")
</pallas_src>

<mosaic_0001>
module attributes {stable_mosaic.version = 11 : i64} {
  func.func @_decoder_block_kernel(%arg0: i32, %arg1: i32, %arg2: memref<1x1x10x34x16xbf16, #tpu.memory_space<vmem>>, %arg3: memref<9x16x128xbf16, #tpu.memory_space<vmem>>, %arg4: memref<1x128xf32, #tpu.memory_space<vmem>>, %arg5: memref<1x1x8x32x128xbf16, #tpu.memory_space<vmem>>) attributes {dimension_semantics = [#tpu.dimension_semantics<parallel>, #tpu.dimension_semantics<parallel>], iteration_bounds = array<i64: 2, 4>, scalar_prefetch = 0 : i64, scratch_operands = 0 : i64, tpu.core_type = #tpu.core_type<tc>, window_params = [{transform_indices = @transform_0, window_bounds = array<i64: 1, 1, 10, 34, 16>}, {pipeline_mode = #tpu.pipeline_mode<synchronous>, transform_indices = @transform_1, window_bounds = array<i64: 9, 16, 128>}, {pipeline_mode = #tpu.pipeline_mode<synchronous>, transform_indices = @transform_2, window_bounds = array<i64: 1, 128>}, {transform_indices = @transform_3, window_bounds = array<i64: 1, 1, 8, 32, 128>}]} {
    %c0 = arith.constant 0 : index
    %c0_0 = arith.constant 0 : index
    %c0_1 = arith.constant 0 : index
    %c0_2 = arith.constant 0 : index
    %c0_3 = arith.constant 0 : index
    %0 = vector.load %arg2[%c0, %c0_0, %c0_1, %c0_2, %c0_3] : memref<1x1x10x34x16xbf16, #tpu.memory_space<vmem>>, vector<1x1x8x32x16xbf16>
    %1 = vector.shape_cast %0 : vector<1x1x8x32x16xbf16> to vector<8x32x16xbf16>
    %2 = vector.shape_cast %1 : vector<8x32x16xbf16> to vector<256x16xbf16>
    %c0_4 = arith.constant 0 : index
    %c0_5 = arith.constant 0 : index
    %c0_6 = arith.constant 0 : index
    %3 = vector.load %arg3[%c0_4, %c0_5, %c0_6] : memref<9x16x128xbf16, #tpu.memory_space<vmem>>, vector<1x16x128xbf16>
    %4 = vector.shape_cast %3 : vector<1x16x128xbf16> to vector<16x128xbf16>
    %cst = arith.constant dense<0.000000e+00> : vector<256x128xf32>
    %5 = tpu.matmul %2, %4, %cst {dimension_numbers = #tpu.dot_dimension_numbers<[1], [0], [0], [1], [0, 0, 1, 1], [], []>} : vector<256x16xbf16>, vector<16x128xbf16>, vector<256x128xf32> -> vector<256x128xf32>
    %c0_7 = arith.constant 0 : index
    %c0_8 = arith.constant 0 : index
    %c0_9 = arith.constant 0 : index
    %c1 = arith.constant 1 : index
    %c0_10 = arith.constant 0 : index
    %6 = vector.load %arg2[%c0_7, %c0_8, %c0_9, %c1, %c0_10] : memref<1x1x10x34x16xbf16, #tpu.memory_space<vmem>>, vector<1x1x8x32x16xbf16>
    %7 = vector.shape_cast %6 : vector<1x1x8x32x16xbf16> to vector<8x32x16xbf16>
    %8 = vector.shape_cast %7 : vector<8x32x16xbf16> to vector<256x16xbf16>
    %c1_11 = arith.constant 1 : index
    %c0_12 = arith.constant 0 : index
    %c0_13 = arith.constant 0 : index
    %9 = vector.load %arg3[%c1_11, %c0_12, %c0_13] : memref<9x16x128xbf16, #tpu.memory_space<vmem>>, vector<1x16x128xbf16>
    %10 = vector.shape_cast %9 : vector<1x16x128xbf16> to vector<16x128xbf16>
    %cst_14 = arith.constant dense<0.000000e+00> : vector<256x128xf32>
    %11 = tpu.matmul %8, %10, %cst_14 {dimension_numbers = #tpu.dot_dimension_numbers<[1], [0], [0], [1], [0, 0, 1, 1], [], []>} : vector<256x16xbf16>, vector<16x128xbf16>, vector<256x128xf32> -> vector<256x128xf32>
    %12 = arith.addf %5, %11 : vector<256x128xf32>
    %c0_15 = arith.constant 0 : index
    %c0_16 = arith.constant 0 : index
    %c0_17 = arith.constant 0 : index
    %c2 = arith.constant 2 : index
    %c0_18 = arith.constant 0 : index
    %13 = vector.load %arg2[%c0_15, %c0_16, %c0_17, %c2, %c0_18] : memref<1x1x10x34x16xbf16, #tpu.memory_space<vmem>>, vector<1x1x8x32x16xbf16>
    %14 = vector.shape_cast %13 : vector<1x1x8x32x16xbf16> to vector<8x32x16xbf16>
    %15 = vector.shape_cast %14 : vector<8x32x16xbf16> to vector<256x16xbf16>
    %c2_19 = arith.constant 2 : index
    %c0_20 = arith.constant 0 : index
    %c0_21 = arith.constant 0 : index
    %16 = vector.load %arg3[%c2_19, %c0_20, %c0_21] : memref<9x16x128xbf16, #tpu.memory_space<vmem>>, vector<1x16x128xbf16>
    %17 = vector.shape_cast %16 : vector<1x16x128xbf16> to vector<16x128xbf16>
    %cst_22 = arith.constant dense<0.000000e+00> : vector<256x128xf32>
    %18 = tpu.matmul %15, %17, %cst_22 {dimension_numbers = #tpu.dot_dimension_numbers<[1], [0], [0], [1], [0, 0, 1, 1], [], []>} : vector<256x16xbf16>, vector<16x128xbf16>, vector<256x128xf32> -> vector<256x128xf32>
    %19 = arith.addf %12, %18 : vector<256x128xf32>
    %c0_23 = arith.constant 0 : index
    %c0_24 = arith.constant 0 : index
    %c1_25 = arith.constant 1 : index
    %c0_26 = arith.constant 0 : index
    %c0_27 = arith.constant 0 : index
    %20 = vector.load %arg2[%c0_23, %c0_24, %c1_25, %c0_26, %c0_27] : memref<1x1x10x34x16xbf16, #tpu.memory_space<vmem>>, vector<1x1x8x32x16xbf16>
    %21 = vector.shape_cast %20 : vector<1x1x8x32x16xbf16> to vector<8x32x16xbf16>
    %22 = vector.shape_cast %21 : vector<8x32x16xbf16> to vector<256x16xbf16>
    %c3 = arith.constant 3 : index
    %c0_28 = arith.constant 0 : index
    %c0_29 = arith.constant 0 : index
    %23 = vector.load %arg3[%c3, %c0_28, %c0_29] : memref<9x16x128xbf16, #tpu.memory_space<vmem>>, vector<1x16x128xbf16>
    %24 = vector.shape_cast %23 : vector<1x16x128xbf16> to vector<16x128xbf16>
    %cst_30 = arith.constant dense<0.000000e+00> : vector<256x128xf32>
    %25 = tpu.matmul %22, %24, %cst_30 {dimension_numbers = #tpu.dot_dimension_numbers<[1], [0], [0], [1], [0, 0, 1, 1], [], []>} : vector<256x16xbf16>, vector<16x128xbf16>, vector<256x128xf32> -> vector<256x128xf32>
    %26 = arith.addf %19, %25 : vector<256x128xf32>
    %c0_31 = arith.constant 0 : index
    %c0_32 = arith.constant 0 : index
    %c1_33 = arith.constant 1 : index
    %c1_34 = arith.constant 1 : index
    %c0_35 = arith.constant 0 : index
    %27 = vector.load %arg2[%c0_31, %c0_32, %c1_33, %c1_34, %c0_35] : memref<1x1x10x34x16xbf16, #tpu.memory_space<vmem>>, vector<1x1x8x32x16xbf16>
    %28 = vector.shape_cast %27 : vector<1x1x8x32x16xbf16> to vector<8x32x16xbf16>
    %29 = vector.shape_cast %28 : vector<8x32x16xbf16> to vector<256x16xbf16>
    %c4 = arith.constant 4 : index
    %c0_36 = arith.constant 0 : index
    %c0_37 = arith.constant 0 : index
    %30 = vector.load %arg3[%c4, %c0_36, %c0_37] : memref<9x16x128xbf16, #tpu.memory_space<vmem>>, vector<1x16x128xbf16>
    %31 = vector.shape_cast %30 : vector<1x16x128xbf16> to vector<16x128xbf16>
    %cst_38 = arith.constant dense<0.000000e+00> : vector<256x128xf32>
    %32 = tpu.matmul %29, %31, %cst_38 {dimension_numbers = #tpu.dot_dimension_numbers<[1], [0], [0], [1], [0, 0, 1, 1], [], []>} : vector<256x16xbf16>, vector<16x128xbf16>, vector<256x128xf32> -> vector<256x128xf32>
    %33 = arith.addf %26, %32 : vector<256x128xf32>
    %c0_39 = arith.constant 0 : index
    %c0_40 = arith.constant 0 : index
    %c1_41 = arith.constant 1 : index
    %c2_42 = arith.constant 2 : index
    %c0_43 = arith.constant 0 : index
    %34 = vector.load %arg2[%c0_39, %c0_40, %c1_41, %c2_42, %c0_43] : memref<1x1x10x34x16xbf16, #tpu.memory_space<vmem>>, vector<1x1x8x32x16xbf16>
    %35 = vector.shape_cast %34 : vector<1x1x8x32x16xbf16> to vector<8x32x16xbf16>
    %36 = vector.shape_cast %35 : vector<8x32x16xbf16> to vector<256x16xbf16>
    %c5 = arith.constant 5 : index
    %c0_44 = arith.constant 0 : index
    %c0_45 = arith.constant 0 : index
    %37 = vector.load %arg3[%c5, %c0_44, %c0_45] : memref<9x16x128xbf16, #tpu.memory_space<vmem>>, vector<1x16x128xbf16>
    %38 = vector.shape_cast %37 : vector<1x16x128xbf16> to vector<16x128xbf16>
    %cst_46 = arith.constant dense<0.000000e+00> : vector<256x128xf32>
    %39 = tpu.matmul %36, %38, %cst_46 {dimension_numbers = #tpu.dot_dimension_numbers<[1], [0], [0], [1], [0, 0, 1, 1], [], []>} : vector<256x16xbf16>, vector<16x128xbf16>, vector<256x128xf32> -> vector<256x128xf32>
    %40 = arith.addf %33, %39 : vector<256x128xf32>
    %c0_47 = arith.constant 0 : index
    %c0_48 = arith.constant 0 : index
    %c2_49 = arith.constant 2 : index
    %c0_50 = arith.constant 0 : index
    %c0_51 = arith.constant 0 : index
    %41 = vector.load %arg2[%c0_47, %c0_48, %c2_49, %c0_50, %c0_51] : memref<1x1x10x34x16xbf16, #tpu.memory_space<vmem>>, vector<1x1x8x32x16xbf16>
    %42 = vector.shape_cast %41 : vector<1x1x8x32x16xbf16> to vector<8x32x16xbf16>
    %43 = vector.shape_cast %42 : vector<8x32x16xbf16> to vector<256x16xbf16>
    %c6 = arith.constant 6 : index
    %c0_52 = arith.constant 0 : index
    %c0_53 = arith.constant 0 : index
    %44 = vector.load %arg3[%c6, %c0_52, %c0_53] : memref<9x16x128xbf16, #tpu.memory_space<vmem>>, vector<1x16x128xbf16>
    %45 = vector.shape_cast %44 : vector<1x16x128xbf16> to vector<16x128xbf16>
    %cst_54 = arith.constant dense<0.000000e+00> : vector<256x128xf32>
    %46 = tpu.matmul %43, %45, %cst_54 {dimension_numbers = #tpu.dot_dimension_numbers<[1], [0], [0], [1], [0, 0, 1, 1], [], []>} : vector<256x16xbf16>, vector<16x128xbf16>, vector<256x128xf32> -> vector<256x128xf32>
    %47 = arith.addf %40, %46 : vector<256x128xf32>
    %c0_55 = arith.constant 0 : index
    %c0_56 = arith.constant 0 : index
    %c2_57 = arith.constant 2 : index
    %c1_58 = arith.constant 1 : index
    %c0_59 = arith.constant 0 : index
    %48 = vector.load %arg2[%c0_55, %c0_56, %c2_57, %c1_58, %c0_59] : memref<1x1x10x34x16xbf16, #tpu.memory_space<vmem>>, vector<1x1x8x32x16xbf16>
    %49 = vector.shape_cast %48 : vector<1x1x8x32x16xbf16> to vector<8x32x16xbf16>
    %50 = vector.shape_cast %49 : vector<8x32x16xbf16> to vector<256x16xbf16>
    %c7 = arith.constant 7 : index
    %c0_60 = arith.constant 0 : index
    %c0_61 = arith.constant 0 : index
    %51 = vector.load %arg3[%c7, %c0_60, %c0_61] : memref<9x16x128xbf16, #tpu.memory_space<vmem>>, vector<1x16x128xbf16>
    %52 = vector.shape_cast %51 : vector<1x16x128xbf16> to vector<16x128xbf16>
    %cst_62 = arith.constant dense<0.000000e+00> : vector<256x128xf32>
    %53 = tpu.matmul %50, %52, %cst_62 {dimension_numbers = #tpu.dot_dimension_numbers<[1], [0], [0], [1], [0, 0, 1, 1], [], []>} : vector<256x16xbf16>, vector<16x128xbf16>, vector<256x128xf32> -> vector<256x128xf32>
    %54 = arith.addf %47, %53 : vector<256x128xf32>
    %c0_63 = arith.constant 0 : index
    %c0_64 = arith.constant 0 : index
    %c2_65 = arith.constant 2 : index
    %c2_66 = arith.constant 2 : index
    %c0_67 = arith.constant 0 : index
    %55 = vector.load %arg2[%c0_63, %c0_64, %c2_65, %c2_66, %c0_67] : memref<1x1x10x34x16xbf16, #tpu.memory_space<vmem>>, vector<1x1x8x32x16xbf16>
    %56 = vector.shape_cast %55 : vector<1x1x8x32x16xbf16> to vector<8x32x16xbf16>
    %57 = vector.shape_cast %56 : vector<8x32x16xbf16> to vector<256x16xbf16>
    %c8 = arith.constant 8 : index
    %c0_68 = arith.constant 0 : index
    %c0_69 = arith.constant 0 : index
    %58 = vector.load %arg3[%c8, %c0_68, %c0_69] : memref<9x16x128xbf16, #tpu.memory_space<vmem>>, vector<1x16x128xbf16>
    %59 = vector.shape_cast %58 : vector<1x16x128xbf16> to vector<16x128xbf16>
    %cst_70 = arith.constant dense<0.000000e+00> : vector<256x128xf32>
    %60 = tpu.matmul %57, %59, %cst_70 {dimension_numbers = #tpu.dot_dimension_numbers<[1], [0], [0], [1], [0, 0, 1, 1], [], []>} : vector<256x16xbf16>, vector<16x128xbf16>, vector<256x128xf32> -> vector<256x128xf32>
    %61 = arith.addf %54, %60 : vector<256x128xf32>
    %c0_71 = arith.constant 0 : index
    %c0_72 = arith.constant 0 : index
    %62 = vector.load %arg4[%c0_71, %c0_72] : memref<1x128xf32, #tpu.memory_space<vmem>>, vector<1x128xf32>
    %63 = vector.broadcast %62 : vector<1x128xf32> to vector<256x128xf32>
    %64 = arith.addf %61, %63 : vector<256x128xf32>
    %cst_73 = arith.constant 0.000000e+00 : f32
    %65 = vector.broadcast %cst_73 : f32 to vector<256x128xf32>
    %66 = arith.maximumf %64, %65 : vector<256x128xf32>
    %67 = vector.shape_cast %66 : vector<256x128xf32> to vector<8x32x128xf32>
    %68 = arith.truncf %67 : vector<8x32x128xf32> to vector<8x32x128xbf16>
    %c0_74 = arith.constant 0 : index
    %c0_75 = arith.constant 0 : index
    %c0_76 = arith.constant 0 : index
    %c0_77 = arith.constant 0 : index
    %c0_78 = arith.constant 0 : index
    %69 = vector.load %arg5[%c0_74, %c0_75, %c0_76, %c0_77, %c0_78] : memref<1x1x8x32x128xbf16, #tpu.memory_space<vmem>>, vector<1x1x8x32x128xbf16>
    %70 = vector.shape_cast %69 : vector<1x1x8x32x128xbf16> to vector<8x32x128xbf16>
    %71 = vector.shape_cast %68 : vector<8x32x128xbf16> to vector<1x1x8x32x128xbf16>
    tpu.vector_store %arg5[%c0_74, %c0_75, %c0_76, %c0_77, %c0_78], %71 {strides = array<i32>} : memref<1x1x8x32x128xbf16, #tpu.memory_space<vmem>>, vector<1x1x8x32x128xbf16>,
    return
  }
  func.func @transform_0(%arg0: i32, %arg1: i32) -> (i32, i32, i32, i32, i32) {
    %c0_i32 = arith.constant 0 : i32
    %c0_i32_0 = arith.constant 0 : i32
    %c0_i32_1 = arith.constant 0 : i32
    %c0_i32_2 = arith.constant 0 : i32
    return %arg0, %arg1, %c0_i32, %c0_i32_0, %c0_i32_1 : i32, i32, i32, i32, i32
  }
  func.func @transform_1(%arg0: i32, %arg1: i32) -> (i32, i32, i32) {
    %c0_i32 = arith.constant 0 : i32
    %c0_i32_0 = arith.constant 0 : i32
    %c0_i32_1 = arith.constant 0 : i32
    %c0_i32_2 = arith.constant 0 : i32
    return %c0_i32, %c0_i32_0, %c0_i32_1 : i32, i32, i32
  }
  func.func @transform_2(%arg0: i32, %arg1: i32) -> (i32, i32) {
    %c0_i32 = arith.constant 0 : i32
    %c0_i32_0 = arith.constant 0 : i32
    %c0_i32_1 = arith.constant 0 : i32
    return %c0_i32, %c0_i32_0 : i32, i32
  }
  func.func @transform_3(%arg0: i32, %arg1: i32) -> (i32, i32, i32, i32, i32) {
    %c0_i32 = arith.constant 0 : i32
    %c0_i32_0 = arith.constant 0 : i32
    %c0_i32_1 = arith.constant 0 : i32
    %c0_i32_2 = arith.constant 0 : i32
    return %arg0, %arg1, %c0_i32, %c0_i32_0, %c0_i32_1 : i32, i32, i32, i32, i32
  }
}

</mosaic_0001>

<bundles_post_ra>
// kernel: _lambda_.1
= control target key start
LH: loop header
LB: loop body
LE: loop exit
PB: predicated region body
PF: predicated region fallthrough
CT: control target
= control target key end

     0   :  { %8 = vsyncpa [#allocation3], 0  ;;  %s6691_s0 = inlined_call_operand.vmem [shape: bf16[2,4,10,34,16], index: 0, kind: input, shape index: {}]   ;;  %s6692_s1 = inlined_call_operand.vmem [shape: bf16[9,16,128], index: 1, kind: input, shape index: {}]   ;;  %s6693_s2 = inlined_call_operand.vmem [shape: f32[1,128], index: 2, kind: input, shape index: {}]   ;;  %s6694_s3 = inlined_call_operand.hbm [shape: bf16[2,4,8,32,128], index: 3, kind: output, shape index: {}]  }
   0x1   :  { %10 = vsyncpa [#allocation3 + $0x1], 0  ;;  %s5162_s12 = smov 0   ;;  %s5164_s13 = smov 0  }
   0x2   :  { %s5166_s14 = smov 0   ;;  %s5168_s15 = smov 0  }
   0x3   :  { %s5170_s16 = smov 0   ;;  %s5172_s17 = smov 0  }
   0x4   :  { %s5174_s18 = smov 0   ;;  %s5176_s19 = smov 0  }
   0x5 LB: > { %s4179_s20 = sadd.s32 4294967295, %s5138_s19   ;;  %s4180_s21 = sadd.s32 4294967294, %s5138_s19   ;;  %s5138_s19 = sphi %s5176_s19, %s16_s19   ;;  %s5134_s18 = sphi %s5174_s18, %s6715_s18   ;;  %s5130_s17 = sphi %s5172_s17, %s6714_s17   ;;  %s5126_s16 = sphi %s5170_s16, %s6713_s16   ;;  %s5122_s15 = sphi %s5168_s15, %s6712_s15   ;;  %s5118_s14 = sphi %s5166_s14, %s6711_s14   ;;  %s5114_s13 = sphi %s5164_s13, %s6710_s13   ;;  %s5110_s12 = sphi %s5162_s12, %s6709_s12  }
   0x6   : > { %s25_s22 = sadd.s32 1, %s5130_s17  ;;  %s28_s23 = sadd.s32 1, %s5134_s18 }
   0x7   : > { %p26_p0 = scmp.ge.s32.totalorder %s25_s22, 4  ;;  %p117_p1 = scmp.ne.s32.totalorder %s5118_s14, %s5114_s13 }
   0x8   : > { %p118_p2 = scmp.eq.s32.totalorder %s4179_s20, 7  ;;  %p123_p5 = scmp.ne.s32.totalorder %s5114_s13, %s5110_s12 }
   0x9   : > { %s6717_s22 = smov (%p26_p0, %s25_s22), 0  ;;  %s6719_s23 = smov (!%p26_p0, %s28_s23), %s5134_s18 }
   0xa   : > { %s103_s24 = ssub.s32 %s5130_s17, %s6717_s22  ;;  %p5213_p3 = por %p118_p2, %p117_p1 }
   0xb   : > { %p30_p4 = scmp.ge.s32.totalorder %s6719_s23, 2  ;;  %p124_p6 = scmp.eq.s32.totalorder %s4180_s21, 7 }
   0xc   : > { %p4183_p7 = scmp.ge.s32.totalorder %s5138_s19, 1  ;;  %p160_p9 = scmp.lt.s32.totalorder %s5138_s19, 9 }
   0xd   : > { %s6721_s23 = smov (%p30_p4, %s6719_s23), 0  ;;  %p5222_p8 = por %p124_p6, %p123_p5 }
   0xe   : > { %s102_s27 = ssub.s32 %s5134_s18, %s6721_s23  ;;  %s107_s28 = sadd.s32 1, %s5118_s14 }
   0xf   : > { %s104_s29 = sor.u32 %s103_s24, %s102_s27  ;;  %p161_p10 = pnand %p4183_p7, %p160_p9 }
  0x10   : > { %p105_p11 = scmp.eq.s32.totalorder %s104_s29, 0 }
  0x11   : > { %164 = sbr.rel (%p161_p10) target bundleno = 774 (0x306), region = 32 }
  0x12   : > { %s5231_s30 = scalar_select %p105_p11, %s5118_s14, %s107_s28  }
  0x16   : > { %v4781_v0 = vld [vmem:[%s6692_s1 + $0x8] sm:$0xff]  ;;  %p188_p12 = scmp.lt.s32.totalorder %s5126_s16, 1  ;;  %p190_p13 = scmp.lt.s32.totalorder %s5122_s15, 3  ;;  %v4782_v1 = vld [vmem:[%s6692_s1 + $0x10] sm:$0xff]  ;;  %v4799_v2 = vld [vmem:[%s6692_s1 + $0x18] sm:$0xff]  ;;  %vm652_vm2 = vcmask 130048  }
  0x17   : > { %4916 = vmatpush.bf16.msra.mxu1 %v4781_v0  ;;  %4917 = vmatpush.bf16.msra.mxu2 %v4781_v0  ;;  %v4780_v3 = vld [vmem:[%s6692_s1] sm:$0xff]  ;;  %vm240_vm0 = vsmask.f32 3328  ;;  %vm241_vm1 = vsmask.f32 7440  ;;  %vm1037_vm4 = vcmask 1042432  }
  0x18   : > { %s189_s8 = scalar_select %p188_p12, %s5126_s16, 1  ;;  %4918 = vmatpush.bf16.msra.mxu3 %v4781_v0  ;;  %708 = vmatpush.bf16.msra.mxu0 %v4781_v0  ;;  %v4800_v4 = vld [vmem:[%s6692_s1 + $0x20] sm:$0xff]  ;;  %vm5279_vm3 = vmor %vm240_vm0, %vm241_vm1  ;;  %vm1038_vm5 = vcmask 1046532  }
  0x19   : > { %s191_s9 = scalar_select %p190_p13, %s5122_s15, 3  ;;  %vm5503_vm6 = vmor %vm1037_vm4, %vm1038_vm5 }
  0x1a   : > { %s4920_s10 = smul.u32 200, %s189_s8 }
  0x1b   : > { %1256 = vmatpush.bf16.msrb.mxu2 %v4782_v1  ;;  %s4919_s11 = smul.u32 50, %s191_s9  ;;  %931 = vmatpush.bf16.msrb.mxu1 %v4780_v3 }
  0x1c   : > { %1547 = vmatpush.bf16.msrb.mxu3 %v4799_v2  ;;  %2165 = vmatpush.bf16.msrb.mxu0 %v4800_v4 }
  0x1d   : > { %s194_s4 = sadd.s32 %s4920_s10, %s4919_s11  ;;  %s4759_s10 = sshll.u32 %s5122_s15, 5 }
  0x1e   : > { %s4185_s5 = sshll.u32 %s194_s4, 2  ;;  %s4760_s11 = sshll.u32 %s5126_s16, 7 }
  0x1f   : > { %s5255_s8 = scalar_lea.vmem %s6691_s0, %s4185_s5  ;;  %s185_s5 = sand.u32 1, %s5114_s13  }
  0x20   : > { %v206_v5 = vld [vmem:[%s5255_s8 + $0x28] sm:$0xf]  ;;  %v5259_v6 = vld [vmem:[%s5255_s8 + $0x2c] sm:$0xf]  ;;  %v5262_v7 = vld [vmem:[%s5255_s8 + $0x30] sm:$0xf]  ;;  %s4088_s20 = sadd.s32 %s4760_s11, %s4759_s10 }
  0x21   : > { %v332_v8 = vshrl.u32 %v206_v5, 16  ;;  %v335_v9 = vshll.u32 %v206_v5, 16  ;;  %v341_v10 = vshll.u32 %v5259_v6, 16  ;;  %v345_v11 = vshrl.u32 %v5259_v6, 16  ;;  %v214_v12 = vld [vmem:[%s5255_s8 + $0x50] sm:$0xf] }
  0x22   : > { %v351_v13 = vshll.u32 %v5262_v7, 16  ;;  %v215_v14 = vld [vmem:[%s5255_s8 + $0x54] sm:$0xf]  ;;  %v5270_v15 = vld [vmem:[%s5255_s8 + $0x58] sm:$0xf]  ;;  %v420_v16 = vshrl.u32 %v214_v12, 16 }
  0x23   : > { %v334_v17 = vrot.slane %v332_v8, 4  ;;  %v337_v18 = vrot.slane %v335_v9, 5  ;;  %v343_v19 = vrot.slane %v341_v10, 5  ;;  %v347_v20 = vrot.slane %v345_v11, 4  ;;  %v222_v21 = vld [vmem:[%s5255_s8 + $0x78] sm:$0xf] }
  0x24   : > { %v5273_v22 = vrot.slane %v351_v13, 5  ;;  %v422_v23 = vrot.slane %v420_v16, 4  ;;  %v423_v24 = vshll.u32 %v214_v12, 16  ;;  %v429_v25 = vshll.u32 %v215_v14, 16  ;;  %v223_v30 = vld [vmem:[%s5255_s8 + $0x7c] sm:$0xf] }
  0x25   : > { %v338_v26 = vor.u32 %v337_v18, %v334_v17  ;;  %v348_v27 = vor.u32 %v347_v20, %v343_v19  ;;  %v433_v28 = vshrl.u32 %v215_v14, 16  ;;  %v439_v29 = vshll.u32 %v5270_v15, 16  ;;  %v5286_v41 = vld [vmem:[%s5255_s8 + $0x80] sm:$0xf]  ;;  %v5298_v61 = vld [vmem:[%s5255_s8 + $0x4] sm:$0xf] }
  0x26   : > { %v425_v32 = vrot.slane %v423_v24, 5  ;;  %v431_v33 = vrot.slane %v429_v25, 5  ;;  %v508_v34 = vshrl.u32 %v222_v21, 16  ;;  %v511_v35 = vshll.u32 %v222_v21, 16  ;;  %v198_v49 = vld [vmem:[%s5255_s8] sm:$0xf] }
  0x27   : > { %v339_v36 = vrot.slane %v338_v26, 4  ;;  %v349_v37 = vrot.slane %v348_v27, 4  ;;  %v435_v38 = vrot.slane %v433_v28, 4  ;;  %v5283_v39 = vrot.slane %v439_v29, 5  ;;  %v5306_v3 = vld [vmem:[%s5255_s8 + $0x8] sm:$0xf] }
  0x28   : > { %v426_v40 = vor.u32 %v425_v32, %v422_v23  ;;  %v510_v42 = vrot.slane %v508_v34, 4  ;;  %v513_v43 = vrot.slane %v511_v35, 5  ;;  %v517_v44 = vshll.u32 %v223_v30, 16  ;;  %v5312_v10 = vld [vmem:[%s5255_s8 + $0x34] sm:$0xf]  ;;  %s4184_s6 = sshll.u32 %s185_s5, 7 }
  0x29   : > { %v344_v45 = vsel %vm5279_vm3, %v339_v36, %v343_v19  ;;  %v354_v46 = vsel %vm5279_vm3, %v349_v37, %v5273_v22  ;;  %v436_v47 = vor.u32 %v435_v38, %v431_v33  ;;  %v521_v48 = vshrl.u32 %v223_v30, 16  ;;  %v5318_v19 = vld [vmem:[%s5255_s8 + $0x38] sm:$0x1]  ;;  %v217_v30 = vld [vmem:[%s5255_s8 + $0x5c] sm:$0xf]  ;;  %s6376_s7 = scalar_lea.vmem [#allocation2], %s4184_s6 }
  0x2a   : > { %v606_v50 = vunpack.c.l.b16 %v344_v45  ;;  %v607_v51 = vunpack.c.l.b16 %v354_v46  ;;  %v427_v52 = vrot.slane %v426_v40, 4  ;;  %v514_v53 = vor.u32 %v513_v43, %v510_v42  ;;  %s4761_s21 = sshll.u32 %s4088_s20, 2  ;;  %s4091_s27 = sshll.u32 %s6376_s7, 4  ;;  %s4092_s27 = int_to_ptr.vmem [resolvable:$true] %s4091_s27 }
  0x2b   : > { %v437_v54 = vrot.slane %v436_v47, 4  ;;  %v519_v55 = vrot.slane %v517_v44, 5  ;;  %v523_v56 = vrot.slane %v521_v48, 4  ;;  %v527_v57 = vshll.u32 %v5286_v41, 16  ;;  %v236_v48 = vld [vmem:[%s5255_s8 + $0x60] sm:$0x1]  ;;  %s4090_s24 = scalar_lea.hbm %s6694_s3, %s4761_s21 }
  0x2c   : > { %v634_v58 = vpack.c.b16 %v607_v51, %v606_v50  ;;  %v432_v59 = vsel %vm5279_vm3, %v427_v52, %v431_v33  ;;  %v515_v60 = vrot.slane %v514_v53, 4  ;;  %v244_v62 = vshrl.u32 %v198_v49, 16  ;;  %s4093_s28 = sshll.u32 %s4090_s24, 4  ;;  %s4077_s29 = scalar_lea.sflag [#allocation3], %s185_s5  ;;  %s4094_s28 = int_to_ptr.hbm [resolvable:$true] %s4093_s28 }
  0x2d   : > { %v442_v63 = vsel %vm5279_vm3, %v437_v54, %v5283_v39  ;;  %v614_v0 = vunpack.c.l.b16 %v432_v59  ;;  %v524_v1 = vor.u32 %v523_v56, %v519_v55  ;;  %v5303_v2 = vrot.slane %v527_v57, 5  ;;  %v225_v57 = vld [vmem:[%s5255_s8 + $0x84] sm:$0xf]  ;;  %s5058_s4 = sshra.s32 %s4094_s28, 4  ;;  %s5064_s10 = scalar_lea.hbm %s6694_s3, 1024  ;;  %s5059_s4 = int_to_ptr.hbm [resolvable:$true] %s5058_s4 }
  0x2e   : > { %4196 = vmatmul.msk.bf16.vlgmr.msra.gmra.mxu1 %vm652_vm2, %v634_v58  ;;  %v615_v4 = vunpack.c.l.b16 %v442_v63  ;;  %v520_v5 = vsel %vm5279_vm3, %v515_v60, %v519_v55  ;;  %v246_v8 = vrot.slane %v244_v62, 4  ;;  %v247_v9 = vshll.u32 %v198_v49, 16  ;;  %s5060_s6 = scalar_lea.hbm %s5059_s4, 128  ;;  %p5065_p4 = scmp.lt.s32.totalorder %s5059_s4, %s6694_s3 }
  0x2f   : > { %v525_v11 = vrot.slane %v524_v1, 4  ;;  %v622_v12 = vunpack.c.l.b16 %v520_v5  ;;  %v253_v13 = vshll.u32 %v5298_v61, 16  ;;  %v257_v14 = vshrl.u32 %v5298_v61, 16  ;;  %v238_v1 = vld [vmem:[%s5255_s8 + $0x88] sm:$0x1]  ;;  %p5061_p0 = scmp.ne.s32.totalorder %s5059_s4, %s5060_s6  ;;  %p5066_p5 = scmp.lt.s32.totalorder %s5064_s10, %s5060_s6 }
  0x30   : > { %v638_v16 = vpack.c.b16 %v615_v4, %v614_v0  ;;  %v249_v17 = vrot.slane %v247_v9, 5  ;;  %v263_v18 = vshll.u32 %v5306_v3, 16  ;;  %v355_v20 = vshrl.u32 %v5262_v7, 16 }
  0x31   : > { %v530_v21 = vsel %vm5279_vm3, %v525_v11, %v5303_v2  ;;  %v255_v23 = vrot.slane %v253_v13, 5  ;;  %v259_v24 = vrot.slane %v257_v14, 4  ;;  %v361_v25 = vshll.u32 %v5312_v10, 16  ;;  %p5062_p1 = pnand %p5061_p0, %p5213_p3  ;;  %p5067_p6 = por %p5066_p5, %p5065_p4 }
  0x32   : > { %4200 = vmatmul.msk.bf16.vlgmr.msra.gmra.mxu2 %vm652_vm2, %v638_v16  ;;  %v623_v26 = vunpack.c.l.b16 %v530_v21  ;;  %v250_v27 = vor.u32 %v249_v17, %v246_v8  ;;  %v5326_v28 = vrot.slane %v263_v18, 5  ;;  %v357_v29 = vrot.slane %v355_v20, 4  ;;  %v5352_v16 = vld [vmem:[%s5255_s8 + $0xc] sm:$0xf]  ;;  %v5355_v21 = vld [vmem:[%s5255_s8 + $0x10] sm:$0x1] }
  0x33   : > { %v260_v32 = vor.u32 %v259_v24, %v255_v23  ;;  %v363_v33 = vrot.slane %v361_v25, 5  ;;  %v365_v34 = vshrl.u32 %v5312_v10, 16  ;;  %v371_v35 = vshll.u32 %v5318_v19, 16  ;;  %p5063_p2 = pneg %p5062_p1 }
  0x34   : > { %v642_v36 = vpack.c.b16 %v623_v26, %v622_v12  ;;  %v251_v37 = vrot.slane %v250_v27, 4  ;;  %v358_v38 = vor.u32 %v357_v29, %v5273_v22  ;;  %v443_v40 = vshrl.u32 %v5270_v15, 16  ;;  %v210_v26 = vld [vmem:[%s5255_s8 + $0x3c] sm:$0xf] }
  0x35   : > { %v261_v42 = vrot.slane %v260_v32, 4  ;;  %v367_v43 = vrot.slane %v365_v34, 4  ;;  %v373_v44 = vrot.slane %v371_v35, 5  ;;  %v449_v45 = vshll.u32 %v217_v30, 16  ;;  %p5068_p7 = pnand %p5067_p6, %p5063_p2 }
  0x36   : > { %4204 = vmatmul.msk.bf16.vlgmr.msra.gmra.mxu3 %vm652_vm2, %v642_v36  ;;  %v256_v46 = vsel %vm5279_vm3, %v251_v37, %v255_v23  ;;  %v359_v47 = vrot.slane %v358_v38, 4  ;;  %v445_v49 = vrot.slane %v443_v40, 4  ;;  %v453_v50 = vshrl.u32 %v217_v30, 16  ;;  %v5367_v37 = vld [vmem:[%s5255_s8 + $0x40] sm:$0xf] }
  0x37   : > { %v266_v22 = vsel %vm5279_vm3, %v261_v42, %v5326_v28  ;;  %v598_v15 = vunpack.c.l.b16 %v256_v46  ;;  %v368_v51 = vor.u32 %v367_v43, %v363_v33  ;;  %v451_v52 = vrot.slane %v449_v45, 5  ;;  %v5370_v42 = vld [vmem:[%s5255_s8 + $0x44] sm:$0xf] }
  0x38   : > { %v599_v53 = vunpack.c.l.b16 %v266_v22  ;;  %v364_v54 = vsel %vm5279_vm3, %v359_v47, %v363_v33  ;;  %v446_v55 = vor.u32 %v445_v49, %v5283_v39  ;;  %v455_v56 = vrot.slane %v453_v50, 4 }
  0x39   : > { %v369_v58 = vrot.slane %v368_v51, 4  ;;  %v608_v59 = vunpack.c.l.b16 %v364_v54  ;;  %v459_v60 = vshll.u32 %v236_v48, 16  ;;  %v531_v4 = vshrl.u32 %v5286_v41, 16  ;;  %v218_v48 = vld [vmem:[%s5255_s8 + $0x64] sm:$0xf] }
  0x3a   : > { %v630_v62 = vpack.c.b16 %v599_v53, %v598_v15  ;;  %v447_v63 = vrot.slane %v446_v55, 4  ;;  %v456_v0 = vor.u32 %v455_v56, %v451_v52  ;;  %v537_v9 = vshll.u32 %v225_v57, 16 }
  0x3b   : > { %v374_v5 = vsel %vm5279_vm3, %v369_v58, %v373_v44  ;;  %v461_v8 = vrot.slane %v459_v60, 5  ;;  %v541_v39 = vshrl.u32 %v225_v57, 16  ;;  %v533_v14 = vrot.slane %v531_v4, 4  ;;  %v219_v58 = vld [vmem:[%s5255_s8 + $0x68] sm:$0xf] }
  0x3c   : > { %4192 = vmatmul.msk.bf16.vlgmr.msra.gmra.mxu0 %vm652_vm2, %v630_v62  ;;  %v609_v11 = vunpack.c.l.b16 %v374_v5  ;;  %v452_v12 = vsel %vm5279_vm3, %v447_v63, %v451_v52  ;;  %v457_v13 = vrot.slane %v456_v0, 4  ;;  %v539_v18 = vrot.slane %v537_v9, 5 }
  0x3d   : > { %v616_v17 = vunpack.c.l.b16 %v452_v12  ;;  %v543_v41 = vrot.slane %v541_v39, 4  ;;  %v547_v20 = vshll.u32 %v238_v1, 16  ;;  %v534_v25 = vor.u32 %v533_v14, %v5303_v2  ;;  %v226_v1 = vld [vmem:[%s5255_s8 + $0x8c] sm:$0xf] }
  0x3e   : > { %v635_v23 = vpack.c.b16 %v609_v11, %v608_v59  ;;  %v462_v24 = vsel %vm5279_vm3, %v457_v13, %v461_v8  ;;  %v267_v32 = vshrl.u32 %v5306_v3, 16  ;;  %v273_v34 = vshll.u32 %v5352_v16, 16  ;;  %v5389_v8 = vld [vmem:[%s5255_s8 + $0x6c] sm:$0xf] }
  0x3f   : > { %v617_v27 = vunpack.c.l.b16 %v462_v24  ;;  %v544_v29 = vor.u32 %v543_v41, %v539_v18  ;;  %v549_v30 = vrot.slane %v547_v20, 5  ;;  %v535_v33 = vrot.slane %v534_v25, 4 }
  0x40   : > { %4197 = vmatmul.msk.bf16.gmra.mxu1 %vm652_vm2, %v635_v23  ;;  %v277_v35 = vshrl.u32 %v5352_v16, 16  ;;  %v283_v36 = vshll.u32 %v5355_v21, 16  ;;  %v269_v40 = vrot.slane %v267_v32, 4  ;;  %v376_v43 = vshrl.u32 %v210_v26, 16  ;;  %v227_v32 = vld [vmem:[%s5255_s8 + $0x90] sm:$0xf] }
  0x41   : > { %v639_v38 = vpack.c.b16 %v617_v27, %v616_v17  ;;  %v545_v2 = vrot.slane %v544_v29, 4  ;;  %v540_v44 = vsel %vm5279_vm3, %v535_v33, %v539_v18  ;;  %v275_v45 = vrot.slane %v273_v34, 5 }
  0x42   : > { %v279_v46 = vrot.slane %v277_v35, 4  ;;  %v285_v47 = vrot.slane %v283_v36, 5  ;;  %v624_v50 = vunpack.c.l.b16 %v540_v44  ;;  %v270_v22 = vor.u32 %v269_v40, %v5326_v28  ;;  %v5401_v36 = vld [vmem:[%s5255_s8 + $0x94] sm:$0xf] }
  0x43   : > { %4201 = vmatmul.msk.bf16.gmra.mxu2 %vm652_vm2, %v639_v38  ;;  %v550_v49 = vsel %vm5279_vm3, %v545_v2, %v549_v30  ;;  %v378_v15 = vrot.slane %v376_v43, 4  ;;  %v379_v53 = vshll.u32 %v210_v26, 16  ;;  %v385_v54 = vshll.u32 %v5367_v37, 16  ;;  %v202_v2 = vld [vmem:[%s5255_s8 + $0x14] sm:$0xf] }
  0x44   : > { %v625_v51 = vunpack.c.l.b16 %v550_v49  ;;  %v280_v52 = vor.u32 %v279_v46, %v275_v45  ;;  %v271_v55 = vrot.slane %v270_v22, 4  ;;  %v389_v56 = vshrl.u32 %v5367_v37, 16 }
  0x45   : > { %v395_v57 = vshll.u32 %v5370_v42, 16  ;;  %v464_v59 = vshrl.u32 %v218_v48, 16  ;;  %v381_v63 = vrot.slane %v379_v53, 5  ;;  %v387_v0 = vrot.slane %v385_v54, 5 }
  0x46   : > { %v643_v60 = vpack.c.b16 %v625_v51, %v624_v50  ;;  %v281_v62 = vrot.slane %v280_v52, 4  ;;  %v276_v28 = vsel %vm5279_vm3, %v271_v55, %v275_v45  ;;  %v391_v4 = vrot.slane %v389_v56, 4  ;;  %v5412_v56 = vld [vmem:[%s5255_s8 + $0x18] sm:$0xf] }
  0x47   : > { %v5386_v5 = vrot.slane %v395_v57, 5  ;;  %v466_v9 = vrot.slane %v464_v59, 4  ;;  %v600_v11 = vunpack.c.l.b16 %v276_v28  ;;  %v382_v12 = vor.u32 %v381_v63, %v378_v15  ;;  %v5415_v57 = vld [vmem:[%s5255_s8 + $0x1c] sm:$0xf] }
  0x48   : > { %4205 = vmatmul.msk.bf16.gmra.mxu3 %vm652_vm2, %v643_v60  ;;  %v286_v39 = vsel %vm5279_vm3, %v281_v62, %v285_v47  ;;  %v467_v13 = vshll.u32 %v218_v48, 16  ;;  %v392_v17 = vor.u32 %v391_v4, %v387_v0  ;;  %v473_v18 = vshll.u32 %v219_v58, 16 }
  0x49   : > { %v601_v14 = vunpack.c.l.b16 %v286_v39  ;;  %v477_v41 = vshrl.u32 %v219_v58, 16  ;;  %v383_v20 = vrot.slane %v382_v12, 4  ;;  %v483_v24 = vshll.u32 %v5389_v8, 16 }
  0x4a   : > { %v469_v23 = vrot.slane %v467_v13, 5  ;;  %v552_v25 = vshrl.u32 %v226_v1, 16  ;;  %v393_v27 = vrot.slane %v392_v17, 4  ;;  %v475_v29 = vrot.slane %v473_v18, 5  ;;  %v5427_v17 = vld [vmem:[%s5255_s8 + $0x48] sm:$0xf] }
  0x4b   : > { %v631_v26 = vpack.c.b16 %v601_v14, %v600_v11  ;;  %v479_v30 = vrot.slane %v477_v41, 4  ;;  %v388_v33 = vsel %vm5279_vm3, %v383_v20, %v387_v0  ;;  %v5398_v35 = vrot.slane %v483_v24, 5 }
  0x4c   : > { %v470_v34 = vor.u32 %v469_v23, %v466_v9  ;;  %v554_v38 = vrot.slane %v552_v25, 4  ;;  %v398_v40 = vsel %vm5279_vm3, %v393_v27, %v5386_v5  ;;  %v610_v43 = vunpack.c.l.b16 %v388_v33  ;;  %v5435_v25 = vld [vmem:[%s5255_s8 + $0x4c] sm:$0x1] }
  0x4d   : > { %4193 = vmatmul.msk.bf16.gmra.mxu0 %vm652_vm2, %v631_v26  ;;  %v480_v44 = vor.u32 %v479_v30, %v475_v29  ;;  %v555_v45 = vshll.u32 %v226_v1, 16  ;;  %v611_v46 = vunpack.c.l.b16 %v398_v40  ;;  %v561_v48 = vshll.u32 %v227_v32, 16 }
  0x4e   : > { %v471_v47 = vrot.slane %v470_v34, 4  ;;  %v565_v49 = vshrl.u32 %v227_v32, 16  ;;  %v571_v15 = vshll.u32 %v5401_v36, 16  ;;  %v288_v51 = vshrl.u32 %v202_v2, 16 }
  0x4f   : > { %v481_v50 = vrot.slane %v480_v44, 4  ;;  %v557_v22 = vrot.slane %v555_v45, 5  ;;  %v636_v52 = vpack.c.b16 %v611_v46, %v610_v43  ;;  %v563_v54 = vrot.slane %v561_v48, 5  ;;  %v221_v44 = vld [vmem:[%s5255_s8 + $0x70] sm:$0xf] }
  0x50   : > { %v476_v53 = vsel %vm5279_vm3, %v471_v47, %v475_v29  ;;  %v567_v55 = vrot.slane %v565_v49, 4  ;;  %v5420_v62 = vrot.slane %v571_v15, 5  ;;  %v290_v1 = vrot.slane %v288_v51, 4  ;;  %v237_v51 = vld [vmem:[%s5255_s8 + $0x74] sm:$0x1] }
  0x51   : > { %v486_v58 = vsel %vm5279_vm3, %v481_v50, %v5398_v35  ;;  %v618_v59 = vunpack.c.l.b16 %v476_v53  ;;  %v558_v60 = vor.u32 %v557_v22, %v554_v38  ;;  %4198 = vmatmul.msk.bf16.gmra.mxu1 %vm652_vm2, %v636_v52  ;;  %v291_v28 = vshll.u32 %v202_v2, 16 }
  0x52   : > { %v619_v63 = vunpack.c.l.b16 %v486_v58  ;;  %v568_v0 = vor.u32 %v567_v55, %v563_v54  ;;  %v297_v9 = vshll.u32 %v5412_v56, 16  ;;  %v301_v39 = vshrl.u32 %v5412_v56, 16 }
  0x53   : > { %v559_v4 = vrot.slane %v558_v60, 4  ;;  %v307_v11 = vshll.u32 %v5415_v57, 16  ;;  %v293_v14 = vrot.slane %v291_v28, 5  ;;  %v399_v18 = vshrl.u32 %v5370_v42, 16 }
  0x54   : > { %v640_v12 = vpack.c.b16 %v619_v63, %v618_v59  ;;  %v569_v13 = vrot.slane %v568_v0, 4  ;;  %v299_v20 = vrot.slane %v297_v9, 5  ;;  %v303_v23 = vrot.slane %v301_v39, 4  ;;  %v229_v63 = vld [vmem:[%s5255_s8 + $0x98] sm:$0xf] }
  0x55   : > { %v564_v41 = vsel %vm5279_vm3, %v559_v4, %v563_v54  ;;  %v5432_v24 = vrot.slane %v307_v11, 5  ;;  %v294_v29 = vor.u32 %v293_v14, %v290_v1  ;;  %v401_v30 = vrot.slane %v399_v18, 4  ;;  %v4818_v4 = vld [vmem:[%s6692_s1 + $0x30] sm:$0xff] }
  0x56   : > { %4202 = vmatmul.msk.bf16.gmra.mxu2 %vm652_vm2, %v640_v12  ;;  %v574_v26 = vsel %vm5279_vm3, %v569_v13, %v5420_v62  ;;  %v626_v27 = vunpack.c.l.b16 %v564_v41  ;;  %v304_v33 = vor.u32 %v303_v23, %v299_v20  ;;  %v405_v34 = vshll.u32 %v5427_v17, 16  ;;  %v239_v13 = vld [vmem:[%s5255_s8 + $0x9c] sm:$0x1] }
  0x57   : > { %v627_v32 = vunpack.c.l.b16 %v574_v26  ;;  %v409_v38 = vshrl.u32 %v5427_v17, 16  ;;  %v295_v2 = vrot.slane %v294_v29, 4  ;;  %v402_v40 = vor.u32 %v401_v30, %v5386_v5  ;;  %2834 = vmatpush.bf16.msra.mxu2 %v4818_v4  ;;  %v5469_v29 = vld [vmem:[%s5255_s8 + $0x20] sm:$0xf]  ;;  %v5472_v30 = vld [vmem:[%s5255_s8 + $0x24] sm:$0x1] }
  0x58   : > { %v415_v43 = vshll.u32 %v5435_v25, 16  ;;  %v487_v45 = vshrl.u32 %v5389_v8, 16  ;;  %v305_v47 = vrot.slane %v304_v33, 4  ;;  %v407_v48 = vrot.slane %v405_v34, 5 }
  0x59   : > { %v644_v46 = vpack.c.b16 %v627_v32, %v626_v27  ;;  %v411_v49 = vrot.slane %v409_v38, 4  ;;  %v300_v50 = vsel %vm5279_vm3, %v295_v2, %v299_v20  ;;  %v403_v22 = vrot.slane %v402_v40, 4  ;;  %v4801_v38 = vld [vmem:[%s6692_s1 + $0x28] sm:$0xff]  ;;  %v4820_v2 = vld [vmem:[%s6692_s1 + $0x40] sm:$0xff] }
  0x5a   : > { %v417_v15 = vrot.slane %v415_v43, 5  ;;  %v489_v52 = vrot.slane %v487_v45, 4  ;;  %v310_v5 = vsel %vm5279_vm3, %v305_v47, %v5432_v24  ;;  %v602_v53 = vunpack.c.l.b16 %v300_v50  ;;  %2543 = vmatpush.bf16.msra.mxu1 %v4801_v38  ;;  %3830 = vmatpush.bf16.msra.mxu0 %v4820_v2 }
  0x5b   : > { %4206 = vmatmul.msk.bf16.gmra.mxu3 %vm652_vm2, %v644_v46  ;;  %v412_v8 = vor.u32 %v411_v49, %v407_v48  ;;  %v493_v54 = vshll.u32 %v221_v44, 16  ;;  %v603_v55 = vunpack.c.l.b16 %v310_v5  ;;  %v408_v58 = vsel %vm5279_vm3, %v403_v22, %v407_v48 }
  0x5c   : > { %v490_v59 = vor.u32 %v489_v52, %v5398_v35  ;;  %v497_v60 = vshrl.u32 %v221_v44, 16  ;;  %v503_v28 = vshll.u32 %v237_v51, 16  ;;  %v612_v39 = vunpack.c.l.b16 %v408_v58 }
  0x5d   : > { %v413_v0 = vrot.slane %v412_v8, 4  ;;  %v495_v1 = vrot.slane %v493_v54, 5  ;;  %v632_v9 = vpack.c.b16 %v603_v55, %v602_v53  ;;  %v575_v18 = vshrl.u32 %v5401_v36, 16  ;;  %v4819_v36 = vld [vmem:[%s6692_s1 + $0x38] sm:$0xff]  ;;  %v1013_v8 = vld [vmem:[%s5255_s8] sm:$0xe] }
  0x5e   : > { %v491_v11 = vrot.slane %v490_v59, 4  ;;  %v499_v12 = vrot.slane %v497_v60, 4  ;;  %v505_v35 = vrot.slane %v503_v28, 5  ;;  %v581_v41 = vshll.u32 %v229_v63, 16  ;;  %3452 = vmatpush.bf16.msra.mxu3 %v4819_v36 }
  0x5f   : > { %v418_v14 = vsel %vm5279_vm3, %v413_v0, %v417_v15  ;;  %4194 = vmatmul.msk.bf16.gmra.mxu0 %vm652_vm2, %v632_v9  ;;  %v585_v27 = vshrl.u32 %v229_v63, 16  ;;  %v577_v32 = vrot.slane %v575_v18, 4  ;;  %v591_v34 = vshll.u32 %v239_v13, 16  ;;  %v4440_v0 = vld [vmem:[%s5255_s8 + $0x14] sm:$0xf] }
  0x60   : > { %v613_v20 = vunpack.c.l.b16 %v418_v14  ;;  %v496_v23 = vsel %vm5279_vm3, %v491_v11, %v495_v1  ;;  %v500_v26 = vor.u32 %v499_v12, %v495_v1  ;;  %v583_v33 = vrot.slane %v581_v41, 5  ;;  %v4441_v1 = vld [vmem:[%s5255_s8 + $0x18] sm:$0xf] }
  0x61   : > { %v620_v44 = vunpack.c.l.b16 %v496_v23  ;;  %v587_v45 = vrot.slane %v585_v27, 4  ;;  %v578_v46 = vor.u32 %v577_v32, %v5420_v62  ;;  %v593_v47 = vrot.slane %v591_v34, 5  ;;  %v4442_v32 = vld [vmem:[%s5255_s8 + $0x1c] sm:$0xf] }
  0x62   : > { %v637_v40 = vpack.c.b16 %v613_v20, %v612_v39  ;;  %v501_v43 = vrot.slane %v500_v26, 4  ;;  %v311_v48 = vshrl.u32 %v5415_v57, 16  ;;  %v317_v49 = vshll.u32 %v5469_v29, 16 }
  0x63   : > { %v588_v22 = vor.u32 %v587_v45, %v583_v33  ;;  %v321_v15 = vshrl.u32 %v5469_v29, 16  ;;  %v327_v51 = vshll.u32 %v5472_v30, 16  ;;  %v579_v52 = vrot.slane %v578_v46, 4 }
  0x64   : > { %4199 = vmatmul.msk.bf16.gmra.mxu1 %vm652_vm2, %v637_v40  ;;  %v506_v50 = vsel %vm5279_vm3, %v501_v43, %v505_v35  ;;  %v313_v5 = vrot.slane %v311_v48, 4  ;;  %v319_v53 = vrot.slane %v317_v49, 5  ;;  %v4292_v39 = vrot.slane %v1013_v8, 9 }
  0x65   : > { %v621_v62 = vunpack.c.l.b16 %v506_v50  ;;  %v589_v54 = vrot.slane %v588_v22, 4  ;;  %v323_v55 = vrot.slane %v321_v15, 4  ;;  %v329_v58 = vrot.slane %v327_v51, 5 }
  0x66   : > { %v584_v60 = vsel %vm5279_vm3, %v579_v52, %v583_v33  ;;  %v314_v63 = vor.u32 %v313_v5, %v5432_v24  ;;  %v1042_v13 = vrot.slane %v5298_v61, 5  ;;  %v1045_v14 = vrot.slane %v5306_v3, 5 }
  0x67   : > { %v641_v59 = vpack.c.b16 %v621_v62, %v620_v44  ;;  %v594_v28 = vsel %vm5279_vm3, %v589_v54, %v593_v47  ;;  %v628_v4 = vunpack.c.l.b16 %v584_v60  ;;  %v324_v9 = vor.u32 %v323_v55, %v319_v53  ;;  %v4764_v47 = vld [vmem:[%s5255_s8] sm:$0xff] }
  0x68   : > { %v629_v11 = vunpack.c.l.b16 %v594_v28  ;;  %v315_v12 = vrot.slane %v314_v63, 4  ;;  %v1702_v18 = vshrl.u32 %v4440_v0, 16  ;;  %v1705_v41 = vshll.u32 %v4440_v0, 16  ;;  %v4443_v62 = vld [vmem:[%s5255_s8 + $0x20] sm:$0xf]  ;;  %v4783_v0 = vld [vmem:[%s5255_s8 + $0x14] sm:$0xff] }
  0x69   : > { %4203 = vmatmul.msk.bf16.gmra.mxu2 %vm652_vm2, %v641_v59  ;;  %v325_v35 = vrot.slane %v324_v9, 4  ;;  %v1711_v20 = vshll.u32 %v4441_v1, 16  ;;  %v1044_v27 = vrot.slane %v1042_v13, 4  ;;  %v1043_v36 = vsel %vm5503_vm6, %v4292_v39, %v1042_v13 }
  0x6a   : > { %v645_v23 = vpack.c.b16 %v629_v11, %v628_v4  ;;  %v320_v26 = vsel %vm5279_vm3, %v315_v12, %v319_v53  ;;  %v1704_v33 = vrot.slane %v1702_v18, 4  ;;  %v1707_v38 = vrot.slane %v1705_v41, 5  ;;  %v4444_v11 = vld [vmem:[%s5255_s8 + $0x24] sm:$0x1]  ;;  %v4765_v41 = vld [vmem:[%s5255_s8 + $0x8] sm:$0xff] }
  0x6b   : > { %v330_v61 = vsel %vm5279_vm3, %v325_v35, %v329_v58  ;;  %v604_v3 = vunpack.c.l.b16 %v320_v26  ;;  %v1046_v2 = vsel %vm5503_vm6, %v1044_v27, %v1045_v14  ;;  %v1713_v40 = vrot.slane %v1711_v20, 5  ;;  %v4445_v27 = vld [vmem:[%s5255_s8 + $0x28] sm:$0xf] }
  0x6c   : > { %4207 = vmatmul.msk.bf16.gmra.mxu3 %vm652_vm2, %v645_v23  ;;  %v605_v34 = vunpack.c.l.b16 %v330_v61  ;;  %v1715_v43 = vshrl.u32 %v4441_v1, 16  ;;  %v1721_v44 = vshll.u32 %v4442_v32, 16  ;;  %v1708_v46 = vor.u32 %v1707_v38, %v1704_v33 }
  0x6d   : > { %v1147_v49 = vunpack.c.l.b16 %v1043_v36  ;;  %v1148_v50 = vunpack.c.l.b16 %v1046_v2  ;;  %v1048_v53 = vrot.slane %v5352_v16, 5  ;;  %v1725_v8 = vshrl.u32 %v4442_v32, 16 }
  0x6e   : > { %v633_v45 = vpack.c.b16 %v605_v34, %v604_v3  ;;  %v1717_v48 = vrot.slane %v1715_v43, 4  ;;  %v1709_v22 = vrot.slane %v1708_v46, 4  ;;  %v1723_v51 = vrot.slane %v1721_v44, 5  ;;  %v4446_v3 = vld [vmem:[%s5255_s8 + $0x2c] sm:$0xf] }
  0x6f   : > { %v1179_v5 = vpack.c.b16 %v1148_v50, %v1147_v49  ;;  %v1731_v58 = vshll.u32 %v4443_v62, 16  ;;  %v1735_v59 = vshrl.u32 %v4443_v62, 16  ;;  %v1047_v60 = vrot.slane %v1045_v14, 4  ;;  %v1014_v34 = vld [vmem:[%s5255_s8 + $0x14] sm:$0xe] }
  0x70   : > { %4195 = vmatmul.msk.bf16.gmra.mxu0 %vm652_vm2, %v633_v45  ;;  %v1718_v15 = vor.u32 %v1717_v48, %v1713_v40  ;;  %v1714_v54 = vsel %vm5279_vm3, %v1709_v22, %v1713_v40  ;;  %v1051_v63 = vrot.slane %v5355_v21, 5  ;;  %v1050_v16 = vrot.slane %v1048_v53, 4 }
  0x71   : > { %v2056_v1 = vunpack.c.l.b16 %v1714_v54  ;;  %v1727_v4 = vrot.slane %v1725_v8, 4  ;;  %v1733_v9 = vrot.slane %v1731_v58, 5  ;;  %v1737_v39 = vrot.slane %v1735_v59, 4  ;;  %v4766_v58 = vld [vmem:[%s5255_s8 + $0x14] sm:$0xff] }
  0x72   : > { %v1719_v52 = vrot.slane %v1718_v15, 4  ;;  %v1049_v13 = vsel %vm5503_vm6, %v1047_v60, %v1048_v53  ;;  %v1052_v21 = vsel %vm5503_vm6, %v1050_v16, %v1051_v63  ;;  %v1741_v18 = vshll.u32 %v4444_v11, 16 }
  0x73   : > { %v1728_v14 = vor.u32 %v1727_v4, %v1723_v51  ;;  %v1738_v35 = vor.u32 %v1737_v39, %v1733_v9  ;;  %v1149_v20 = vunpack.c.l.b16 %v1049_v13  ;;  %v1150_v23 = vunpack.c.l.b16 %v1052_v21 }
  0x74   : > { %4276 = vmatmul.msk.bf16.vlgmr.msrb.gmra.mxu1 %vm652_vm2, %v4764_v47  ;;  %v1724_v55 = vsel %vm5279_vm3, %v1719_v52, %v1723_v51  ;;  %v1743_v61 = vrot.slane %v1741_v18, 5  ;;  %v1055_v36 = vrot.slane %v5412_v56, 5  ;;  %v1746_v38 = vshrl.u32 %v4445_v27, 16  ;;  %v4784_v56 = vld [vmem:[%s5255_s8 + $0x1c] sm:$0xff]  ;;  %v4447_v52 = vld [vmem:[%s5255_s8 + $0x30] sm:$0xf] }
  0x75   : > { %v2057_v28 = vunpack.c.l.b16 %v1724_v55  ;;  %v1729_v26 = vrot.slane %v1728_v14, 4  ;;  %v1739_v32 = vrot.slane %v1738_v35, 4  ;;  %v1180_v33 = vpack.c.b16 %v1150_v23, %v1149_v20  ;;  %v4785_v35 = vld [vmem:[%s5255_s8 + $0x28] sm:$0xff] }
  0x76   : > { %v1749_v40 = vshll.u32 %v4445_v27, 16  ;;  %v1755_v43 = vshll.u32 %v4446_v3, 16  ;;  %v1759_v44 = vshrl.u32 %v4446_v3, 16  ;;  %v4293_v46 = vrot.slane %v1014_v34, 9 }
  0x77   : > { %v2088_v12 = vpack.c.b16 %v2057_v28, %v2056_v1  ;;  %v1734_v2 = vsel %vm5279_vm3, %v1729_v26, %v1733_v9  ;;  %v1744_v45 = vsel %vm5279_vm3, %v1739_v32, %v1743_v61  ;;  %v1057_v48 = vrot.slane %v1055_v36, 4  ;;  %v4448_v28 = vld [vmem:[%s5255_s8 + $0x34] sm:$0xf]  ;;  %v4449_v32 = vld [vmem:[%s5255_s8 + $0x38] sm:$0x1] }
  0x78   : > { %v2058_v47 = vunpack.c.l.b16 %v1734_v2  ;;  %v1058_v49 = vrot.slane %v5415_v57, 5  ;;  %v1748_v50 = vrot.slane %v1746_v38, 4  ;;  %v2059_v22 = vunpack.c.l.b16 %v1744_v45  ;;  %v4767_v38 = vld [vmem:[%s5255_s8 + $0x1c] sm:$0xff] }
  0x79   : > { %4306 = vmatmul.msk.bf16.vlgmr.msrb.gmra.mxu2 %vm652_vm2, %v1179_v5  ;;  %v1751_v15 = vrot.slane %v1749_v40, 5  ;;  %v1757_v51 = vrot.slane %v1755_v43, 5  ;;  %v1761_v62 = vrot.slane %v1759_v44, 4  ;;  %v1056_v5 = vsel %vm5503_vm6, %v4293_v46, %v1055_v36  ;;  %v4450_v45 = vld [vmem:[%s5255_s8 + $0x3c] sm:$0xf] }
  0x7a   : > { %v1059_v53 = vsel %vm5503_vm6, %v1057_v48, %v1058_v49  ;;  %v2089_v57 = vpack.c.b16 %v2059_v22, %v2058_v47  ;;  %v1765_v55 = vshll.u32 %v4447_v52, 16  ;;  %v1151_v59 = vunpack.c.l.b16 %v1056_v5  ;;  %v4451_v46 = vld [vmem:[%s5255_s8 + $0x40] sm:$0xf]  ;;  %v4786_v5 = vld [vmem:[%s5255_s8 + $0x30] sm:$0xff] }
  0x7b   : > { %v1752_v8 = vor.u32 %v1751_v15, %v1748_v50  ;;  %v1762_v54 = vor.u32 %v1761_v62, %v1757_v51  ;;  %v1152_v60 = vunpack.c.l.b16 %v1059_v53  ;;  %v1061_v39 = vrot.slane %v5469_v29, 5  ;;  %v1015_v62 = vld [vmem:[%s5255_s8 + $0x28] sm:$0xe] }
  0x7c   : > { %4424 = vmatmul.msk.bf16.vlgmr.msrb.gmra.mxu3 %vm652_vm2, %v4783_v0  ;;  %v1767_v1 = vrot.slane %v1765_v55, 5  ;;  %v1769_v11 = vshrl.u32 %v4447_v52, 16  ;;  %v1779_v13 = vshrl.u32 %v4448_v28, 16  ;;  %v1060_v18 = vrot.slane %v1058_v49, 4 }
  0x7d   : > { %v1753_v63 = vrot.slane %v1752_v8, 4  ;;  %v1763_v0 = vrot.slane %v1762_v54, 4  ;;  %v1181_v16 = vpack.c.b16 %v1152_v60, %v1151_v59  ;;  %v1064_v20 = vrot.slane %v5472_v30, 5 }
  0x7e   : > { %v1771_v23 = vrot.slane %v1769_v11, 4  ;;  %v1781_v27 = vrot.slane %v1779_v13, 4  ;;  %v1062_v61 = vsel %vm5503_vm6, %v1060_v18, %v1061_v39  ;;  %v1785_v36 = vshll.u32 %v4449_v32, 16 }
  0x7f   : > { %v1758_v4 = vsel %vm5279_vm3, %v1753_v63, %v1757_v51  ;;  %v1768_v9 = vsel %vm5279_vm3, %v1763_v0, %v1767_v1  ;;  %v1153_v30 = vunpack.c.l.b16 %v1062_v61  ;;  %v1790_v49 = vshrl.u32 %v4450_v45, 16 }
  0x80   : > { %4486 = vmatmul.msk.bf16.vlgmr.msrb.gmra.mxu0 %vm652_vm2, %v2088_v12  ;;  %v1775_v12 = vshll.u32 %v4448_v28, 16  ;;  %v2060_v21 = vunpack.c.l.b16 %v1758_v4  ;;  %v2061_v14 = vunpack.c.l.b16 %v1768_v9  ;;  %v1787_v44 = vrot.slane %v1785_v36, 5 }
  0x81   : > { %v1793_v50 = vshll.u32 %v4450_v45, 16  ;;  %v1068_v15 = vrot.slane %v5259_v6, 5  ;;  %v1803_v51 = vshrl.u32 %v4451_v46, 16  ;;  %v4294_v55 = vrot.slane %v1015_v62, 9  ;;  %v4452_v6 = vld [vmem:[%s5255_s8 + $0x44] sm:$0xf] }
  0x82   : > { %v1777_v26 = vrot.slane %v1775_v12, 5  ;;  %v2090_v29 = vpack.c.b16 %v2061_v14, %v2060_v21  ;;  %v1071_v59 = vrot.slane %v5262_v7, 5  ;;  %v1809_v9 = vshll.u32 %v4452_v6, 16  ;;  %v4453_v14 = vld [vmem:[%s5255_s8 + $0x48] sm:$0xf] }
  0x83   : > { %v1795_v8 = vrot.slane %v1793_v50, 5  ;;  %v1805_v60 = vrot.slane %v1803_v51, 4  ;;  %v1069_v28 = vsel %vm5503_vm6, %v4294_v55, %v1068_v15  ;;  %v1813_v18 = vshrl.u32 %v4452_v6, 16  ;;  %v4454_v45 = vld [vmem:[%s5255_s8 + $0x4c] sm:$0x1] }
  0x84   : > { %4277 = vmatmul.msk.bf16.gmra.mxu1 %vm652_vm2, %v4765_v41  ;;  %v1063_v41 = vrot.slane %v1061_v39, 4  ;;  %v1782_v34 = vor.u32 %v1781_v27, %v1777_v26  ;;  %v4768_v39 = vld [vmem:[%s5255_s8 + $0x28] sm:$0xff]  ;;  %v1155_v7 = vunpack.c.l.b16 %v1069_v28  ;;  %v1811_v21 = vrot.slane %v1809_v9, 5  ;;  %v1016_v9 = vld [vmem:[%s5255_s8 + $0x3c] sm:$0xe] }
  0x85   : > { %v1074_v32 = vrot.slane %v5312_v10, 5  ;;  %v1815_v61 = vrot.slane %v1813_v18, 4  ;;  %v4295_v18 = vrot.slane %v1016_v9, 9  ;;  %v4459_v9 = vld [vmem:[%s5255_s8 + $0x60] sm:$0x1] }
  0x86   : > { %v1065_v3 = vsel %vm5503_vm6, %v1063_v41, %v1064_v20  ;;  %v1783_v43 = vrot.slane %v1782_v34, 4 }
  0x87   : > { %v1154_v2 = vunpack.c.l.b16 %v1065_v3  ;;  %v1816_v10 = vor.u32 %v1815_v61, %v1811_v21 }
  0x88   : > { %v1788_v22 = vsel %vm5279_vm3, %v1783_v43, %v1787_v44  ;;  %v1077_v43 = vrot.slane %v5318_v19, 5  ;;  %v1829_v19 = vshll.u32 %v4454_v45, 16 }
  0x89   : > { %4307 = vmatmul.msk.bf16.gmra.mxu2 %vm652_vm2, %v1180_v33  ;;  %v1772_v33 = vor.u32 %v1771_v23, %v1767_v1  ;;  %v1182_v47 = vpack.c.b16 %v1154_v2, %v1153_v30  ;;  %v2063_v53 = vunpack.c.l.b16 %v1788_v22  ;;  %v1819_v23 = vshll.u32 %v4453_v14, 16  ;;  %v4769_v22 = vld [vmem:[%s5255_s8 + $0x30] sm:$0xff] }
  0x8a   : > { %v1073_v2 = vrot.slane %v1071_v59, 4 }
  0x8b   : > { %v1773_v40 = vrot.slane %v1772_v33, 4  ;;  %v4787_v33 = vld [vmem:[%s5255_s8 + $0x3c] sm:$0xff]  ;;  %v1821_v30 = vrot.slane %v1819_v23, 5  ;;  %v1084_v23 = vrot.slane %v5370_v42, 5 }
  0x8c   : > { %4425 = vmatmul.msk.bf16.gmra.mxu3 %vm652_vm2, %v4784_v56  ;;  %v1799_v56 = vshll.u32 %v4451_v46, 16 }
  0x8d   : > { %v1778_v48 = vsel %vm5279_vm3, %v1773_v40, %v1777_v26  ;;  %v1076_v40 = vrot.slane %v1074_v32, 4 }
  0x8e   : > { %v2062_v52 = vunpack.c.l.b16 %v1778_v48  ;;  %v1801_v54 = vrot.slane %v1799_v56, 5 }
  0x8f   : > { %v1078_v50 = vsel %vm5503_vm6, %v1076_v40, %v1077_v43 }
  0x90   : > { %4487 = vmatmul.msk.bf16.gmra.mxu0 %vm652_vm2, %v2089_v57  ;;  %v1792_v57 = vrot.slane %v1790_v49, 4  ;;  %v2091_v0 = vpack.c.b16 %v2063_v53, %v2062_v52  ;;  %v1806_v4 = vor.u32 %v1805_v60, %v1801_v54  ;;  %v1075_v49 = vsel %vm5503_vm6, %v1073_v2, %v1074_v32  ;;  %v4770_v2 = vld [vmem:[%s5255_s8 + $0x3c] sm:$0xff] }
  0x91   : > { %v1157_v52 = vunpack.c.l.b16 %v1075_v49 }
  0x92   : > { %v1796_v1 = vor.u32 %v1795_v8, %v1792_v57  ;;  %v1807_v13 = vrot.slane %v1806_v4, 4  ;;  %v1831_v57 = vrot.slane %v1829_v19, 5  ;;  %v4455_v8 = vld [vmem:[%s5255_s8 + $0x50] sm:$0xf] }
  0x93   : > { %v1834_v60 = vshrl.u32 %v4455_v8, 16  ;;  %v1837_v6 = vshll.u32 %v4455_v8, 16 }
  0x94   : > { %4278 = vmatmul.msk.bf16.gmra.mxu1 %vm652_vm2, %v4766_v58  ;;  %v1070_v58 = vrot.slane %v1068_v15, 4  ;;  %v1797_v12 = vrot.slane %v1796_v1, 4  ;;  %v1812_v27 = vsel %vm5279_vm3, %v1807_v13, %v1811_v21  ;;  %v1817_v15 = vrot.slane %v1816_v10, 4 }
  0x95   : > { %v2065_v36 = vunpack.c.l.b16 %v1812_v27  ;;  %v1839_v13 = vrot.slane %v1837_v6, 5  ;;  %v4457_v27 = vld [vmem:[%s5255_s8 + $0x58] sm:$0xf] }
  0x96   : > { %v1802_v26 = vsel %vm5279_vm3, %v1797_v12, %v1801_v54  ;;  %v4456_v54 = vld [vmem:[%s5255_s8 + $0x54] sm:$0xf]  ;;  %v1822_v55 = vsel %vm5279_vm3, %v1817_v15, %v1821_v30  ;;  %v1836_v12 = vrot.slane %v1834_v60, 4 }
  0x97   : > { %v2064_v34 = vunpack.c.l.b16 %v1802_v26  ;;  %v1847_v4 = vshrl.u32 %v4456_v54, 16 }
  0x99   : > { %4308 = vmatmul.msk.bf16.gmra.mxu2 %vm652_vm2, %v1181_v16  ;;  %v1072_v16 = vsel %vm5503_vm6, %v1070_v58, %v1071_v59  ;;  %v2092_v46 = vpack.c.b16 %v2065_v36, %v2064_v34  ;;  %v1849_v26 = vrot.slane %v1847_v4, 4  ;;  %v1853_v36 = vshll.u32 %v4457_v27, 16 }
  0x9a   : > { %v1156_v11 = vunpack.c.l.b16 %v1072_v16  ;;  %v1081_v16 = vrot.slane %v5367_v37, 5 }
  0x9b   : > { %v1855_v10 = vrot.slane %v1853_v36, 5 }
  0x9c   : > { %4426 = vmatmul.msk.bf16.gmra.mxu3 %vm652_vm2, %v4785_v35  ;;  %v1183_v41 = vpack.c.b16 %v1156_v11, %v1155_v7  ;;  %v4788_v7 = vld [vmem:[%s5255_s8 + $0x44] sm:$0xff]  ;;  %v1082_v61 = vsel %vm5503_vm6, %v4295_v18, %v1081_v16 }
  0x9d   : > { %v1159_v40 = vunpack.c.l.b16 %v1082_v61  ;;  %v4771_v18 = vld [vmem:[%s5255_s8 + $0x44] sm:$0xff] }
  0xa0   : > { %4488 = vmatmul.msk.bf16.gmra.mxu0 %vm652_vm2, %v2090_v29  ;;  %v1823_v29 = vshrl.u32 %v4453_v14, 16 }
  0xa2   : > { %v1825_v44 = vrot.slane %v1823_v29, 4  ;;  %v1840_v29 = vor.u32 %v1839_v13, %v1836_v12 }
  0xa4   : > { %4279 = vmatmul.msk.bf16.gmra.mxu1 %vm652_vm2, %v4767_v38  ;;  %v1826_v56 = vor.u32 %v1825_v44, %v1821_v30  ;;  %v1841_v44 = vrot.slane %v1840_v29, 4 }
  0xa6   : > { %v1827_v53 = vrot.slane %v1826_v56, 4  ;;  %v1857_v56 = vshrl.u32 %v4457_v27, 16 }
  0xa8   : > { %v1832_v1 = vsel %vm5279_vm3, %v1827_v53, %v1831_v57  ;;  %v1859_v8 = vrot.slane %v1857_v56, 4  ;;  %v4995_v56 = vld [vmem:[%s5255_s8 + $0x54] sm:$0xf] }
  0xa9   : > { %4309 = vmatmul.msk.bf16.gmra.mxu2 %vm652_vm2, %v1182_v47  ;;  %v2067_v11 = vunpack.c.l.b16 %v1832_v1 }
  0xab   : > { %v5587_v63 = vpop.f32.mrf.mxu1 }
  0xac   : > { %4427 = vmatmul.msk.bf16.gmra.mxu3 %vm652_vm2, %v4786_v5  ;;  %v1158_v5 = vunpack.c.l.b16 %v1078_v50 }
  0xae   : > { %v1184_v58 = vpack.c.b16 %v1158_v5, %v1157_v52  ;;  %v1087_v5 = vrot.slane %v5427_v17, 5  ;;  %v1860_v17 = vor.u32 %v1859_v8, %v1855_v10 }
  0xb0   : > { %4489 = vmatmul.msk.bf16.gmra.mxu0 %vm652_vm2, %v2091_v0  ;;  %v1843_v0 = vshll.u32 %v4456_v54, 16  ;;  %v4789_v54 = vld [vmem:[%s5255_s8 + $0x50] sm:$0xff]  ;;  %v1089_v1 = vrot.slane %v1087_v5, 4 }
  0xb2   : > { %v1845_v21 = vrot.slane %v1843_v0, 5  ;;  %v1086_v0 = vrot.slane %v1084_v23, 4 }
  0xb3   : > { %v5598_v35 = vpop.f32.mrf.mxu1 }
  0xb4   : > { %4280 = vmatmul.msk.bf16.gmra.mxu1 %vm652_vm2, %v4768_v39  ;;  %v2066_v39 = vunpack.c.l.b16 %v1822_v55  ;;  %v1850_v34 = vor.u32 %v1849_v26, %v1845_v21  ;;  %v1846_v15 = vsel %vm5279_vm3, %v1841_v44, %v1845_v21  ;;  %v1088_v12 = vsel %vm5503_vm6, %v1086_v0, %v1087_v5  ;;  %v4790_v5 = vld [vmem:[%s5255_s8 + $0x58] sm:$0xff] }
  0xb5   : > { %v5601_v20 = vpop.f32.mrf.mxu2  ;;  %v2068_v55 = vunpack.c.l.b16 %v1846_v15  ;;  %v1161_v26 = vunpack.c.l.b16 %v1088_v12  ;;  %v1017_v15 = vld [vmem:[%s5255_s8 + $0x50] sm:$0xe] }
  0xb6   : > { %v2093_v32 = vpack.c.b16 %v2067_v11, %v2066_v39  ;;  %v1851_v45 = vrot.slane %v1850_v34, 4  ;;  %v4461_v34 = vld [vmem:[%s5255_s8 + $0x68] sm:$0xf] }
  0xb8   : > { %v1856_v52 = vsel %vm5279_vm3, %v1851_v45, %v1855_v10  ;;  %v1887_v45 = vshll.u32 %v4461_v34, 16 }
  0xb9   : > { %v5608_v3 = vpop.f32.mrf.mxu0  ;;  %4310 = vmatmul.msk.bf16.gmra.mxu2 %vm652_vm2, %v1183_v41  ;;  %v5612_v38 = vpop.f32.mrf.mxu3  ;;  %v1083_v41 = vrot.slane %v1081_v16, 4  ;;  %v1090_v16 = vrot.slane %v5435_v25, 5  ;;  %v1873_v25 = vshll.u32 %v4459_v9, 16  ;;  %v4462_v9 = vld [vmem:[%s5255_s8 + $0x6c] sm:$0xf] }
  0xbb   : > { %v1091_v13 = vsel %vm5503_vm6, %v1089_v1, %v1090_v16  ;;  %v1875_v61 = vrot.slane %v1873_v25, 5  ;;  %v4996_v1 = vld [vmem:[%s5255_s8 + $0x58] sm:$0xf] }
  0xbc   : > { %4428 = vmatmul.msk.bf16.gmra.mxu3 %vm652_vm2, %v4787_v33  ;;  %v1085_v33 = vsel %vm5503_vm6, %v1083_v41, %v1084_v23  ;;  %v1861_v41 = vrot.slane %v1860_v17, 4  ;;  %v1162_v27 = vunpack.c.l.b16 %v1091_v13  ;;  %v1097_v16 = vrot.slane %v4996_v1, 5 }
  0xbd   : > { %v5617_v47 = vpop.f32.mrf.mxu2  ;;  %v5619_v48 = vpop.f32.mrf.mxu1  ;;  %v1160_v43 = vunpack.c.l.b16 %v1085_v33  ;;  %v4460_v33 = vld [vmem:[%s5255_s8 + $0x64] sm:$0xf] }
  0xbe   : > { %v1881_v44 = vshll.u32 %v4460_v33, 16 }
  0xbf   : > { %v1185_v19 = vpack.c.b16 %v1160_v43, %v1159_v40  ;;  %v1186_v40 = vpack.c.b16 %v1162_v27, %v1161_v26  ;;  %v1878_v43 = vshrl.u32 %v4460_v33, 16  ;;  %v4772_v27 = vld [vmem:[%s5255_s8 + $0x50] sm:$0xff] }
  0xc0   : > { %4490 = vmatmul.msk.bf16.gmra.mxu0 %vm652_vm2, %v2092_v46  ;;  %v4458_v46 = vld [vmem:[%s5255_s8 + $0x5c] sm:$0xf] }
  0xc1   : > { %v5627_v51 = vpop.f32.mrf.mxu0  ;;  %v5629_v62 = vpop.f32.mrf.mxu3  ;;  %v1867_v53 = vshrl.u32 %v4458_v46, 16 }
  0xc3   : > { %v1869_v4 = vrot.slane %v1867_v53, 4 }
  0xc4   : > { %4281 = vmatmul.msk.bf16.gmra.mxu1 %vm652_vm2, %v4769_v22  ;;  %v1863_v22 = vshll.u32 %v4458_v46, 16 }
  0xc5   : > { %v5636_v59 = vpop.f32.mrf.mxu1 }
  0xc6   : > { %v5640_v28 = vpop.f32.mrf.mxu2  ;;  %v1865_v6 = vrot.slane %v1863_v22, 5  ;;  %v1891_v22 = vshrl.u32 %v4461_v34, 16  ;;  %v4463_v34 = vld [vmem:[%s5255_s8 + $0x70] sm:$0xf] }
  0xc8   : > { %v1870_v21 = vor.u32 %v1869_v4, %v1865_v6  ;;  %v1866_v36 = vsel %vm5279_vm3, %v1861_v41, %v1865_v6  ;;  %v4296_v6 = vrot.slane %v1017_v15, 9  ;;  %v1893_v4 = vrot.slane %v1891_v22, 4  ;;  %v4997_v15 = vld [vmem:[%s5255_s8 + $0x5c] sm:$0xf] }
  0xc9   : > { %4311 = vmatmul.msk.bf16.gmra.mxu2 %vm652_vm2, %v1184_v58  ;;  %v2069_v58 = vunpack.c.l.b16 %v1856_v52  ;;  %v2070_v52 = vunpack.c.l.b16 %v1866_v36  ;;  %v1897_v41 = vshll.u32 %v4462_v9, 16 }
  0xca   : > { %v5646_v14 = vpop.f32.mrf.mxu0  ;;  %v1871_v29 = vrot.slane %v1870_v21, 4 }
  0xcb   : > { %v5649_v37 = vpop.f32.mrf.mxu3 }
  0xcc   : > { %4429 = vmatmul.msk.bf16.gmra.mxu3 %vm652_vm2, %v4788_v7  ;;  %v2094_v7 = vpack.c.b16 %v2069_v58, %v2068_v55  ;;  %v1876_v46 = vsel %vm5279_vm3, %v1871_v29, %v1875_v61  ;;  %v1883_v55 = vrot.slane %v1881_v44, 5  ;;  %v1889_v58 = vrot.slane %v1887_v45, 5 }
  0xcd   : > { %v2071_v53 = vunpack.c.l.b16 %v1876_v46  ;;  %v1899_v44 = vrot.slane %v1897_v41, 5  ;;  %v1901_v45 = vshrl.u32 %v4462_v9, 16  ;;  %v4791_v9 = vld [vmem:[%s5255_s8 + $0x64] sm:$0xff] }
  0xce   : > { %v5657_v30 = vpop.f32.mrf.mxu2  ;;  %v5659_v42 = vpop.f32.mrf.mxu1 }
  0xd0   : > { %4491 = vmatmul.msk.bf16.gmra.mxu0 %vm652_vm2, %v2093_v32 }
  0xd2   : > { %v5664_v49 = vpop.f32.mrf.mxu0 }
  0xd3   : > { %v5666_v50 = vpop.f32.mrf.mxu3 }
  0xd4   : > { %4282 = vmatmul.msk.bf16.gmra.mxu1 %vm652_vm2, %v4770_v2 }
  0xd6   : > { %v5674_v57 = vpop.f32.mrf.mxu1 }
  0xd9   : > { %4312 = vmatmul.msk.bf16.gmra.mxu2 %vm652_vm2, %v1185_v19  ;;  %v5678_v60 = vpop.f32.mrf.mxu2  ;;  %v1094_v19 = vrot.slane %v4995_v56, 5  ;;  %v1907_v56 = vshll.u32 %v4463_v34, 16 }
  0xdb   : > { %v1096_v0 = vrot.slane %v1094_v19, 4  ;;  %v1095_v21 = vsel %vm5503_vm6, %v4296_v6, %v1094_v19  ;;  %v1911_v19 = vshrl.u32 %v4463_v34, 16  ;;  %v1909_v1 = vrot.slane %v1907_v56, 5 }
  0xdc   : > { %v5682_v39 = vpop.f32.mrf.mxu0  ;;  %4430 = vmatmul.msk.bf16.gmra.mxu3 %vm652_vm2, %v4789_v54  ;;  %v1880_v54 = vrot.slane %v1878_v43, 4  ;;  %v1163_v61 = vunpack.c.l.b16 %v1095_v21 }
  0xdd   : > { %v1098_v25 = vsel %vm5503_vm6, %v1096_v0, %v1097_v16 }
  0xde   : > { %v5685_v11 = vpop.f32.mrf.mxu3  ;;  %v1884_v12 = vor.u32 %v1883_v55, %v1880_v54  ;;  %v1164_v33 = vunpack.c.l.b16 %v1098_v25  ;;  %v1903_v54 = vrot.slane %v1901_v45, 4  ;;  %v4998_v55 = vld [vmem:[%s5255_s8 + $0x60] sm:$0x1]  ;;  %v1099_v25 = vrot.slane %v1097_v16, 4 }
  0xdf   : > { %v1103_v6 = vrot.slane %v4998_v55, 5 }
  0xe0   : > { %4492 = vmatmul.msk.bf16.gmra.mxu0 %vm652_vm2, %v2094_v7  ;;  %v2095_v7 = vpack.c.b16 %v2071_v53, %v2070_v52  ;;  %v1187_v22 = vpack.c.b16 %v1164_v33, %v1163_v61  ;;  %v1100_v52 = vrot.slane %v4997_v15, 5 }
  0xe1   : > { %v5693_v23 = vpop.f32.mrf.mxu1  ;;  %v5695_v32 = vpop.f32.mrf.mxu2 }
  0xe4   : > { %4283 = vmatmul.msk.bf16.gmra.mxu1 %vm652_vm2, %v4771_v18  ;;  %v5702_v2 = vpop.f32.mrf.mxu0  ;;  %v1894_v18 = vor.u32 %v1893_v4, %v1889_v58  ;;  %v1913_v4 = vrot.slane %v1911_v19, 4 }
  0xe6   : > { %v5704_v10 = vpop.f32.mrf.mxu3  ;;  %v1895_v43 = vrot.slane %v1894_v18, 4  ;;  %v1102_v18 = vrot.slane %v1100_v52, 4  ;;  %v1914_v61 = vor.u32 %v1913_v4, %v1909_v1 }
  0xe8   : > { %v1900_v53 = vsel %vm5279_vm3, %v1895_v43, %v1899_v44  ;;  %v1101_v43 = vsel %vm5503_vm6, %v1099_v25, %v1100_v52  ;;  %v1104_v16 = vsel %vm5503_vm6, %v1102_v18, %v1103_v6  ;;  %v1915_v15 = vrot.slane %v1914_v61, 4  ;;  %v4466_v52 = vld [vmem:[%s5255_s8 + $0x7c] sm:$0xf] }
  0xe9   : > { %4313 = vmatmul.msk.bf16.gmra.mxu2 %vm652_vm2, %v1186_v40  ;;  %v5712_v8 = vpop.f32.mrf.mxu1  ;;  %v1885_v40 = vrot.slane %v1884_v12, 4  ;;  %v2073_v12 = vunpack.c.l.b16 %v1900_v53 }
  0xec   : > { %v5716_v17 = vpop.f32.mrf.mxu2  ;;  %4431 = vmatmul.msk.bf16.gmra.mxu3 %vm652_vm2, %v4790_v5 }
  0xed   : > { %v5719_v13 = vpop.f32.mrf.mxu0 }
  0xef   : > { %v5725_v26 = vpop.f32.mrf.mxu3 }
  0xf0   : > { %4493 = vmatmul.msk.bf16.gmra.mxu0 %vm652_vm2, %v2095_v7 }
  0xf1   : > { %v933_v29 = vpop.f32.mrf.mxu1 }
  0xf2   : > { %v934_v36 = vadd.f32 %v933_v29, %v5608_v3  ;;  %v1890_v3 = vsel %vm5279_vm3, %v1885_v40, %v1889_v58  ;;  %v4464_v58 = vld [vmem:[%s5255_s8 + $0x74] sm:$0x1] }
  0xf3   : > { %v2072_v7 = vunpack.c.l.b16 %v1890_v3  ;;  %v1917_v33 = vshll.u32 %v4464_v58, 16  ;;  %v1931_v58 = vshll.u32 %v4466_v52, 16 }
  0xf4   : > { %v5731_v46 = vpop.f32.mrf.mxu2  ;;  %4284 = vmatmul.msk.bf16.gmra.mxu1 %vm652_vm2, %v4772_v27  ;;  %v1904_v27 = vor.u32 %v1903_v54, %v1899_v44  ;;  %v1165_v44 = vunpack.c.l.b16 %v1101_v43 }
  0xf5   : > { %v5735_v5 = vpop.f32.mrf.mxu0  ;;  %v2096_v34 = vpack.c.b16 %v2073_v12, %v2072_v7  ;;  %v1919_v3 = vrot.slane %v1917_v33, 5  ;;  %v1018_v33 = vld [vmem:[%s5255_s8 + $0x64] sm:$0xe] }
  0xf6   : > { %v1905_v56 = vrot.slane %v1904_v27, 4 }
  0xf7   : > { %v5742_v0 = vpop.f32.mrf.mxu3  ;;  %v1920_v12 = vsel %vm5279_vm3, %v1915_v15, %v1919_v3  ;;  %v5000_v3 = vld [vmem:[%s5255_s8 + $0x6c] sm:$0xf] }
  0xf8   : > { %v1910_v7 = vsel %vm5279_vm3, %v1905_v56, %v1909_v1  ;;  %v2075_v43 = vunpack.c.l.b16 %v1920_v12 }
  0xf9   : > { %4314 = vmatmul.msk.bf16.gmra.mxu2 %vm652_vm2, %v1187_v22  ;;  %v935_v21 = vpop.f32.mrf.mxu1  ;;  %v1166_v22 = vunpack.c.l.b16 %v1104_v16 }
  0xfa   : > { %v936_v41 = vadd.f32 %v935_v21, %v5627_v51  ;;  %v4773_v51 = vld [vmem:[%s5255_s8 + $0x58] sm:$0xff] }
  0xfc   : > { %v1258_v29 = vpop.f32.mrf.mxu2  ;;  %4432 = vmatmul.msk.bf16.gmra.mxu3 %vm652_vm2, %v4791_v9  ;;  %v1188_v9 = vpack.c.b16 %v1166_v22, %v1165_v44  ;;  %v4297_v22 = vrot.slane %v1018_v33, 9 }
  0xfd   : > { %v1338_v40 = vadd.f32 %v1258_v29, %v934_v36  ;;  %v2167_v45 = vpop.f32.mrf.mxu0  ;;  %v4465_v36 = vld [vmem:[%s5255_s8 + $0x78] sm:$0xf]  ;;  %v4999_v29 = vld [vmem:[%s5255_s8 + $0x68] sm:$0xf] }
  0xfe   : > { %v1922_v21 = vshrl.u32 %v4465_v36, 16  ;;  %v1925_v18 = vshll.u32 %v4465_v36, 16  ;;  %v1107_v61 = vrot.slane %v4999_v29, 5 }
  0xff   : > { %v1549_v19 = vpop.f32.mrf.mxu3 }
 0x100   : > { %4494 = vmatmul.msk.bf16.gmra.mxu0 %vm652_vm2, %v2096_v34  ;;  %v1629_v53 = vadd.f32 %v1549_v19, %v1338_v40  ;;  %v2074_v40 = vunpack.c.l.b16 %v1910_v7  ;;  %v1924_v16 = vrot.slane %v1922_v21, 4  ;;  %v1927_v19 = vrot.slane %v1925_v18, 5 }
 0x101   : > { %v938_v54 = vpop.f32.mrf.mxu1  ;;  %v1109_v15 = vrot.slane %v1107_v61, 4  ;;  %v1108_v21 = vsel %vm5503_vm6, %v4297_v22, %v1107_v61 }
 0x102   : > { %v939_v55 = vadd.f32 %v938_v54, %v5646_v14  ;;  %v5758_v4 = vadd.f32 %v2167_v45, %v1629_v53  ;;  %v1935_v14 = vshrl.u32 %v4466_v52, 16  ;;  %v4792_v45 = vld [vmem:[%s5255_s8 + $0x6c] sm:$0xff]  ;;  %v1110_v53 = vrot.slane %v5000_v3, 5  ;;  %v4467_v54 = vld [vmem:[%s5255_s8 + $0x80] sm:$0xf] }
 0x103   : > { %v1928_v7 = vor.u32 %v1927_v19, %v1924_v16  ;;  %v1941_v18 = vshll.u32 %v4467_v54, 16  ;;  %v1167_v33 = vunpack.c.l.b16 %v1108_v21 }
 0x104   : > { %v1260_v6 = vpop.f32.mrf.mxu2  ;;  %4285 = vmatmul.msk.bf16.gmra.mxu1 %vm652_vm2, %v4773_v51  ;;  %v1937_v51 = vrot.slane %v1935_v14, 4  ;;  %v4774_v14 = vld [vmem:[%s5255_s8 + $0x64] sm:$0xff] }
 0x105   : > { %v1339_v25 = vadd.f32 %v1260_v6, %v936_v41  ;;  %v2169_v27 = vpop.f32.mrf.mxu0  ;;  %v1933_v41 = vrot.slane %v1931_v58, 5  ;;  %v2097_v6 = vpack.c.b16 %v2075_v43, %v2074_v40  ;;  %v4468_v40 = vld [vmem:[%s5255_s8 + $0x84] sm:$0xf]  ;;  %v1943_v61 = vrot.slane %v1941_v18, 5 }
 0x106   : > { %v1951_v19 = vshll.u32 %v4468_v40, 16 }
 0x107   : > { %v1551_v34 = vpop.f32.mrf.mxu3 }
 0x108   : > { %v1630_v1 = vadd.f32 %v1551_v34, %v1339_v25  ;;  %v1938_v25 = vor.u32 %v1937_v51, %v1933_v41  ;;  %v1955_v51 = vshrl.u32 %v4468_v40, 16 }
 0x109   : > { %4315 = vmatmul.msk.bf16.gmra.mxu2 %vm652_vm2, %v1188_v9  ;;  %v940_v56 = vpop.f32.mrf.mxu1 }
 0x10a   : > { %v941_v44 = vadd.f32 %v940_v56, %v5664_v49  ;;  %v5772_v52 = vadd.f32 %v2169_v27, %v1630_v1  ;;  %v1111_v49 = vsel %vm5503_vm6, %v1109_v15, %v1110_v53  ;;  %v1939_v16 = vrot.slane %v1938_v25, 4 }
 0x10b   : > { %v1168_v34 = vunpack.c.l.b16 %v1111_v49  ;;  %v1945_v1 = vshrl.u32 %v4467_v54, 16  ;;  %v1953_v25 = vrot.slane %v1951_v19, 5  ;;  %v1957_v18 = vrot.slane %v1955_v51, 4 }
 0x10c   : > { %v1263_v36 = vpop.f32.mrf.mxu2  ;;  %4433 = vmatmul.msk.bf16.gmra.mxu3 %vm652_vm2, %v4792_v45  ;;  %v1944_v54 = vsel %vm5279_vm3, %v1939_v16, %v1943_v61 }
 0x10d   : > { %v1340_v9 = vadd.f32 %v1263_v36, %v939_v55  ;;  %v2172_v12 = vpop.f32.mrf.mxu0  ;;  %v1929_v55 = vrot.slane %v1928_v7, 4  ;;  %v1189_v15 = vpack.c.b16 %v1168_v34, %v1167_v33  ;;  %v5001_v36 = vld [vmem:[%s5255_s8 + $0x70] sm:$0xf]  ;;  %v5002_v7 = vld [vmem:[%s5255_s8 + $0x74] sm:$0x1]  ;;  %v1958_v16 = vor.u32 %v1957_v18, %v1953_v25 }
 0x10e   : > { %v4469_v33 = vld [vmem:[%s5255_s8 + $0x88] sm:$0x1] }
 0x10f   : > { %v1554_v58 = vpop.f32.mrf.mxu3  ;;  %v1934_v3 = vsel %vm5279_vm3, %v1929_v55, %v1933_v41 }
 0x110   : > { %4495 = vmatmul.msk.bf16.gmra.mxu0 %vm652_vm2, %v2097_v6  ;;  %v1631_v27 = vadd.f32 %v1554_v58, %v1340_v9  ;;  %v1113_v6 = vrot.slane %v5001_v36, 5  ;;  %v1947_v9 = vrot.slane %v1945_v1, 4  ;;  %v2076_v49 = vunpack.c.l.b16 %v1934_v3  ;;  %v4793_v58 = vld [vmem:[%s5255_s8 + $0x78] sm:$0xff]  ;;  %v4775_v3 = vld [vmem:[%s5255_s8 + $0x6c] sm:$0xff] }
 0x111   : > { %v943_v29 = vpop.f32.mrf.mxu1  ;;  %v1961_v1 = vshll.u32 %v4469_v33, 16 }
 0x112   : > { %v944_v43 = vadd.f32 %v943_v29, %v5682_v39  ;;  %v5783_v45 = vadd.f32 %v2172_v12, %v1631_v27  ;;  %v1116_v12 = vrot.slane %v5002_v7, 5  ;;  %v1112_v27 = vrot.slane %v1110_v53, 4 }
 0x113   : > { %v1115_v29 = vrot.slane %v1113_v6, 4  ;;  %v1948_v55 = vor.u32 %v1947_v9, %v1943_v61  ;;  %v1963_v9 = vrot.slane %v1961_v1, 5  ;;  %v1019_v1 = vld [vmem:[%s5255_s8 + $0x78] sm:$0xe] }
 0x114   : > { %v1265_v56 = vpop.f32.mrf.mxu2  ;;  %4286 = vmatmul.msk.bf16.gmra.mxu1 %vm652_vm2, %v4774_v14  ;;  %v2077_v14 = vunpack.c.l.b16 %v1944_v54  ;;  %v1114_v53 = vsel %vm5503_vm6, %v1112_v27, %v1113_v6  ;;  %v4471_v6 = vld [vmem:[%s5255_s8 + $0x90] sm:$0xf] }
 0x115   : > { %v1341_v22 = vadd.f32 %v1265_v56, %v941_v44  ;;  %v2174_v39 = vpop.f32.mrf.mxu0  ;;  %v1169_v36 = vunpack.c.l.b16 %v1114_v53  ;;  %v1975_v33 = vshll.u32 %v4471_v6, 16 }
 0x116   : > { %v2098_v19 = vpack.c.b16 %v2077_v14, %v2076_v49 }
 0x117   : > { %v1556_v21 = vpop.f32.mrf.mxu3 }
 0x118   : > { %v1632_v44 = vadd.f32 %v1556_v21, %v1341_v22  ;;  %v1117_v22 = vsel %vm5503_vm6, %v1115_v29, %v1116_v12 }
 0x119   : > { %4316 = vmatmul.msk.bf16.gmra.mxu2 %vm652_vm2, %v1189_v15  ;;  %v945_v41 = vpop.f32.mrf.mxu1  ;;  %v1170_v54 = vunpack.c.l.b16 %v1117_v22 }
 0x11a   : > { %v946_v34 = vadd.f32 %v945_v41, %v5702_v2  ;;  %v5796_v56 = vadd.f32 %v2174_v39, %v1632_v44  ;;  %v1949_v2 = vrot.slane %v1948_v55, 4  ;;  %v1959_v39 = vrot.slane %v1958_v16, 4 }
 0x11b   : > { %v1190_v44 = vpack.c.b16 %v1170_v54, %v1169_v36  ;;  %v4298_v54 = vrot.slane %v1019_v1, 9 }
 0x11c   : > { %v1268_v40 = vpop.f32.mrf.mxu2  ;;  %4434 = vmatmul.msk.bf16.gmra.mxu3 %vm652_vm2, %v4793_v58  ;;  %v1954_v58 = vsel %vm5279_vm3, %v1949_v2, %v1953_v25  ;;  %v1964_v14 = vsel %vm5279_vm3, %v1959_v39, %v1963_v9  ;;  %v5004_v9 = vld [vmem:[%s5255_s8 + $0x80] sm:$0xf] }
 0x11d   : > { %v1342_v51 = vadd.f32 %v1268_v40, %v944_v43  ;;  %v2177_v15 = vpop.f32.mrf.mxu0  ;;  %v4470_v43 = vld [vmem:[%s5255_s8 + $0x8c] sm:$0xf]  ;;  %v5003_v40 = vld [vmem:[%s5255_s8 + $0x7c] sm:$0xf]  ;;  %v2079_v53 = vunpack.c.l.b16 %v1964_v14 }
 0x11e   : > { %v1966_v41 = vshrl.u32 %v4470_v43, 16  ;;  %v1969_v29 = vshll.u32 %v4470_v43, 16  ;;  %v1120_v16 = vrot.slane %v5003_v40, 5 }
 0x11f   : > { %v1559_v61 = vpop.f32.mrf.mxu3 }
 0x120   : > { %4496 = vmatmul.msk.bf16.gmra.mxu0 %vm652_vm2, %v2098_v19  ;;  %v1633_v7 = vadd.f32 %v1559_v61, %v1342_v51  ;;  %v2078_v51 = vunpack.c.l.b16 %v1954_v58  ;;  %v1968_v22 = vrot.slane %v1966_v41, 4  ;;  %v1971_v61 = vrot.slane %v1969_v29, 5 }
 0x121   : > { %v948_v21 = vpop.f32.mrf.mxu1  ;;  %v1122_v39 = vrot.slane %v1120_v16, 4  ;;  %v1121_v41 = vsel %vm5503_vm6, %v4298_v54, %v1120_v16 }
 0x122   : > { %v949_v49 = vadd.f32 %v948_v21, %v5719_v13  ;;  %v5808_v18 = vadd.f32 %v2177_v15, %v1633_v7  ;;  %v1979_v13 = vshrl.u32 %v4471_v6, 16  ;;  %v4794_v15 = vld [vmem:[%s5255_s8 + $0x80] sm:$0xff]  ;;  %v1123_v7 = vrot.slane %v5004_v9, 5  ;;  %v4472_v21 = vld [vmem:[%s5255_s8 + $0x94] sm:$0xf] }
 0x123   : > { %v1972_v58 = vor.u32 %v1971_v61, %v1968_v22  ;;  %v1985_v29 = vshll.u32 %v4472_v21, 16  ;;  %v1171_v1 = vunpack.c.l.b16 %v1121_v41  ;;  %v1989_v16 = vshrl.u32 %v4472_v21, 16  ;;  %v5005_v9 = vld [vmem:[%s5255_s8 + $0x84] sm:$0xf] }
 0x124   : > { %v1270_v12 = vpop.f32.mrf.mxu2  ;;  %4287 = vmatmul.msk.bf16.gmra.mxu1 %vm652_vm2, %v4775_v3  ;;  %v1981_v3 = vrot.slane %v1979_v13, 4  ;;  %v4776_v13 = vld [vmem:[%s5255_s8 + $0x78] sm:$0xff] }
 0x125   : > { %v1343_v27 = vadd.f32 %v1270_v12, %v946_v34  ;;  %v2179_v55 = vpop.f32.mrf.mxu0  ;;  %v1977_v34 = vrot.slane %v1975_v33, 5  ;;  %v2099_v12 = vpack.c.b16 %v2079_v53, %v2078_v51  ;;  %v4473_v51 = vld [vmem:[%s5255_s8 + $0x98] sm:$0xf]  ;;  %v1987_v22 = vrot.slane %v1985_v29, 5 }
 0x126   : > { %v1999_v61 = vshrl.u32 %v4473_v51, 16 }
 0x127   : > { %v1561_v19 = vpop.f32.mrf.mxu3 }
 0x128   : > { %v1634_v25 = vadd.f32 %v1561_v19, %v1343_v27  ;;  %v1982_v27 = vor.u32 %v1981_v3, %v1977_v34  ;;  %v2001_v29 = vrot.slane %v1999_v61, 4 }
 0x129   : > { %4317 = vmatmul.msk.bf16.gmra.mxu2 %vm652_vm2, %v1190_v44  ;;  %v950_v2 = vpop.f32.mrf.mxu1 }
 0x12a   : > { %v951_v36 = vadd.f32 %v950_v2, %v5735_v5  ;;  %v5822_v6 = vadd.f32 %v2179_v55, %v1634_v25  ;;  %v1124_v5 = vsel %vm5503_vm6, %v1122_v39, %v1123_v7  ;;  %v1983_v53 = vrot.slane %v1982_v27, 4 }
 0x12b   : > { %v1172_v19 = vunpack.c.l.b16 %v1124_v5  ;;  %v1995_v2 = vshll.u32 %v4473_v51, 16 }
 0x12c   : > { %v1273_v43 = vpop.f32.mrf.mxu2  ;;  %4435 = vmatmul.msk.bf16.gmra.mxu3 %vm652_vm2, %v4794_v15  ;;  %v1988_v21 = vsel %vm5279_vm3, %v1983_v53, %v1987_v22 }
 0x12d   : > { %v1344_v44 = vadd.f32 %v1273_v43, %v949_v49  ;;  %v2182_v14 = vpop.f32.mrf.mxu0  ;;  %v1973_v49 = vrot.slane %v1972_v58, 4  ;;  %v1191_v54 = vpack.c.b16 %v1172_v19, %v1171_v1  ;;  %v1126_v43 = vrot.slane %v5005_v9, 5  ;;  %v5006_v58 = vld [vmem:[%s5255_s8 + $0x88] sm:$0x1]  ;;  %v4474_v19 = vld [vmem:[%s5255_s8 + $0x9c] sm:$0x1] }
 0x12e   : > { %v1997_v27 = vrot.slane %v1995_v2, 5 }
 0x12f   : > { %v1564_v33 = vpop.f32.mrf.mxu3  ;;  %v1978_v39 = vsel %vm5279_vm3, %v1973_v49, %v1977_v34  ;;  %v1128_v1 = vrot.slane %v1126_v43, 4 }
 0x130   : > { %4497 = vmatmul.msk.bf16.gmra.mxu0 %vm652_vm2, %v2099_v12  ;;  %v1635_v55 = vadd.f32 %v1564_v33, %v1344_v44  ;;  %v1991_v44 = vrot.slane %v1989_v16, 4  ;;  %v2080_v5 = vunpack.c.l.b16 %v1978_v39  ;;  %v4795_v33 = vld [vmem:[%s5255_s8 + $0x8c] sm:$0xff]  ;;  %v2002_v16 = vor.u32 %v2001_v29, %v1997_v27  ;;  %v4476_v29 = vld [vmem:[%s5255_s8 + $0xa4] sm:$0xf] }
 0x131   : > { %v953_v40 = vpop.f32.mrf.mxu1 }
 0x132   : > { %v5832_v25 = vadd.f32 %v2182_v14, %v1635_v55  ;;  %v1129_v14 = vrot.slane %v5006_v58, 5  ;;  %v1125_v55 = vrot.slane %v1123_v7, 4  ;;  %v954_v49 = vadd.f32 %v953_v40, %v5587_v63 }
 0x133   : > { %v1992_v51 = vor.u32 %v1991_v44, %v1987_v22  ;;  %v4777_v22 = vld [vmem:[%s5255_s8 + $0x80] sm:$0xff] }
 0x134   : > { %v1275_v15 = vpop.f32.mrf.mxu2  ;;  %4288 = vmatmul.msk.bf16.gmra.mxu1 %vm652_vm2, %v4776_v13  ;;  %v2081_v13 = vunpack.c.l.b16 %v1988_v21  ;;  %v1127_v7 = vsel %vm5503_vm6, %v1125_v55, %v1126_v43 }
 0x135   : > { %v1345_v3 = vadd.f32 %v1275_v15, %v951_v36  ;;  %v2184_v12 = vpop.f32.mrf.mxu0  ;;  %v2005_v15 = vshll.u32 %v4474_v19, 16  ;;  %v1993_v63 = vrot.slane %v1992_v51, 4  ;;  %v1173_v39 = vunpack.c.l.b16 %v1127_v7 }
 0x136   : > { %v2100_v2 = vpack.c.b16 %v2081_v13, %v2080_v5  ;;  %v4475_v5 = vld [vmem:[%s5255_s8 + $0xa0] sm:$0xf]  ;;  %v2019_v51 = vshll.u32 %v4476_v29, 16 }
 0x137   : > { %v1566_v41 = vpop.f32.mrf.mxu3  ;;  %v2007_v44 = vrot.slane %v2005_v15, 5  ;;  %v1998_v13 = vsel %vm5279_vm3, %v1993_v63, %v1997_v27  ;;  %v2010_v19 = vshrl.u32 %v4475_v5, 16  ;;  %v1020_v15 = vld [vmem:[%s5255_s8 + $0x8c] sm:$0xe]  ;;  %v4796_v27 = vld [vmem:[%s5255_s8 + $0x94] sm:$0xff] }
 0x138   : > { %v1636_v36 = vadd.f32 %v1566_v41, %v1345_v3  ;;  %v1130_v3 = vsel %vm5503_vm6, %v1128_v1, %v1129_v14 }
 0x139   : > { %4318 = vmatmul.msk.bf16.gmra.mxu2 %vm652_vm2, %v1191_v54  ;;  %v955_v34 = vpop.f32.mrf.mxu1  ;;  %v1174_v21 = vunpack.c.l.b16 %v1130_v3  ;;  %v2012_v63 = vrot.slane %v2010_v19, 4 }
 0x13a   : > { %v5845_v9 = vadd.f32 %v2184_v12, %v1636_v36  ;;  %v2003_v12 = vrot.slane %v2002_v16, 4  ;;  %v956_v43 = vadd.f32 %v955_v34, %v5598_v35  ;;  %v5007_v16 = vld [vmem:[%s5255_s8 + $0x90] sm:$0xf]  ;;  %v2023_v34 = vshrl.u32 %v4476_v29, 16  ;;  %v4477_v29 = vld [vmem:[%s5255_s8 + $0xa8] sm:$0xf] }
 0x13b   : > { %v1133_v35 = vrot.slane %v5007_v16, 5  ;;  %v4778_v16 = vld [vmem:[%s5255_s8 + $0x8c] sm:$0xff] }
 0x13c   : > { %v1278_v53 = vpop.f32.mrf.mxu2  ;;  %4436 = vmatmul.msk.bf16.gmra.mxu3 %vm652_vm2, %v4795_v33  ;;  %v1192_v33 = vpack.c.b16 %v1174_v21, %v1173_v39  ;;  %v2008_v55 = vsel %vm5279_vm3, %v2003_v12, %v2007_v44  ;;  %v4299_v39 = vrot.slane %v1020_v15, 9  ;;  %v5008_v12 = vld [vmem:[%s5255_s8 + $0x94] sm:$0xf] }
 0x13d   : > { %v1346_v61 = vadd.f32 %v1278_v53, %v954_v49  ;;  %v2187_v54 = vpop.f32.mrf.mxu0  ;;  %v2013_v49 = vshll.u32 %v4475_v5, 16  ;;  %v2083_v7 = vunpack.c.l.b16 %v2008_v55  ;;  %v1135_v21 = vrot.slane %v1133_v35, 4 }
 0x13e   : > { %v1136_v44 = vrot.slane %v5008_v12, 5  ;;  %v1134_v19 = vsel %vm5503_vm6, %v4299_v39, %v1133_v35  ;;  %v2033_v39 = vshrl.u32 %v4477_v29, 16 }
 0x13f   : > { %v1569_v40 = vpop.f32.mrf.mxu3  ;;  %v1175_v15 = vunpack.c.l.b16 %v1134_v19 }
 0x140   : > { %4498 = vmatmul.msk.bf16.gmra.mxu0 %vm652_vm2, %v2100_v2  ;;  %v1637_v58 = vadd.f32 %v1569_v40, %v1346_v61  ;;  %v2082_v61 = vunpack.c.l.b16 %v1998_v13  ;;  %v2015_v40 = vrot.slane %v2013_v49, 5  ;;  %v1137_v49 = vsel %vm5503_vm6, %v1135_v21, %v1136_v44 }
 0x141   : > { %v958_v41 = vpop.f32.mrf.mxu1 }
 0x142   : > { %v5857_v36 = vadd.f32 %v2187_v54, %v1637_v58  ;;  %v2025_v58 = vrot.slane %v2023_v34, 4  ;;  %v959_v5 = vadd.f32 %v958_v41, %v5619_v48  ;;  %v2016_v55 = vor.u32 %v2015_v40, %v2012_v63 }
 0x143   : > { %v2029_v48 = vshll.u32 %v4477_v29, 16  ;;  %v5011_v29 = vld [vmem:[%s5255_s8 + $0x98] sm:$0xf] }
 0x144   : > { %v1280_v14 = vpop.f32.mrf.mxu2  ;;  %4289 = vmatmul.msk.bf16.gmra.mxu1 %vm652_vm2, %v4777_v22  ;;  %v2021_v22 = vrot.slane %v2019_v51, 5 }
 0x145   : > { %v1347_v1 = vadd.f32 %v1280_v14, %v956_v43  ;;  %v2189_v53 = vpop.f32.mrf.mxu0  ;;  %v2031_v35 = vrot.slane %v2029_v48, 5  ;;  %v4502_v48 = vld [vmem:[%s5255_s8 + $0x14] sm:$0xe] }
 0x146   : > { %v2026_v51 = vor.u32 %v2025_v58, %v2021_v22 }
 0x147   : > { %v1571_v2 = vpop.f32.mrf.mxu3 }
 0x148   : > { %v1638_v3 = vadd.f32 %v1571_v2, %v1347_v1  ;;  %v1176_v2 = vunpack.c.l.b16 %v1137_v49  ;;  %v2027_v63 = vrot.slane %v2026_v51, 4  ;;  %v2035_v51 = vrot.slane %v2033_v39, 4 }
 0x149   : > { %4319 = vmatmul.msk.bf16.gmra.mxu2 %vm652_vm2, %v1192_v33  ;;  %v960_v54 = vpop.f32.mrf.mxu1  ;;  %v2101_v33 = vpack.c.b16 %v2083_v7, %v2082_v61  ;;  %v4478_v61 = vld [vmem:[%s5255_s8 + $0xac] sm:$0xf]  ;;  %v5009_v7 = vld [vmem:[%s5255_s8 + $0x18] sm:$0xf] }
 0x14a   : > { %v5871_v14 = vadd.f32 %v2189_v53, %v1638_v3  ;;  %v2329_v3 = vrot.slane %v5009_v7, 5  ;;  %v961_v40 = vadd.f32 %v960_v54, %v5636_v59  ;;  %v2039_v58 = vshll.u32 %v4478_v61, 16  ;;  %v4797_v7 = vld [vmem:[%s5255_s8 + $0xa0] sm:$0xff] }
 0x14b   : > { %v2032_v54 = vsel %vm5279_vm3, %v2027_v63, %v2031_v35  ;;  %v4479_v63 = vld [vmem:[%s5255_s8 + $0xb0] sm:$0x1] }
 0x14c   : > { %v1283_v43 = vpop.f32.mrf.mxu2  ;;  %4437 = vmatmul.msk.bf16.gmra.mxu3 %vm652_vm2, %v4796_v27  ;;  %v2017_v27 = vrot.slane %v2016_v55, 4  ;;  %v1193_v55 = vpack.c.b16 %v1176_v2, %v1175_v15  ;;  %v2331_v19 = vrot.slane %v2329_v3, 4  ;;  %v4510_v2 = vrot.slane %v4502_v48, 9 }
 0x14d   : > { %v1348_v13 = vadd.f32 %v1283_v43, %v959_v5  ;;  %v2192_v1 = vpop.f32.mrf.mxu0  ;;  %v2043_v5 = vshrl.u32 %v4478_v61, 16  ;;  %v5887_v43 = vld [vmem:[%s5255_s8 + $0x1c] sm:$0xf] }
 0x14e   : > { %v2022_v59 = vsel %vm5279_vm3, %v2017_v27, %v2021_v22  ;;  %v2085_v27 = vunpack.c.l.b16 %v2032_v54  ;;  %v2330_v39 = vsel %vm5503_vm6, %v4510_v2, %v2329_v3 }
 0x14f   : > { %v1574_v41 = vpop.f32.mrf.mxu3  ;;  %v2045_v15 = vrot.slane %v2043_v5, 4  ;;  %v2084_v22 = vunpack.c.l.b16 %v2022_v59 }
 0x150   : > { %4499 = vmatmul.msk.bf16.gmra.mxu0 %vm652_vm2, %v2101_v33  ;;  %v1639_v53 = vadd.f32 %v1574_v41, %v1348_v13 }
 0x151   : > { %v963_v34 = vpop.f32.mrf.mxu1  ;;  %v2102_v3 = vpack.c.b16 %v2085_v27, %v2084_v22 }
 0x152   : > { %v5883_v21 = vadd.f32 %v2192_v1, %v1639_v53  ;;  %v1139_v1 = vrot.slane %v5011_v29, 5  ;;  %v5896_v53 = vrot.slane %v2039_v58, 5  ;;  %v964_v5 = vadd.f32 %v963_v34, %v5659_v42 }
 0x154   : > { %6702 = vst [vmem:[#allocation5_spill] sm:$0xff] %v5883_v21  ;;  %v1285_v12 = vpop.f32.mrf.mxu2  ;;  %4290 = vmatmul.msk.bf16.gmra.mxu1 %vm652_vm2, %v4778_v16  ;;  %v1138_v16 = vrot.slane %v1136_v44, 4  ;;  %v1141_v29 = vrot.slane %v1139_v1, 4  ;;  %v6703_v44 = vrot.slane %v5887_v43, 5 }
 0x155   : > { %v1349_v13 = vadd.f32 %v1285_v12, %v961_v40  ;;  %v2194_v49 = vpop.f32.mrf.mxu0  ;;  %v5012_v12 = vld [vmem:[%s5255_s8 + $0x9c] sm:$0x1] }
 0x156   : > { %v1142_v33 = vrot.slane %v5012_v12, 5  ;;  %v2333_v58 = vsel %vm5503_vm6, %v2331_v19, %v6703_v44  ;;  %v1140_v48 = vsel %vm5503_vm6, %v1138_v16, %v1139_v1  ;;  %v2049_v12 = vshll.u32 %v4479_v63, 16  ;;  %v4658_v19 = vld [vmem:[%s5255_s8 + $0x28] sm:$0xf] }
 0x157   : > { %v1576_v41 = vpop.f32.mrf.mxu3  ;;  %v2435_v59 = vunpack.c.l.b16 %v2333_v58  ;;  %v2992_v22 = vshll.u32 %v4658_v19, 16 }
 0x158   : > { %v1640_v61 = vadd.f32 %v1576_v41, %v1349_v13  ;;  %v2036_v13 = vor.u32 %v2035_v51, %v2031_v35  ;;  %v2046_v41 = vor.u32 %v2045_v15, %v5896_v53  ;;  %v1143_v35 = vsel %vm5503_vm6, %v1141_v29, %v1142_v33  ;;  %v5921_v51 = vld [vmem:[%s5255_s8 + $0x2c] sm:$0xf]  ;;  %v4779_v15 = vld [vmem:[%s5255_s8 + $0x94] sm:$0xff] }
 0x159   : > { %4320 = vmatmul.msk.bf16.gmra.mxu2 %vm652_vm2, %v1193_v55  ;;  %v965_v40 = vpop.f32.mrf.mxu1  ;;  %v2434_v55 = vunpack.c.l.b16 %v2330_v39  ;;  %v1177_v39 = vunpack.c.l.b16 %v1140_v48  ;;  %v2051_v44 = vrot.slane %v2049_v12, 5  ;;  %v2998_v58 = vshll.u32 %v5921_v51, 16 }
 0x15a   : > { %v5916_v42 = vadd.f32 %v2194_v49, %v1640_v61  ;;  %v2037_v1 = vrot.slane %v2036_v13, 4  ;;  %v2047_v63 = vrot.slane %v2046_v41, 4  ;;  %v1178_v61 = vunpack.c.l.b16 %v1143_v35  ;;  %v5014_v35 = vld [vmem:[%s5255_s8 + $0x20] sm:$0xf] }
 0x15b   : > { %v5913_v21 = vpack.c.b16 %v2435_v59, %v2434_v55  ;;  %v3002_v33 = vshrl.u32 %v5921_v51, 16  ;;  %v966_v29 = vadd.f32 %v965_v40, %v5674_v57  ;;  %v2994_v48 = vrot.slane %v2992_v22, 5 }
 0x15c   : > { %v1288_v54 = vpop.f32.mrf.mxu2  ;;  %4438 = vmatmul.msk.bf16.gmra.mxu3 %vm652_vm2, %v4797_v7  ;;  %v2989_v7 = vshrl.u32 %v4658_v19, 16  ;;  %v2042_v55 = vsel %vm5279_vm3, %v2037_v1, %v5896_v53  ;;  %v2052_v59 = vsel %vm5279_vm3, %v2047_v63, %v2051_v44  ;;  %v1194_v12 = vpack.c.b16 %v1178_v61, %v1177_v39  ;;  %v4798_v61 = vld [vmem:[%s5255_s8 + $0xa8] sm:$0xff] }
 0x15d   : > { %v1350_v2 = vadd.f32 %v1288_v54, %v964_v5  ;;  %v2197_v34 = vpop.f32.mrf.mxu0  ;;  %v3000_v57 = vrot.slane %v2998_v58, 5  ;;  %v3004_v40 = vrot.slane %v3002_v33, 4  ;;  %v6704_v44 = vrot.slane %v5887_v43, 5 }
 0x15e   : > { %v2991_v54 = vrot.slane %v2989_v7, 4 }
 0x15f   : > { %v1579_v16 = vpop.f32.mrf.mxu3  ;;  %v2334_v7 = vrot.slane %v6704_v44, 4  ;;  %v3005_v33 = vor.u32 %v3004_v40, %v3000_v57  ;;  %v4720_v44 = vld [vmem:[%s5255_s8 + $0x28] sm:$0xe] }
 0x160   : > { %4500 = vmatmul.msk.bf16.gmra.mxu0 %vm652_vm2, %v2102_v3  ;;  %v1641_v27 = vadd.f32 %v1579_v16, %v1350_v2  ;;  %v5937_v3 = vld [vmem:[%s5255_s8 + $0x30] sm:$0xf]  ;;  %v5013_v2 = vld [vmem:[%s5255_s8 + $0x24] sm:$0x1]  ;;  %v2335_v16 = vrot.slane %v5014_v35, 5  ;;  %v2995_v1 = vor.u32 %v2994_v48, %v2991_v54 }
 0x161   : > { %v968_v49 = vpop.f32.mrf.mxu1  ;;  %v2338_v19 = vrot.slane %v5013_v2, 5  ;;  %v3008_v63 = vshll.u32 %v5937_v3, 16  ;;  %v5952_v35 = vld [vmem:[%s5255_s8 + $0x34] sm:$0xf]  ;;  %v3006_v40 = vrot.slane %v3005_v33, 4 }
 0x162   : > { %v5928_v5 = vadd.f32 %v2197_v34, %v1641_v27  ;;  %v2087_v27 = vunpack.c.l.b16 %v2052_v59  ;;  %v2337_v39 = vrot.slane %v2335_v16, 4  ;;  %v2996_v2 = vrot.slane %v2995_v1, 4 }
 0x164   : > { %v1290_v13 = vpop.f32.mrf.mxu2  ;;  %4291 = vmatmul.msk.bf16.gmra.mxu1 %vm652_vm2, %v4779_v15  ;;  %v2086_v15 = vunpack.c.l.b16 %v2042_v55  ;;  %v969_v55 = vadd.f32 %v968_v49, %v5693_v23  ;;  %v3616_v23 = vrot.slane %v5921_v51, 5  ;;  %v3012_v49 = vshrl.u32 %v5937_v3, 16 }
 0x165   : > { %v1351_v41 = vadd.f32 %v1290_v13, %v966_v29  ;;  %v2199_v34 = vpop.f32.mrf.mxu0  ;;  %v2336_v29 = vsel %vm5503_vm6, %v2334_v7, %v2335_v16  ;;  %v2339_v13 = vsel %vm5503_vm6, %v2337_v39, %v2338_v19  ;;  %v4728_v39 = vrot.slane %v4720_v44, 9 }
 0x166   : > { %v2436_v59 = vunpack.c.l.b16 %v2336_v29  ;;  %v2437_v43 = vunpack.c.l.b16 %v2339_v13  ;;  %v2103_v54 = vpack.c.b16 %v2087_v27, %v2086_v15  ;;  %v3018_v15 = vshll.u32 %v5952_v35, 16 }
 0x167   : > { %v1581_v53 = vpop.f32.mrf.mxu3  ;;  %v3022_v27 = vshrl.u32 %v5952_v35, 16  ;;  %v3014_v33 = vrot.slane %v3012_v49, 4 }
 0x168   : > { %v1642_v22 = vadd.f32 %v1581_v53, %v1351_v41  ;;  %v3010_v41 = vrot.slane %v3008_v63, 5  ;;  %v5955_v53 = vpack.c.b16 %v2437_v43, %v2436_v59  ;;  %v3020_v13 = vrot.slane %v3018_v15, 5 }
 0x169   : > { %4321 = vmatmul.msk.bf16.gmra.mxu2 %vm652_vm2, %v1194_v12  ;;  %v970_v58 = vpop.f32.mrf.mxu1 }
 0x16a   : > { %v5957_v16 = vadd.f32 %v2199_v34, %v1642_v22  ;;  %v3001_v34 = vsel %vm5279_vm3, %v2996_v2, %v3000_v57  ;;  %v3011_v51 = vsel %vm5279_vm3, %v3006_v40, %v3010_v41  ;;  %v3618_v22 = vrot.slane %v3616_v23, 4 }
 0x16b   : > { %v971_v29 = vadd.f32 %v970_v58, %v5712_v8  ;;  %v3343_v2 = vunpack.c.l.b16 %v3001_v34  ;;  %v3015_v58 = vor.u32 %v3014_v33, %v3010_v41 }
 0x16c   : > { %v1293_v48 = vpop.f32.mrf.mxu2  ;;  %4439 = vmatmul.msk.bf16.gmra.mxu3 %vm652_vm2, %v4798_v61  ;;  %v3619_v61 = vrot.slane %v5937_v3, 5  ;;  %v3617_v3 = vsel %vm5503_vm6, %v4728_v39, %v3616_v23 }
 0x16d   : > { %v1352_v12 = vadd.f32 %v1293_v48, %v969_v55  ;;  %v2202_v19 = vpop.f32.mrf.mxu0  ;;  %v3024_v55 = vrot.slane %v3022_v27, 4  ;;  %v4802_v48 = vld [vmem:[%s5255_s8 + $0x28] sm:$0xff]  ;;  %v3721_v27 = vunpack.c.l.b16 %v3617_v3  ;;  %v3016_v34 = vrot.slane %v3015_v58, 4 }
 0x16e   : > { %v3620_v8 = vsel %vm5503_vm6, %v3618_v22, %v3619_v61  ;;  %v3622_v22 = vrot.slane %v5952_v35, 5  ;;  %v3621_v35 = vrot.slane %v3619_v61, 4  ;;  %v4503_v61 = vld [vmem:[%s5255_s8 + $0x28] sm:$0xe] }
 0x16f   : > { %v1584_v1 = vpop.f32.mrf.mxu3  ;;  %v3025_v49 = vor.u32 %v3024_v55, %v3020_v13  ;;  %v4663_v55 = vld [vmem:[%s5255_s8 + $0x3c] sm:$0xf] }
 0x170   : > { %4501 = vmatmul.msk.bf16.gmra.mxu0 %vm652_vm2, %v2103_v54  ;;  %v1643_v63 = vadd.f32 %v1584_v1, %v1352_v12  ;;  %v4662_v54 = vld [vmem:[%s5255_s8 + $0x38] sm:$0x1]  ;;  %v3344_v12 = vunpack.c.l.b16 %v3011_v51  ;;  %v3722_v1 = vunpack.c.l.b16 %v3620_v8  ;;  %v3033_v8 = vshrl.u32 %v4663_v55, 16 }
 0x171   : > { %v973_v7 = vpop.f32.mrf.mxu1  ;;  %v3026_v23 = vrot.slane %v3025_v49, 4  ;;  %v3036_v58 = vshll.u32 %v4663_v55, 16 }
 0x172   : > { %v5971_v59 = vadd.f32 %v2202_v19, %v1643_v63  ;;  %v3028_v19 = vshll.u32 %v4662_v54, 16  ;;  %v974_v51 = vadd.f32 %v973_v7, %v5601_v20  ;;  %v3753_v33 = vpack.c.b16 %v3722_v1, %v3721_v27 }
 0x173   : > { %v3624_v7 = vrot.slane %v3622_v22, 4  ;;  %v3623_v1 = vsel %vm5503_vm6, %v3621_v35, %v3622_v22  ;;  %v5016_v22 = vld [vmem:[%s5255_s8 + $0x30] sm:$0xf] }
 0x174   : > { %v1295_v43 = vpop.f32.mrf.mxu2  ;;  %4524 = vmatmul.msk.bf16.vlgmr.msra.gmra.mxu1 %vm652_vm2, %v5913_v21  ;;  %v3375_v21 = vpack.c.b16 %v3344_v12, %v3343_v2  ;;  %v3030_v39 = vrot.slane %v3028_v19, 5  ;;  %v3021_v2 = vsel %vm5279_vm3, %v3016_v34, %v3020_v13  ;;  %v3625_v12 = vrot.slane %v4662_v54, 5 }
 0x175   : > { %v1353_v57 = vadd.f32 %v1295_v43, %v971_v29  ;;  %v2204_v40 = vpop.f32.mrf.mxu0  ;;  %v5987_v43 = vld [vmem:[%s5255_s8 + $0x40] sm:$0xf] }
 0x176   : > { %v3031_v20 = vsel %vm5279_vm3, %v3026_v23, %v3030_v39  ;;  %v3042_v49 = vshll.u32 %v5987_v43, 16  ;;  %v3046_v19 = vshrl.u32 %v5987_v43, 16  ;;  %v3626_v34 = vsel %vm5503_vm6, %v3624_v7, %v3625_v12  ;;  %v6014_v7 = vld [vmem:[%s5255_s8 + $0x44] sm:$0xf] }
 0x177   : > { %v1586_v44 = vpop.f32.mrf.mxu3  ;;  %v3346_v27 = vunpack.c.l.b16 %v3031_v20  ;;  %v3035_v39 = vrot.slane %v3033_v8, 4  ;;  %v2345_v20 = vrot.slane %v5016_v22, 5  ;;  %v3724_v12 = vunpack.c.l.b16 %v3626_v34 }
 0x178   : > { %v1644_v15 = vadd.f32 %v1586_v44, %v1353_v57 }
 0x179   : > { %4642 = vmatmul.msk.bf16.vlgmr.msra.gmra.mxu2 %vm652_vm2, %v4802_v48  ;;  %v975_v63 = vpop.f32.mrf.mxu1 }
 0x17a   : > { %v5989_v57 = vadd.f32 %v2204_v40, %v1644_v15  ;;  %v5015_v15 = vld [vmem:[%s5255_s8 + $0x2c] sm:$0xf]  ;;  %v976_v54 = vadd.f32 %v975_v63, %v5617_v47  ;;  %v4803_v47 = vld [vmem:[%s5255_s8 + $0x30] sm:$0xff]  ;;  %v4511_v63 = vrot.slane %v4503_v61, 9  ;;  %v3052_v61 = vshll.u32 %v6014_v7, 16 }
 0x17b   : > { %v2342_v13 = vrot.slane %v5015_v15, 5 }
 0x17c   : > { %v1298_v41 = vpop.f32.mrf.mxu2  ;;  %4704 = vmatmul.msk.bf16.vlgmr.msra.gmra.mxu3 %vm652_vm2, %v3375_v21  ;;  %v3345_v21 = vunpack.c.l.b16 %v3021_v2 }
 0x17d   : > { %v1354_v29 = vadd.f32 %v1298_v41, %v974_v51  ;;  %v2207_v48 = vpop.f32.mrf.mxu0  ;;  %v3038_v41 = vrot.slane %v3036_v58, 5  ;;  %v2344_v2 = vrot.slane %v2342_v13, 4 }
 0x17f   : > { %v1589_v3 = vpop.f32.mrf.mxu3  ;;  %v2346_v15 = vsel %vm5503_vm6, %v2344_v2, %v2345_v20  ;;  %v4721_v2 = vld [vmem:[%s5255_s8 + $0x3c] sm:$0xe] }
 0x180   : > { %4742 = vmatmul.msk.bf16.vlgmr.msra.gmra.mxu0 %vm652_vm2, %v3753_v33  ;;  %v1645_v40 = vadd.f32 %v1589_v3, %v1354_v29  ;;  %v6009_v33 = vrot.slane %v3042_v49, 5  ;;  %v3048_v29 = vrot.slane %v3046_v19, 4  ;;  %v2343_v19 = vsel %vm5503_vm6, %v4511_v63, %v2342_v13 }
 0x181   : > { %v978_v44 = vpop.f32.mrf.mxu1  ;;  %v2438_v34 = vunpack.c.l.b16 %v2343_v19 }
 0x182   : > { %v6005_v51 = vadd.f32 %v2207_v48, %v1645_v40  ;;  %v3723_v48 = vunpack.c.l.b16 %v3623_v1  ;;  %v3376_v40 = vpack.c.b16 %v3346_v27, %v3345_v21  ;;  %v3049_v8 = vor.u32 %v3048_v29, %v6009_v33  ;;  %v6025_v21 = vld [vmem:[%s5255_s8 + $0x48] sm:$0xf] }
 0x183   : > { %v3054_v29 = vrot.slane %v3052_v61, 5  ;;  %v3066_v22 = vshrl.u32 %v6025_v21, 16 }
 0x184   : > { %v1300_v23 = vpop.f32.mrf.mxu2  ;;  %4525 = vmatmul.msk.bf16.gmra.mxu1 %vm652_vm2, %v5955_v53  ;;  %v3039_v53 = vor.u32 %v3038_v41, %v3035_v39  ;;  %v3754_v1 = vpack.c.b16 %v3724_v12, %v3723_v48  ;;  %v3050_v41 = vrot.slane %v3049_v8, 4 }
 0x185   : > { %v1355_v55 = vadd.f32 %v1300_v23, %v976_v54  ;;  %v2209_v35 = vpop.f32.mrf.mxu0  ;;  %v979_v54 = vadd.f32 %v978_v44, %v5640_v28  ;;  %v2439_v23 = vunpack.c.l.b16 %v2346_v15  ;;  %v3056_v28 = vshrl.u32 %v6014_v7, 16 }
 0x186   : > { %v3040_v39 = vrot.slane %v3039_v53, 4  ;;  %v3062_v44 = vshll.u32 %v6025_v21, 16  ;;  %v3055_v8 = vsel %vm5279_vm3, %v3050_v41, %v3054_v29  ;;  %v3632_v15 = vrot.slane %v6014_v7, 5 }
 0x187   : > { %v1591_v3 = vpop.f32.mrf.mxu3  ;;  %v2468_v12 = vpack.c.b16 %v2439_v23, %v2438_v34  ;;  %v3058_v61 = vrot.slane %v3056_v28, 4  ;;  %v6045_v34 = vld [vmem:[%s5255_s8 + $0x4c] sm:$0x1]  ;;  %v2347_v41 = vrot.slane %v2345_v20, 4  ;;  %v3348_v7 = vunpack.c.l.b16 %v3055_v8 }
 0x188   : > { %v1646_v58 = vadd.f32 %v1591_v3, %v1355_v55  ;;  %v3629_v55 = vrot.slane %v5987_v43, 5  ;;  %v3045_v3 = vsel %vm5279_vm3, %v3040_v39, %v6009_v33 }
 0x189   : > { %4643 = vmatmul.msk.bf16.gmra.mxu2 %vm652_vm2, %v4803_v47  ;;  %v980_v49 = vpop.f32.mrf.mxu1 }
 0x18a   : > { %v6029_v47 = vadd.f32 %v2209_v35, %v1646_v58  ;;  %v4729_v58 = vrot.slane %v4721_v2, 9  ;;  %v3631_v19 = vrot.slane %v3629_v55, 4  ;;  %v981_v33 = vadd.f32 %v980_v49, %v5657_v30 }
 0x18b   : > { %v3059_v49 = vor.u32 %v3058_v61, %v3054_v29 }
 0x18c   : > { %v1303_v27 = vpop.f32.mrf.mxu2  ;;  %4705 = vmatmul.msk.bf16.gmra.mxu3 %vm652_vm2, %v3376_v40  ;;  %6705 = vst [vmem:[#allocation6_spill] sm:$0xff] %v6029_v47  ;;  %v5017_v40 = vld [vmem:[%s5255_s8 + $0x34] sm:$0xf]  ;;  %v3347_v47 = vunpack.c.l.b16 %v3045_v3  ;;  %v3630_v28 = vsel %vm5503_vm6, %v4729_v58, %v3629_v55  ;;  %v3633_v30 = vsel %vm5503_vm6, %v3631_v19, %v3632_v15 }
 0x18d   : > { %v1356_v13 = vadd.f32 %v1303_v27, %v979_v54  ;;  %v2212_v63 = vpop.f32.mrf.mxu0  ;;  %v2348_v43 = vrot.slane %v5017_v40, 5  ;;  %v3064_v54 = vrot.slane %v3062_v44, 5  ;;  %v3068_v27 = vrot.slane %v3066_v22, 4  ;;  %v4804_v40 = vld [vmem:[%s5255_s8 + $0x3c] sm:$0xff] }
 0x18e   : > { %v3072_v22 = vshll.u32 %v6045_v34, 16  ;;  %v3377_v55 = vpack.c.b16 %v3348_v7, %v3347_v47  ;;  %v3725_v8 = vunpack.c.l.b16 %v3630_v28  ;;  %v3726_v58 = vunpack.c.l.b16 %v3633_v30  ;;  %v6067_v47 = vld [vmem:[%s5255_s8 + $0x54] sm:$0xf] }
 0x18f   : > { %v1594_v48 = vpop.f32.mrf.mxu3  ;;  %v2350_v2 = vrot.slane %v2348_v43, 4  ;;  %v2349_v20 = vsel %vm5503_vm6, %v2347_v41, %v2348_v43  ;;  %v3060_v29 = vrot.slane %v3059_v49, 4  ;;  %v3635_v43 = vrot.slane %v6025_v21, 5 }
 0x190   : > { %4743 = vmatmul.msk.bf16.gmra.mxu0 %vm652_vm2, %v3754_v1  ;;  %v1647_v35 = vadd.f32 %v1594_v48, %v1356_v13  ;;  %v5018_v1 = vld [vmem:[%s5255_s8 + $0x38] sm:$0x1]  ;;  %v3634_v21 = vrot.slane %v3632_v15, 4  ;;  %v3638_v49 = vrot.slane %v6045_v34, 5  ;;  %v4504_v15 = vld [vmem:[%s5255_s8 + $0x3c] sm:$0xe] }
 0x191   : > { %v983_v53 = vpop.f32.mrf.mxu1  ;;  %v2351_v39 = vrot.slane %v5018_v1, 5  ;;  %v2440_v1 = vunpack.c.l.b16 %v2349_v20  ;;  %v3065_v28 = vsel %vm5279_vm3, %v3060_v29, %v3064_v54  ;;  %v3637_v30 = vrot.slane %v3635_v43, 4 }
 0x192   : > { %v6047_v23 = vadd.f32 %v2212_v63, %v1647_v35  ;;  %v3069_v63 = vor.u32 %v3068_v27, %v3064_v54  ;;  %v3074_v27 = vrot.slane %v3072_v22, 5  ;;  %v3090_v20 = vshrl.u32 %v6067_v47, 16 }
 0x193   : > { %v3636_v29 = vsel %vm5503_vm6, %v3634_v21, %v3635_v43  ;;  %v6094_v21 = vld [vmem:[%s5255_s8 + $0x58] sm:$0xf] }
 0x194   : > { %v1305_v13 = vpop.f32.mrf.mxu2  ;;  %4526 = vmatmul.msk.bf16.gmra.mxu1 %vm652_vm2, %v2468_v12  ;;  %v2352_v12 = vsel %vm5503_vm6, %v2350_v2, %v2351_v39  ;;  %v3070_v61 = vrot.slane %v3069_v63, 4  ;;  %v3755_v39 = vpack.c.b16 %v3726_v58, %v3725_v8  ;;  %v3349_v8 = vunpack.c.l.b16 %v3065_v28  ;;  %v5020_v28 = vld [vmem:[%s5255_s8 + $0x44] sm:$0xf] }
 0x195   : > { %v1357_v48 = vadd.f32 %v1305_v13, %v981_v33  ;;  %v2214_v44 = vpop.f32.mrf.mxu0  ;;  %v984_v33 = vadd.f32 %v983_v53, %v5678_v60  ;;  %v2441_v13 = vunpack.c.l.b16 %v2352_v12  ;;  %v2358_v43 = vrot.slane %v5020_v28, 5 }
 0x196   : > { %v3075_v60 = vsel %vm5279_vm3, %v3070_v61, %v3074_v27  ;;  %v3639_v61 = vsel %vm5503_vm6, %v3637_v30, %v3638_v49 }
 0x197   : > { %v1596_v35 = vpop.f32.mrf.mxu3  ;;  %v2469_v53 = vpack.c.b16 %v2441_v13, %v2440_v1  ;;  %v3350_v58 = vunpack.c.l.b16 %v3075_v60  ;;  %v3728_v30 = vunpack.c.l.b16 %v3639_v61 }
 0x198   : > { %v1648_v3 = vadd.f32 %v1596_v35, %v1357_v48  ;;  %v4668_v48 = vld [vmem:[%s5255_s8 + $0x50] sm:$0xf] }
 0x199   : > { %4644 = vmatmul.msk.bf16.gmra.mxu2 %vm652_vm2, %v4804_v40  ;;  %v985_v19 = vpop.f32.mrf.mxu1  ;;  %v3077_v22 = vshrl.u32 %v4668_v48, 16  ;;  %v3080_v35 = vshll.u32 %v4668_v48, 16  ;;  %v4805_v48 = vld [vmem:[%s5255_s8 + $0x44] sm:$0xff] }
 0x19a   : > { %v6069_v40 = vadd.f32 %v2214_v44, %v1648_v3  ;;  %v3086_v44 = vshll.u32 %v6067_v47, 16  ;;  %v5019_v3 = vld [vmem:[%s5255_s8 + $0x40] sm:$0xf]  ;;  %v986_v34 = vadd.f32 %v985_v19, %v5695_v32  ;;  %v4512_v32 = vrot.slane %v4504_v15, 9 }
 0x19b   : > { %v3079_v1 = vrot.slane %v3077_v22, 4  ;;  %v3082_v13 = vrot.slane %v3080_v35, 5 }
 0x19c   : > { %v1308_v41 = vpop.f32.mrf.mxu2  ;;  %4706 = vmatmul.msk.bf16.gmra.mxu3 %vm652_vm2, %v3377_v55  ;;  %v2355_v55 = vrot.slane %v5019_v3, 5  ;;  %v3096_v3 = vshll.u32 %v6094_v21, 16 }
 0x19d   : > { %v1358_v2 = vadd.f32 %v1308_v41, %v984_v33  ;;  %v2217_v7 = vpop.f32.mrf.mxu0  ;;  %v6089_v41 = vrot.slane %v3086_v44, 5 }
 0x19e   : > { %v2357_v19 = vrot.slane %v2355_v55, 4 }
 0x19f   : > { %v1599_v63 = vpop.f32.mrf.mxu3 }
 0x1a0   : > { %4744 = vmatmul.msk.bf16.gmra.mxu0 %vm652_vm2, %v3755_v39  ;;  %v1649_v12 = vadd.f32 %v1599_v63, %v1358_v2  ;;  %v3092_v39 = vrot.slane %v3090_v20, 4  ;;  %v3378_v63 = vpack.c.b16 %v3350_v58, %v3349_v8  ;;  %v2356_v20 = vsel %vm5503_vm6, %v4512_v32, %v2355_v55  ;;  %v6105_v8 = vld [vmem:[%s5255_s8 + $0x5c] sm:$0xf]  ;;  %v4722_v32 = vld [vmem:[%s5255_s8 + $0x50] sm:$0xe] }
 0x1a1   : > { %v988_v54 = vpop.f32.mrf.mxu1 }
 0x1a2   : > { %v6086_v27 = vadd.f32 %v2217_v7, %v1649_v12  ;;  %v3727_v7 = vunpack.c.l.b16 %v3636_v29  ;;  %v3093_v22 = vor.u32 %v3092_v39, %v6089_v41  ;;  %v2359_v12 = vsel %vm5503_vm6, %v2357_v19, %v2358_v43 }
 0x1a3   : > { %v989_v15 = vadd.f32 %v988_v54, %v5716_v17  ;;  %v2442_v29 = vunpack.c.l.b16 %v2356_v20  ;;  %v2443_v61 = vunpack.c.l.b16 %v2359_v12  ;;  %v3642_v39 = vrot.slane %v6067_v47, 5 }
 0x1a4   : > { %v1310_v33 = vpop.f32.mrf.mxu2  ;;  %4527 = vmatmul.msk.bf16.gmra.mxu1 %vm652_vm2, %v2469_v53  ;;  %v3083_v53 = vor.u32 %v3082_v13, %v3079_v1  ;;  %v3094_v1 = vrot.slane %v3093_v22, 4  ;;  %v3098_v13 = vrot.slane %v3096_v3, 5  ;;  %v3100_v17 = vshrl.u32 %v6094_v21, 16 }
 0x1a5   : > { %v1359_v2 = vadd.f32 %v1310_v33, %v986_v34  ;;  %v2219_v60 = vpop.f32.mrf.mxu0  ;;  %v3756_v34 = vpack.c.b16 %v3728_v30, %v3727_v7  ;;  %v3106_v54 = vshll.u32 %v6105_v8, 16  ;;  %v3110_v19 = vshrl.u32 %v6105_v8, 16 }
 0x1a6   : > { %v3084_v33 = vrot.slane %v3083_v53, 4  ;;  %v2470_v7 = vpack.c.b16 %v2443_v61, %v2442_v29  ;;  %v3099_v53 = vsel %vm5279_vm3, %v3094_v1, %v3098_v13  ;;  %v4730_v22 = vrot.slane %v4722_v32, 9 }
 0x1a7   : > { %v1601_v49 = vpop.f32.mrf.mxu3  ;;  %v3645_v20 = vrot.slane %v6094_v21, 5  ;;  %v3102_v12 = vrot.slane %v3100_v17, 4  ;;  %v3108_v3 = vrot.slane %v3106_v54, 5  ;;  %v2360_v1 = vrot.slane %v2358_v43, 4 }
 0x1a8   : > { %v1650_v35 = vadd.f32 %v1601_v49, %v1359_v2  ;;  %v3089_v30 = vsel %vm5279_vm3, %v3084_v33, %v6089_v41  ;;  %v5021_v49 = vld [vmem:[%s5255_s8 + $0x48] sm:$0xf]  ;;  %v3352_v21 = vunpack.c.l.b16 %v3099_v53  ;;  %v3643_v17 = vsel %vm5503_vm6, %v4730_v22, %v3642_v39 }
 0x1a9   : > { %4645 = vmatmul.msk.bf16.gmra.mxu2 %vm652_vm2, %v4805_v48  ;;  %v990_v44 = vpop.f32.mrf.mxu1  ;;  %v2361_v47 = vrot.slane %v5021_v49, 5  ;;  %v3351_v49 = vunpack.c.l.b16 %v3089_v30  ;;  %v3729_v53 = vunpack.c.l.b16 %v3643_v17 }
 0x1aa   : > { %v6109_v2 = vadd.f32 %v2219_v60, %v1650_v35  ;;  %v3644_v35 = vrot.slane %v3642_v39, 4  ;;  %v991_v41 = vadd.f32 %v990_v44, %v5731_v46  ;;  %v3103_v44 = vor.u32 %v3102_v12, %v3098_v13 }
 0x1ab   : > { %v2362_v43 = vsel %vm5503_vm6, %v2360_v1, %v2361_v47  ;;  %v3379_v39 = vpack.c.b16 %v3352_v21, %v3351_v49 }
 0x1ac   : > { %v1313_v58 = vpop.f32.mrf.mxu2  ;;  %4707 = vmatmul.msk.bf16.gmra.mxu3 %vm652_vm2, %v3378_v63  ;;  %v3646_v46 = vsel %vm5503_vm6, %v3644_v35, %v3645_v20  ;;  %v3104_v13 = vrot.slane %v3103_v44, 4 }
 0x1ad   : > { %v1360_v55 = vadd.f32 %v1313_v58, %v989_v15  ;;  %v2222_v48 = vpop.f32.mrf.mxu0  ;;  %v3112_v15 = vrot.slane %v3110_v19, 4  ;;  %v6125_v58 = vld [vmem:[%s5255_s8 + $0x60] sm:$0x1]  ;;  %v3730_v22 = vunpack.c.l.b16 %v3646_v46 }
 0x1ae   : > { %v3116_v19 = vshll.u32 %v6125_v58, 16  ;;  %v3109_v17 = vsel %vm5279_vm3, %v3104_v13, %v3108_v3  ;;  %v3651_v44 = vrot.slane %v6125_v58, 5 }
 0x1af   : > { %v1604_v28 = vpop.f32.mrf.mxu3 }
 0x1b0   : > { %4745 = vmatmul.msk.bf16.gmra.mxu0 %vm652_vm2, %v3756_v34  ;;  %v1651_v60 = vadd.f32 %v1604_v28, %v1360_v55  ;;  %v5022_v34 = vld [vmem:[%s5255_s8 + $0x4c] sm:$0x1]  ;;  %v2363_v55 = vrot.slane %v2361_v47, 4  ;;  %v4806_v28 = vld [vmem:[%s5255_s8 + $0x50] sm:$0xff]  ;;  %v3648_v47 = vrot.slane %v6105_v8, 5  ;;  %v3647_v8 = vrot.slane %v3645_v20, 4 }
 0x1b1   : > { %v993_v63 = vpop.f32.mrf.mxu1  ;;  %v2364_v61 = vrot.slane %v5022_v34, 5  ;;  %v2444_v34 = vunpack.c.l.b16 %v2362_v43  ;;  %v4505_v20 = vld [vmem:[%s5255_s8 + $0x50] sm:$0xe] }
 0x1b2   : > { %v6127_v29 = vadd.f32 %v2222_v48, %v1651_v60  ;;  %v3113_v48 = vor.u32 %v3112_v15, %v3108_v3  ;;  %v3118_v15 = vrot.slane %v3116_v19, 5  ;;  %v3650_v46 = vrot.slane %v3648_v47, 4 }
 0x1b3   : > { %v3649_v13 = vsel %vm5503_vm6, %v3647_v8, %v3648_v47  ;;  %v6174_v8 = vld [vmem:[%s5255_s8 + $0x6c] sm:$0xf] }
 0x1b4   : > { %v1315_v33 = vpop.f32.mrf.mxu2  ;;  %4528 = vmatmul.msk.bf16.gmra.mxu1 %vm652_vm2, %v2470_v7  ;;  %v2365_v7 = vsel %vm5503_vm6, %v2363_v55, %v2364_v61  ;;  %v3114_v12 = vrot.slane %v3113_v48, 4  ;;  %v3757_v61 = vpack.c.b16 %v3730_v22, %v3729_v53  ;;  %v3353_v53 = vunpack.c.l.b16 %v3109_v17  ;;  %v5024_v17 = vld [vmem:[%s5255_s8 + $0x58] sm:$0xf] }
 0x1b5   : > { %v1361_v32 = vadd.f32 %v1315_v33, %v991_v41  ;;  %v2224_v54 = vpop.f32.mrf.mxu0  ;;  %v994_v41 = vadd.f32 %v993_v63, %v5612_v38  ;;  %v2445_v33 = vunpack.c.l.b16 %v2365_v7  ;;  %v2371_v47 = vrot.slane %v5024_v17, 5 }
 0x1b6   : > { %v3119_v38 = vsel %vm5279_vm3, %v3114_v12, %v3118_v15  ;;  %v3652_v12 = vsel %vm5503_vm6, %v3650_v46, %v3651_v44 }
 0x1b7   : > { %v1606_v60 = vpop.f32.mrf.mxu3  ;;  %v2471_v63 = vpack.c.b16 %v2445_v33, %v2444_v34  ;;  %v3354_v22 = vunpack.c.l.b16 %v3119_v38  ;;  %v3732_v46 = vunpack.c.l.b16 %v3652_v12 }
 0x1b8   : > { %v1652_v30 = vadd.f32 %v1606_v60, %v1361_v32  ;;  %v4673_v32 = vld [vmem:[%s5255_s8 + $0x64] sm:$0xf] }
 0x1b9   : > { %4646 = vmatmul.msk.bf16.gmra.mxu2 %vm652_vm2, %v4806_v28  ;;  %v995_v35 = vpop.f32.mrf.mxu1  ;;  %v6147_v28 = vld [vmem:[%s5255_s8 + $0x68] sm:$0xf]  ;;  %v3121_v19 = vshrl.u32 %v4673_v32, 16  ;;  %v3124_v60 = vshll.u32 %v4673_v32, 16  ;;  %v4807_v32 = vld [vmem:[%s5255_s8 + $0x58] sm:$0xff] }
 0x1ba   : > { %v6149_v49 = vadd.f32 %v2224_v54, %v1652_v30  ;;  %v3130_v54 = vshll.u32 %v6147_v28, 16  ;;  %v3134_v43 = vshrl.u32 %v6147_v28, 16  ;;  %v5023_v30 = vld [vmem:[%s5255_s8 + $0x54] sm:$0xf]  ;;  %v996_v58 = vadd.f32 %v995_v35, %v5629_v62 }
 0x1bb   : > { %v3123_v34 = vrot.slane %v3121_v19, 4  ;;  %v3126_v33 = vrot.slane %v3124_v60, 5  ;;  %v4513_v62 = vrot.slane %v4505_v20, 9 }
 0x1bc   : > { %v1318_v1 = vpop.f32.mrf.mxu2  ;;  %4708 = vmatmul.msk.bf16.gmra.mxu3 %vm652_vm2, %v3379_v39  ;;  %v2368_v39 = vrot.slane %v5023_v30, 5  ;;  %v3140_v30 = vshll.u32 %v6174_v8, 16 }
 0x1bd   : > { %v1362_v55 = vadd.f32 %v1318_v1, %v994_v41  ;;  %v2227_v21 = vpop.f32.mrf.mxu0  ;;  %v6169_v1 = vrot.slane %v3130_v54, 5 }
 0x1be   : > { %v2370_v35 = vrot.slane %v2368_v39, 4 }
 0x1bf   : > { %v1609_v48 = vpop.f32.mrf.mxu3 }
 0x1c0   : > { %4746 = vmatmul.msk.bf16.gmra.mxu0 %vm652_vm2, %v3757_v61  ;;  %v1653_v7 = vadd.f32 %v1609_v48, %v1362_v55  ;;  %v3136_v61 = vrot.slane %v3134_v43, 4  ;;  %v3380_v48 = vpack.c.b16 %v3354_v22, %v3353_v53  ;;  %v2369_v43 = vsel %vm5503_vm6, %v4513_v62, %v2368_v39  ;;  %v6185_v53 = vld [vmem:[%s5255_s8 + $0x70] sm:$0xf]  ;;  %v4723_v62 = vld [vmem:[%s5255_s8 + $0x64] sm:$0xe] }
 0x1c1   : > { %v998_v3 = vpop.f32.mrf.mxu1 }
 0x1c2   : > { %v6166_v15 = vadd.f32 %v2227_v21, %v1653_v7  ;;  %v3731_v21 = vunpack.c.l.b16 %v3649_v13  ;;  %v3137_v19 = vor.u32 %v3136_v61, %v6169_v1  ;;  %v2372_v7 = vsel %vm5503_vm6, %v2370_v35, %v2371_v47 }
 0x1c3   : > { %v999_v20 = vadd.f32 %v998_v3, %v5649_v37  ;;  %v2446_v13 = vunpack.c.l.b16 %v2369_v43  ;;  %v2447_v12 = vunpack.c.l.b16 %v2372_v7  ;;  %v3655_v61 = vrot.slane %v6147_v28, 5 }
 0x1c4   : > { %v1320_v41 = vpop.f32.mrf.mxu2  ;;  %4529 = vmatmul.msk.bf16.gmra.mxu1 %vm652_vm2, %v2471_v63  ;;  %v3127_v63 = vor.u32 %v3126_v33, %v3123_v34  ;;  %v3138_v34 = vrot.slane %v3137_v19, 4  ;;  %v3142_v33 = vrot.slane %v3140_v30, 5  ;;  %v3144_v37 = vshrl.u32 %v6174_v8, 16 }
 0x1c5   : > { %v1363_v55 = vadd.f32 %v1320_v41, %v996_v58  ;;  %v2229_v38 = vpop.f32.mrf.mxu0  ;;  %v3758_v58 = vpack.c.b16 %v3732_v46, %v3731_v21  ;;  %v3150_v3 = vshll.u32 %v6185_v53, 16  ;;  %v3154_v35 = vshrl.u32 %v6185_v53, 16 }
 0x1c6   : > { %v3128_v41 = vrot.slane %v3127_v63, 4  ;;  %v2472_v21 = vpack.c.b16 %v2447_v12, %v2446_v13  ;;  %v3143_v63 = vsel %vm5279_vm3, %v3138_v34, %v3142_v33  ;;  %v4731_v19 = vrot.slane %v4723_v62, 9 }
 0x1c7   : > { %v1611_v44 = vpop.f32.mrf.mxu3  ;;  %v3658_v43 = vrot.slane %v6174_v8, 5  ;;  %v3146_v7 = vrot.slane %v3144_v37, 4  ;;  %v3152_v30 = vrot.slane %v3150_v3, 5  ;;  %v2373_v34 = vrot.slane %v2371_v47, 4 }
 0x1c8   : > { %v1654_v60 = vadd.f32 %v1611_v44, %v1363_v55  ;;  %v3133_v46 = vsel %vm5279_vm3, %v3128_v41, %v6169_v1  ;;  %v5025_v44 = vld [vmem:[%s5255_s8 + $0x5c] sm:$0xf]  ;;  %v3356_v8 = vunpack.c.l.b16 %v3143_v63  ;;  %v3656_v37 = vsel %vm5503_vm6, %v4731_v19, %v3655_v61 }
 0x1c9   : > { %4647 = vmatmul.msk.bf16.gmra.mxu2 %vm652_vm2, %v4807_v32  ;;  %v1000_v54 = vpop.f32.mrf.mxu1  ;;  %v2374_v28 = vrot.slane %v5025_v44, 5  ;;  %v3355_v44 = vunpack.c.l.b16 %v3133_v46  ;;  %v3733_v63 = vunpack.c.l.b16 %v3656_v37 }
 0x1ca   : > { %v6189_v55 = vadd.f32 %v2229_v38, %v1654_v60  ;;  %v3657_v60 = vrot.slane %v3655_v61, 4  ;;  %v1001_v1 = vadd.f32 %v1000_v54, %v5666_v50  ;;  %v3147_v54 = vor.u32 %v3146_v7, %v3142_v33 }
 0x1cb   : > { %v2375_v47 = vsel %vm5503_vm6, %v2373_v34, %v2374_v28  ;;  %v3381_v61 = vpack.c.b16 %v3356_v8, %v3355_v44 }
 0x1cc   : > { %v1323_v22 = vpop.f32.mrf.mxu2  ;;  %4709 = vmatmul.msk.bf16.gmra.mxu3 %vm652_vm2, %v3380_v48  ;;  %v3659_v50 = vsel %vm5503_vm6, %v3657_v60, %v3658_v43  ;;  %v3148_v33 = vrot.slane %v3147_v54, 4 }
 0x1cd   : > { %v1364_v39 = vadd.f32 %v1323_v22, %v999_v20  ;;  %v2232_v32 = vpop.f32.mrf.mxu0  ;;  %v3156_v20 = vrot.slane %v3154_v35, 4  ;;  %v6205_v22 = vld [vmem:[%s5255_s8 + $0x74] sm:$0x1]  ;;  %v3734_v19 = vunpack.c.l.b16 %v3659_v50 }
 0x1ce   : > { %v3160_v35 = vshll.u32 %v6205_v22, 16  ;;  %v3153_v37 = vsel %vm5279_vm3, %v3148_v33, %v3152_v30  ;;  %v3664_v54 = vrot.slane %v6205_v22, 5 }
 0x1cf   : > { %v1614_v17 = vpop.f32.mrf.mxu3 }
 0x1d0   : > { %4747 = vmatmul.msk.bf16.gmra.mxu0 %vm652_vm2, %v3758_v58  ;;  %v1655_v38 = vadd.f32 %v1614_v17, %v1364_v39  ;;  %v5026_v58 = vld [vmem:[%s5255_s8 + $0x60] sm:$0x1]  ;;  %v2376_v39 = vrot.slane %v2374_v28, 4  ;;  %v4808_v17 = vld [vmem:[%s5255_s8 + $0x64] sm:$0xff]  ;;  %v3661_v28 = vrot.slane %v6185_v53, 5  ;;  %v3660_v53 = vrot.slane %v3658_v43, 4 }
 0x1d1   : > { %v1003_v48 = vpop.f32.mrf.mxu1  ;;  %v2377_v12 = vrot.slane %v5026_v58, 5  ;;  %v2448_v58 = vunpack.c.l.b16 %v2375_v47  ;;  %v4506_v43 = vld [vmem:[%s5255_s8 + $0x64] sm:$0xe] }
 0x1d2   : > { %v6207_v13 = vadd.f32 %v2232_v32, %v1655_v38  ;;  %v3157_v32 = vor.u32 %v3156_v20, %v3152_v30  ;;  %v3162_v20 = vrot.slane %v3160_v35, 5  ;;  %v3663_v50 = vrot.slane %v3661_v28, 4 }
 0x1d3   : > { %v3662_v33 = vsel %vm5503_vm6, %v3660_v53, %v3661_v28 }
 0x1d4   : > { %v1325_v41 = vpop.f32.mrf.mxu2  ;;  %4530 = vmatmul.msk.bf16.gmra.mxu1 %vm652_vm2, %v2472_v21  ;;  %v2378_v21 = vsel %vm5503_vm6, %v2376_v39, %v2377_v12  ;;  %v3158_v7 = vrot.slane %v3157_v32, 4  ;;  %v3759_v12 = vpack.c.b16 %v3734_v19, %v3733_v63  ;;  %v3357_v63 = vunpack.c.l.b16 %v3153_v37 }
 0x1d5   : > { %v1365_v62 = vadd.f32 %v1325_v41, %v1001_v1  ;;  %v2234_v3 = vpop.f32.mrf.mxu0  ;;  %v1004_v1 = vadd.f32 %v1003_v48, %v5685_v11  ;;  %v2449_v41 = vunpack.c.l.b16 %v2378_v21  ;;  %v4514_v37 = vrot.slane %v4506_v43, 9 }
 0x1d6   : > { %v3163_v11 = vsel %vm5279_vm3, %v3158_v7, %v3162_v20  ;;  %v3665_v7 = vsel %vm5503_vm6, %v3663_v50, %v3664_v54 }
 0x1d7   : > { %v1616_v38 = vpop.f32.mrf.mxu3  ;;  %v2473_v48 = vpack.c.b16 %v2449_v41, %v2448_v58  ;;  %v3358_v19 = vunpack.c.l.b16 %v3163_v11  ;;  %v3736_v54 = vunpack.c.l.b16 %v3665_v7 }
 0x1d8   : > { %v1656_v46 = vadd.f32 %v1616_v38, %v1365_v62  ;;  %v4678_v62 = vld [vmem:[%s5255_s8 + $0x78] sm:$0xf] }
 0x1d9   : > { %4648 = vmatmul.msk.bf16.gmra.mxu2 %vm652_vm2, %v4808_v17  ;;  %v1005_v60 = vpop.f32.mrf.mxu1  ;;  %v6227_v17 = vld [vmem:[%s5255_s8 + $0x7c] sm:$0xf]  ;;  %v3165_v35 = vshrl.u32 %v4678_v62, 16  ;;  %v3168_v38 = vshll.u32 %v4678_v62, 16  ;;  %v4809_v62 = vld [vmem:[%s5255_s8 + $0x6c] sm:$0xff]  ;;  %v3382_v53 = vpack.c.b16 %v3358_v19, %v3357_v63 }
 0x1da   : > { %v6229_v44 = vadd.f32 %v2234_v3, %v1656_v46  ;;  %v3174_v3 = vshll.u32 %v6227_v17, 16  ;;  %v3178_v47 = vshrl.u32 %v6227_v17, 16  ;;  %v5027_v46 = vld [vmem:[%s5255_s8 + $0x68] sm:$0xf]  ;;  %v1006_v22 = vadd.f32 %v1005_v60, %v5704_v10  ;;  %v5028_v60 = vld [vmem:[%s5255_s8 + $0x6c] sm:$0xf] }
 0x1db   : > { %v3167_v58 = vrot.slane %v3165_v35, 4  ;;  %v3170_v41 = vrot.slane %v3168_v38, 5  ;;  %v2384_v11 = vrot.slane %v5028_v60, 5 }
 0x1dc   : > { %v1328_v34 = vpop.f32.mrf.mxu2  ;;  %4710 = vmatmul.msk.bf16.gmra.mxu3 %vm652_vm2, %v3381_v61  ;;  %v2381_v61 = vrot.slane %v5027_v46, 5 }
 0x1dd   : > { %v1366_v39 = vadd.f32 %v1328_v34, %v1004_v1  ;;  %v2237_v8 = vpop.f32.mrf.mxu0  ;;  %v3176_v34 = vrot.slane %v3174_v3, 5 }
 0x1de   : > { %v2383_v10 = vrot.slane %v2381_v61, 4  ;;  %v2382_v3 = vsel %vm5503_vm6, %v4514_v37, %v2381_v61  ;;  %v4724_v61 = vld [vmem:[%s5255_s8 + $0x78] sm:$0xe] }
 0x1df   : > { %v1619_v32 = vpop.f32.mrf.mxu3 }
 0x1e0   : > { %4748 = vmatmul.msk.bf16.gmra.mxu0 %vm652_vm2, %v3759_v12  ;;  %v1657_v21 = vadd.f32 %v1619_v32, %v1366_v39  ;;  %v3180_v12 = vrot.slane %v3178_v47, 4  ;;  %v6252_v32 = vld [vmem:[%s5255_s8 + $0x80] sm:$0xf]  ;;  %v2385_v47 = vsel %vm5503_vm6, %v2383_v10, %v2384_v11 }
 0x1e1   : > { %v1008_v30 = vpop.f32.mrf.mxu1 }
 0x1e2   : > { %v6246_v20 = vadd.f32 %v2237_v8, %v1657_v21  ;;  %v3735_v8 = vunpack.c.l.b16 %v3662_v33  ;;  %v3171_v21 = vor.u32 %v3170_v41, %v3167_v58  ;;  %v3181_v46 = vor.u32 %v3180_v12, %v3176_v34 }
 0x1e3   : > { %v1009_v63 = vadd.f32 %v1008_v30, %v5725_v26  ;;  %v2451_v33 = vunpack.c.l.b16 %v2385_v47  ;;  %v3668_v12 = vrot.slane %v6227_v17, 5  ;;  %v3188_v26 = vshrl.u32 %v6252_v32, 16 }
 0x1e4   : > { %v1330_v1 = vpop.f32.mrf.mxu2  ;;  %4531 = vmatmul.msk.bf16.gmra.mxu1 %vm652_vm2, %v2473_v48  ;;  %v3184_v48 = vshll.u32 %v6252_v32, 16  ;;  %v3760_v19 = vpack.c.b16 %v3736_v54, %v3735_v8  ;;  %v3172_v7 = vrot.slane %v3171_v21, 4  ;;  %v3182_v41 = vrot.slane %v3181_v46, 4  ;;  %v5029_v21 = vld [vmem:[%s5255_s8 + $0x70] sm:$0xf] }
 0x1e5   : > { %v1367_v39 = vadd.f32 %v1330_v1, %v1006_v22  ;;  %v2239_v28 = vpop.f32.mrf.mxu0  ;;  %v2450_v22 = vunpack.c.l.b16 %v2382_v3  ;;  %v6262_v1 = vld [vmem:[%s5255_s8 + $0x84] sm:$0xf]  ;;  %v4732_v8 = vrot.slane %v4724_v61, 9  ;;  %v3671_v3 = vrot.slane %v6252_v32, 5 }
 0x1e6   : > { %v3194_v30 = vshll.u32 %v6262_v1, 16  ;;  %v3198_v10 = vshrl.u32 %v6262_v1, 16  ;;  %v3190_v47 = vrot.slane %v3188_v26, 4  ;;  %v2386_v61 = vrot.slane %v2384_v11, 4 }
 0x1e7   : > { %v1621_v50 = vpop.f32.mrf.mxu3 }
 0x1e8   : > { %v1658_v35 = vadd.f32 %v1621_v50, %v1367_v39  ;;  %v3186_v39 = vrot.slane %v3184_v48, 5  ;;  %v2474_v50 = vpack.c.b16 %v2451_v33, %v2450_v22  ;;  %v2387_v48 = vrot.slane %v5029_v21, 5 }
 0x1e9   : > { %4649 = vmatmul.msk.bf16.gmra.mxu2 %vm652_vm2, %v4809_v62  ;;  %v1010_v38 = vpop.f32.mrf.mxu1 }
 0x1ea   : > { %v6266_v62 = vadd.f32 %v2239_v28, %v1658_v35  ;;  %v3177_v28 = vsel %vm5279_vm3, %v3172_v7, %v3176_v34  ;;  %v3187_v17 = vsel %vm5279_vm3, %v3182_v41, %v3186_v39  ;;  %v3670_v35 = vrot.slane %v3668_v12, 4  ;;  %v4810_v41 = vld [vmem:[%s5255_s8 + $0x78] sm:$0xff] }
 0x1eb   : > { %v1011_v46 = vadd.f32 %v1010_v38, %v5742_v0  ;;  %v3359_v22 = vunpack.c.l.b16 %v3177_v28  ;;  %v3360_v33 = vunpack.c.l.b16 %v3187_v17  ;;  %v3669_v7 = vsel %vm5503_vm6, %v4732_v8, %v3668_v12  ;;  %v5030_v0 = vld [vmem:[%s5255_s8 + $0x74] sm:$0x1] }
 0x1ec   : > { %v1333_v43 = vpop.f32.mrf.mxu2  ;;  %4711 = vmatmul.msk.bf16.gmra.mxu3 %vm652_vm2, %v3382_v53  ;;  %v2389_v26 = vrot.slane %v2387_v48, 4  ;;  %v2390_v38 = vrot.slane %v5030_v0, 5  ;;  %v3737_v8 = vunpack.c.l.b16 %v3669_v7  ;;  %v2388_v21 = vsel %vm5503_vm6, %v2386_v61, %v2387_v48  ;;  %v6306_v0 = vld [vmem:[%s5255_s8 + $0x90] sm:$0xf] }
 0x1ed   : > { %v1368_v58 = vadd.f32 %v1333_v43, %v1009_v63  ;;  %v2242_v37 = vpop.f32.mrf.mxu0  ;;  %v6280_v63 = vrot.slane %v3194_v30, 5  ;;  %v3383_v12 = vpack.c.b16 %v3360_v33, %v3359_v22  ;;  %v2452_v33 = vunpack.c.l.b16 %v2388_v21 }
 0x1ef   : > { %v1624_v60 = vpop.f32.mrf.mxu3 }
 0x1f0   : > { %4749 = vmatmul.msk.bf16.gmra.mxu0 %vm652_vm2, %v3760_v19  ;;  %v1659_v53 = vadd.f32 %v1624_v60, %v1368_v58  ;;  %v3200_v19 = vrot.slane %v3198_v10, 4  ;;  %v6288_v58 = vld [vmem:[%s5255_s8 + $0x88] sm:$0x1]  ;;  %v3191_v10 = vor.u32 %v3190_v47, %v3186_v39  ;;  %v2391_v39 = vsel %vm5503_vm6, %v2389_v26, %v2390_v38 }
 0x1f1   : > { %v2545_v54 = vpop.f32.mrf.mxu1  ;;  %v2453_v7 = vunpack.c.l.b16 %v2391_v39 }
 0x1f2   : > { %v6282_v43 = vadd.f32 %v2242_v37, %v1659_v53  ;;  %v3672_v37 = vsel %vm5503_vm6, %v3670_v35, %v3671_v3  ;;  %v3201_v60 = vor.u32 %v3200_v19, %v6280_v63  ;;  %v3192_v35 = vrot.slane %v3191_v10, 4 }
 0x1f3   : > { %v3738_v11 = vunpack.c.l.b16 %v3672_v37  ;;  %v3674_v19 = vrot.slane %v6262_v1, 5 }
 0x1f4   : > { %v1335_v34 = vpop.f32.mrf.mxu2  ;;  %4532 = vmatmul.msk.bf16.gmra.mxu1 %vm652_vm2, %v2474_v50  ;;  %v3204_v50 = vshll.u32 %v6288_v58, 16  ;;  %v3202_v47 = vrot.slane %v3201_v60, 4  ;;  %v3197_v26 = vsel %vm5279_vm3, %v3192_v35, %v6280_v63 }
 0x1f5   : > { %v1369_v32 = vadd.f32 %v1335_v34, %v1011_v46  ;;  %v2244_v30 = vpop.f32.mrf.mxu0  ;;  %v4683_v34 = vld [vmem:[%s5255_s8 + $0x8c] sm:$0xf]  ;;  %v3676_v10 = vrot.slane %v3674_v19, 4 }
 0x1f6   : > { %v3206_v46 = vrot.slane %v3204_v50, 5  ;;  %v3209_v1 = vshrl.u32 %v4683_v34, 16  ;;  %v3212_v38 = vshll.u32 %v4683_v34, 16  ;;  %v2475_v50 = vpack.c.b16 %v2453_v7, %v2452_v33 }
 0x1f7   : > { %v1626_v53 = vpop.f32.mrf.mxu3 }
 0x1f8   : > { %v1660_v28 = vadd.f32 %v1626_v53, %v1369_v32  ;;  %v2625_v32 = vadd.f32 %v2545_v54, %v5758_v4  ;;  %v3207_v4 = vsel %vm5279_vm3, %v3202_v47, %v3206_v46  ;;  %v3673_v54 = vrot.slane %v3671_v3, 4 }
 0x1f9   : > { %4650 = vmatmul.msk.bf16.gmra.mxu2 %vm652_vm2, %v4810_v41  ;;  %v2547_v17 = vpop.f32.mrf.mxu1  ;;  %v3761_v41 = vpack.c.b16 %v3738_v11, %v3737_v8  ;;  %v3218_v53 = vshll.u32 %v6306_v0, 16  ;;  %v5031_v8 = vld [vmem:[%s5255_s8 + $0x7c] sm:$0xf]  ;;  %v4507_v11 = vld [vmem:[%s5255_s8 + $0x78] sm:$0xe]  ;;  %v3211_v21 = vrot.slane %v3209_v1, 4  ;;  %v3361_v47 = vunpack.c.l.b16 %v3197_v26 }
 0x1fa   : > { %v6308_v48 = vadd.f32 %v2244_v30, %v1660_v28  ;;  %v3677_v30 = vrot.slane %v6288_v58, 5  ;;  %v2394_v28 = vrot.slane %v5031_v8, 5  ;;  %v3214_v39 = vrot.slane %v3212_v38, 5 }
 0x1fb   : > { %v2626_v35 = vadd.f32 %v2547_v17, %v5772_v52  ;;  %v3362_v58 = vunpack.c.l.b16 %v3207_v4  ;;  %v3675_v34 = vsel %vm5503_vm6, %v3673_v54, %v3674_v19  ;;  %v6327_v33 = vrot.slane %v3218_v53, 5  ;;  %v6335_v17 = vld [vmem:[%s5255_s8 + $0x94] sm:$0xf]  ;;  %v6340_v54 = vld [vmem:[%s6693_s2] ss:$0 sm:$0xff] }
 0x1fc   : > { %v2836_v22 = vpop.f32.mrf.mxu2  ;;  %4712 = vmatmul.msk.bf16.gmra.mxu3 %vm652_vm2, %v3383_v12  ;;  %v3222_v12 = vshrl.u32 %v6306_v0, 16  ;;  %v4515_v1 = vrot.slane %v4507_v11, 9  ;;  %v2396_v38 = vrot.slane %v2394_v28, 4  ;;  %v3215_v4 = vor.u32 %v3214_v39, %v3211_v21 }
 0x1fd   : > { %v3832_v61 = vpop.f32.mrf.mxu0  ;;  %v2916_v37 = vadd.f32 %v2836_v22, %v2625_v32  ;;  %v3678_v22 = vsel %vm5503_vm6, %v3676_v10, %v3677_v30  ;;  %v3739_v10 = vunpack.c.l.b16 %v3675_v34  ;;  %v3384_v30 = vpack.c.b16 %v3362_v58, %v3361_v47  ;;  %v6354_v58 = vld [vmem:[%s5255_s8 + $0x98] sm:$0xf] }
 0x1fe   : > { %v3224_v7 = vrot.slane %v3222_v12, 4  ;;  %v3228_v53 = vshll.u32 %v6335_v17, 16  ;;  %v3216_v39 = vrot.slane %v3215_v4, 4 }
 0x1ff   : > { %v3454_v60 = vpop.f32.mrf.mxu3 }
 0x200   : > { %4750 = vmatmul.msk.bf16.gmra.mxu0 %vm652_vm2, %v3761_v41  ;;  %v3534_v3 = vadd.f32 %v3454_v60, %v2916_v37  ;;  %v4811_v41 = vld [vmem:[%s5255_s8 + $0x80] sm:$0xff]  ;;  %v3740_v60 = vunpack.c.l.b16 %v3678_v22  ;;  %v3225_v21 = vor.u32 %v3224_v7, %v6327_v33 }
 0x201   : > { %v2550_v63 = vpop.f32.mrf.mxu1  ;;  %v6331_v37 = vld [vmem:[%s5255_s8 + $0x80] sm:$0xf] }
 0x202   : > { %v6695_v52 = vrot.slane %v6331_v37, 5  ;;  %v3912_v19 = vadd.f32 %v3832_v61, %v3534_v3  ;;  %v2395_v61 = vsel %vm5503_vm6, %v4515_v1, %v2394_v28  ;;  %v3762_v47 = vpack.c.b16 %v3740_v60, %v3739_v10 }
 0x203   : > { %v2454_v34 = vunpack.c.l.b16 %v2395_v61  ;;  %v3681_v28 = vrot.slane %v6306_v0, 5  ;;  %v2627_v1 = vadd.f32 %v2550_v63, %v5783_v45  ;;  %v3238_v0 = vshll.u32 %v6354_v58, 16 }
 0x204   : > { %v2838_v46 = vpop.f32.mrf.mxu2  ;;  %4533 = vmatmul.msk.bf16.gmra.mxu1 %vm652_vm2, %v2475_v50  ;;  %v2398_v11 = vsel %vm5503_vm6, %v2396_v38, %v6695_v52  ;;  %v3948_v3 = vadd.f32 %v6340_v54, %v3912_v19  ;;  %v3226_v38 = vrot.slane %v3225_v21, 4  ;;  %v3221_v19 = vsel %vm5279_vm3, %v3216_v39, %v6327_v33 }
 0x205   : > { %v2917_v32 = vadd.f32 %v2838_v46, %v2626_v35  ;;  %v3834_v26 = vpop.f32.mrf.mxu0  ;;  %v2455_v22 = vunpack.c.l.b16 %v2398_v11  ;;  %v3242_v10 = vshrl.u32 %v6354_v58, 16  ;;  %v3683_v63 = vrot.slane %v3681_v28, 4 }
 0x206   : > { %v3980_v60 = vmax.f32 %v3948_v3, 0.0  ;;  %v6374_v3 = vrot.slane %v3238_v0, 5 }
 0x207   : > { %v3456_v50 = vpop.f32.mrf.mxu3  ;;  %v2476_v45 = vpack.c.b16 %v2455_v22, %v2454_v34  ;;  %v3363_v22 = vunpack.c.l.b16 %v3221_v19 }
 0x208   : > { %v3535_v12 = vadd.f32 %v3456_v50, %v2917_v32  ;;  %v4725_v32 = vld [vmem:[%s5255_s8 + $0x8c] sm:$0xe] }
 0x209   : > { %4651 = vmatmul.msk.bf16.gmra.mxu2 %vm652_vm2, %v4811_v41  ;;  %v2552_v8 = vpop.f32.mrf.mxu1  ;;  %v3232_v41 = vshrl.u32 %v6335_v17, 16  ;;  %v4733_v61 = vrot.slane %v4725_v32, 9 }
 0x20a   : > { %v3913_v35 = vadd.f32 %v3834_v26, %v3535_v12  ;;  %v3230_v26 = vrot.slane %v3228_v53, 5  ;;  %v2628_v34 = vadd.f32 %v2552_v8, %v5796_v56  ;;  %v5034_v8 = vld [vmem:[%s5255_s8 + $0x88] sm:$0x1] }
 0x20b   : > { %v3234_v53 = vrot.slane %v3232_v41, 4  ;;  %v2403_v19 = vrot.slane %v5034_v8, 5 }
 0x20c   : > { %v2841_v46 = vpop.f32.mrf.mxu2  ;;  %v3949_v7 = vadd.f32 %v6340_v54, %v3913_v35  ;;  %4713 = vmatmul.msk.bf16.gmra.mxu3 %vm652_vm2, %v3384_v30  ;;  %v3684_v30 = vrot.slane %v6335_v17, 5  ;;  %v3231_v39 = vsel %vm5279_vm3, %v3226_v38, %v3230_v26  ;;  %v5033_v35 = vld [vmem:[%s5255_s8 + $0x84] sm:$0xf] }
 0x20d   : > { %v3837_v4 = vpop.f32.mrf.mxu0  ;;  %v2918_v12 = vadd.f32 %v2841_v46, %v2627_v1  ;;  %v2400_v52 = vrot.slane %v5033_v35, 5  ;;  %v3244_v46 = vrot.slane %v3242_v10, 4  ;;  %v3364_v41 = vunpack.c.l.b16 %v3231_v39  ;;  %v4812_v10 = vld [vmem:[%s5255_s8 + $0x8c] sm:$0xff] }
 0x20e   : > { %v3981_v50 = vmax.f32 %v3949_v7, 0.0  ;;  %v3682_v7 = vsel %vm5503_vm6, %v4733_v61, %v3681_v28  ;;  %v3685_v1 = vsel %vm5503_vm6, %v3683_v63, %v3684_v30  ;;  %v3235_v38 = vor.u32 %v3234_v53, %v3230_v26 }
 0x20f   : > { %v3459_v11 = vpop.f32.mrf.mxu3  ;;  %v2402_v56 = vrot.slane %v2400_v52, 4  ;;  %v3385_v61 = vpack.c.b16 %v3364_v41, %v3363_v22  ;;  %v3741_v39 = vunpack.c.l.b16 %v3682_v7  ;;  %v3742_v63 = vunpack.c.l.b16 %v3685_v1  ;;  %v4688_v41 = vld [vmem:[%s5255_s8 + $0xa0] sm:$0xf] }
 0x210   : > { %v4824_v21 = vpack.c.bf16 %v3981_v50, %v3980_v60  ;;  %4751 = vmatmul.msk.bf16.gmra.mxu0 %vm652_vm2, %v3762_v47  ;;  %v3536_v17 = vadd.f32 %v3459_v11, %v2918_v12  ;;  %v6381_v47 = vld [vmem:[%s5255_s8 + $0x9c] sm:$0x1]  ;;  %v6706_v60 = vrot.slane %v6331_v37, 5  ;;  %v3245_v11 = vor.u32 %v3244_v46, %v6374_v3 }
 0x211   : > { %v2555_v33 = vpop.f32.mrf.mxu1  ;;  %v2404_v35 = vsel %vm5503_vm6, %v2402_v56, %v2403_v19  ;;  %v3236_v46 = vrot.slane %v3235_v38, 4  ;;  %v3687_v22 = vrot.slane %v6354_v58, 5  ;;  %v3686_v8 = vrot.slane %v3684_v30, 4 }
 0x212   : > { %4825 = vst [vmem:[%s6376_s7] sm:$0xff] %v4824_v21   ;;  %v2399_v50 = vrot.slane %v6706_v60, 4  ;;  %v3914_v21 = vadd.f32 %v3837_v4, %v3536_v17  ;;  %v3763_v60 = vpack.c.b16 %v3742_v63, %v3741_v39  ;;  %v3253_v19 = vshrl.u32 %v4688_v41, 16 }
 0x213   : > { %v3241_v38 = vsel %vm5279_vm3, %v3236_v46, %v6374_v3  ;;  %v3690_v3 = vrot.slane %v6381_v47, 5 }
 0x214   : > { %v2843_v32 = vpop.f32.mrf.mxu2  ;;  %4534 = vmatmul.msk.bf16.gmra.mxu1 %vm652_vm2, %v2476_v45  ;;  %v3248_v45 = vshll.u32 %v6381_v47, 16  ;;  %v2401_v37 = vsel %vm5503_vm6, %v2399_v50, %v2400_v52  ;;  %v3950_v4 = vadd.f32 %v6340_v54, %v3914_v21  ;;  %v2629_v52 = vadd.f32 %v2555_v33, %v5808_v18  ;;  %v6409_v50 = vld [vmem:[%s5255_s8 + $0xa4] sm:$0xf] }
 0x215   : > { %v2919_v0 = vadd.f32 %v2843_v32, %v2628_v34  ;;  %v3839_v12 = vpop.f32.mrf.mxu0  ;;  %v3246_v34 = vrot.slane %v3245_v11, 4  ;;  %v2456_v1 = vunpack.c.l.b16 %v2401_v37  ;;  %v3266_v39 = vshrl.u32 %v6409_v50, 16 }
 0x216   : > { %v3250_v32 = vrot.slane %v3248_v45, 5  ;;  %v3982_v11 = vmax.f32 %v3950_v4, 0.0  ;;  %v3689_v45 = vrot.slane %v3687_v22, 4  ;;  %v3255_v46 = vrot.slane %v3253_v19, 4 }
 0x217   : > { %v3461_v28 = vpop.f32.mrf.mxu3  ;;  %v3365_v4 = vunpack.c.l.b16 %v3241_v38 }
 0x218   : > { %v3537_v26 = vadd.f32 %v3461_v28, %v2919_v0  ;;  %v2457_v0 = vunpack.c.l.b16 %v2404_v35  ;;  %v3251_v58 = vsel %vm5279_vm3, %v3246_v34, %v3250_v32  ;;  %v4508_v35 = vld [vmem:[%s5255_s8 + $0x8c] sm:$0xe] }
 0x219   : > { %4652 = vmatmul.msk.bf16.gmra.mxu2 %vm652_vm2, %v4812_v10  ;;  %v2557_v53 = vpop.f32.mrf.mxu1  ;;  %v4516_v19 = vrot.slane %v4508_v35, 9 }
 0x21a   : > { %v3915_v17 = vadd.f32 %v3839_v12, %v3537_v26  ;;  %v3256_v12 = vshll.u32 %v4688_v41, 16  ;;  %v2477_v28 = vpack.c.b16 %v2457_v0, %v2456_v1  ;;  %v5035_v26 = vld [vmem:[%s5255_s8 + $0x90] sm:$0xf]  ;;  %v2630_v47 = vadd.f32 %v2557_v53, %v5822_v6  ;;  %v6434_v53 = vld [vmem:[%s5255_s8 + $0xa8] sm:$0xf] }
 0x21b   : > { %v2407_v37 = vrot.slane %v5035_v26, 5  ;;  %v3691_v1 = vsel %vm5503_vm6, %v3689_v45, %v3690_v3 }
 0x21c   : > { %v2846_v7 = vpop.f32.mrf.mxu2  ;;  %v3951_v10 = vadd.f32 %v6340_v54, %v3915_v17  ;;  %4714 = vmatmul.msk.bf16.gmra.mxu3 %vm652_vm2, %v3385_v61  ;;  %v3262_v61 = vshll.u32 %v6409_v50, 16  ;;  %v3258_v34 = vrot.slane %v3256_v12, 5  ;;  %v3366_v17 = vunpack.c.l.b16 %v3251_v58 }
 0x21d   : > { %v3842_v56 = vpop.f32.mrf.mxu0  ;;  %v2920_v33 = vadd.f32 %v2846_v7, %v2629_v52  ;;  %v3688_v7 = vsel %vm5503_vm6, %v3686_v8, %v3687_v22  ;;  %v2409_v12 = vrot.slane %v2407_v37, 4  ;;  %v3744_v8 = vunpack.c.l.b16 %v3691_v1 }
 0x21e   : > { %v3983_v18 = vmax.f32 %v3951_v10, 0.0  ;;  %v6426_v0 = vrot.slane %v3262_v61, 5  ;;  %v3268_v10 = vrot.slane %v3266_v39, 4  ;;  %v3259_v58 = vor.u32 %v3258_v34, %v3255_v46  ;;  %v6447_v34 = vld [vmem:[%s5255_s8 + $0xac] sm:$0xf] }
 0x21f   : > { %v3464_v21 = vpop.f32.mrf.mxu3  ;;  %v3743_v22 = vunpack.c.l.b16 %v3688_v7  ;;  %v3386_v45 = vpack.c.b16 %v3366_v17, %v3365_v4  ;;  %v2408_v61 = vsel %vm5503_vm6, %v4516_v19, %v2407_v37  ;;  %v4726_v17 = vld [vmem:[%s5255_s8 + $0xa0] sm:$0xe]  ;;  %v3694_v37 = vrot.slane %v6409_v50, 5 }
 0x220   : > { %v4829_v63 = vpack.c.bf16 %v3983_v18, %v3982_v11  ;;  %4752 = vmatmul.msk.bf16.gmra.mxu0 %vm652_vm2, %v3763_v60  ;;  %v3538_v32 = vadd.f32 %v3464_v21, %v2920_v33  ;;  %v4813_v60 = vld [vmem:[%s5255_s8 + $0x94] sm:$0xff]  ;;  %v3272_v21 = vshll.u32 %v6434_v53, 16  ;;  %v3269_v39 = vor.u32 %v3268_v10, %v6426_v0 }
 0x221   : > { %v2560_v30 = vpop.f32.mrf.mxu1  ;;  %v6430_v11 = vld [vmem:[%s5255_s8 + $0x94] sm:$0xf]  ;;  %v3764_v46 = vpack.c.b16 %v3744_v8, %v3743_v22  ;;  %v3286_v50 = vshrl.u32 %v6447_v34, 16  ;;  %v4734_v22 = vrot.slane %v4726_v17, 9  ;;  %v3696_v8 = vrot.slane %v3694_v37, 4 }
 0x222   : > { %4901 = vst [vmem:[%s6376_s7 + $0x8] sm:$0xff] %v4829_v63   ;;  %v2410_v6 = vrot.slane %v6430_v11, 5  ;;  %v3916_v18 = vadd.f32 %v3842_v56, %v3538_v32  ;;  %v3260_v63 = vrot.slane %v3259_v58, 4  ;;  %v2631_v1 = vadd.f32 %v2560_v30, %v5832_v25 }
 0x223   : > { %v3270_v10 = vrot.slane %v3269_v39, 4 }
 0x224   : > { %v2848_v41 = vpop.f32.mrf.mxu2  ;;  %4535 = vmatmul.msk.bf16.gmra.mxu1 %vm652_vm2, %v2477_v28  ;;  %v2411_v56 = vsel %vm5503_vm6, %v2409_v12, %v2410_v6  ;;  %v3952_v26 = vadd.f32 %v6340_v54, %v3916_v18  ;;  %v3265_v19 = vsel %vm5279_vm3, %v3260_v63, %v6426_v0  ;;  %v3282_v12 = vshll.u32 %v6447_v34, 16 }
 0x225   : > { %v2921_v52 = vadd.f32 %v2848_v41, %v2630_v47  ;;  %v3844_v38 = vpop.f32.mrf.mxu0  ;;  %v2458_v47 = vunpack.c.l.b16 %v2408_v61  ;;  %v2459_v4 = vunpack.c.l.b16 %v2411_v56  ;;  %v3276_v41 = vshrl.u32 %v6434_v53, 16  ;;  %v5037_v61 = vld [vmem:[%s5255_s8 + $0x98] sm:$0xf] }
 0x226   : > { %v2413_v56 = vrot.slane %v5037_v61, 5  ;;  %v6465_v39 = vrot.slane %v3282_v12, 5  ;;  %v3288_v63 = vrot.slane %v3286_v50, 4  ;;  %v3700_v61 = vrot.slane %v6447_v34, 5 }
 0x227   : > { %v3466_v33 = vpop.f32.mrf.mxu3  ;;  %v2478_v30 = vpack.c.b16 %v2459_v4, %v2458_v47  ;;  %v3695_v4 = vsel %vm5503_vm6, %v4734_v22, %v3694_v37 }
 0x228   : > { %v3539_v28 = vadd.f32 %v3466_v33, %v2921_v52  ;;  %v3274_v52 = vrot.slane %v3272_v21, 5  ;;  %v3697_v33 = vrot.slane %v6434_v53, 5  ;;  %v3367_v53 = vunpack.c.l.b16 %v3265_v19 }
 0x229   : > { %4653 = vmatmul.msk.bf16.gmra.mxu2 %vm652_vm2, %v4813_v60  ;;  %v2562_v3 = vpop.f32.mrf.mxu1  ;;  %v3289_v50 = vor.u32 %v3288_v63, %v6465_v39  ;;  %v3745_v22 = vunpack.c.l.b16 %v3695_v4  ;;  %v4693_v63 = vld [vmem:[%s5255_s8 + $0xb4] sm:$0xf] }
 0x22a   : > { %v3917_v35 = vadd.f32 %v3844_v38, %v3539_v28  ;;  %v3984_v38 = vmax.f32 %v3952_v26, 0.0  ;;  %v3275_v28 = vsel %vm5279_vm3, %v3270_v10, %v3274_v52  ;;  %v3698_v17 = vsel %vm5503_vm6, %v3696_v8, %v3697_v33 }
 0x22b   : > { %v2412_v10 = vrot.slane %v2410_v6, 4 }
 0x22c   : > { %v2851_v32 = vpop.f32.mrf.mxu2  ;;  %v3953_v7 = vadd.f32 %v6340_v54, %v3917_v35  ;;  %4715 = vmatmul.msk.bf16.gmra.mxu3 %vm652_vm2, %v3386_v45  ;;  %v3278_v45 = vrot.slane %v3276_v41, 4  ;;  %v2632_v35 = vadd.f32 %v2562_v3, %v5845_v9  ;;  %v2415_v9 = vrot.slane %v2413_v56, 4  ;;  %v5038_v3 = vld [vmem:[%s5255_s8 + $0x9c] sm:$0x1] }
 0x22d   : > { %v3847_v60 = vpop.f32.mrf.mxu0  ;;  %v2922_v18 = vadd.f32 %v2851_v32, %v2631_v1  ;;  %v6470_v32 = vld [vmem:[%s5255_s8 + $0xb0] sm:$0x1]  ;;  %v4814_v1 = vld [vmem:[%s5255_s8 + $0xa0] sm:$0xff]  ;;  %v2416_v19 = vrot.slane %v5038_v3, 5  ;;  %v2414_v11 = vsel %vm5503_vm6, %v2412_v10, %v2413_v56  ;;  %v3300_v10 = vshll.u32 %v4693_v63, 16 }
 0x22e   : > { %v3985_v58 = vmax.f32 %v3953_v7, 0.0  ;;  %v3279_v41 = vor.u32 %v3278_v45, %v3274_v52  ;;  %v3290_v45 = vrot.slane %v3289_v50, 4  ;;  %v3702_v3 = vrot.slane %v3700_v61, 4 }
 0x22f   : > { %v3469_v25 = vpop.f32.mrf.mxu3  ;;  %v2417_v6 = vsel %vm5503_vm6, %v2415_v9, %v2416_v19 }
 0x230   : > { %v4834_v21 = vpack.c.bf16 %v3985_v58, %v3984_v38  ;;  %4753 = vmatmul.msk.bf16.gmra.mxu0 %vm652_vm2, %v3764_v46  ;;  %v3540_v26 = vadd.f32 %v3469_v25, %v2922_v18  ;;  %v3368_v46 = vunpack.c.l.b16 %v3275_v28  ;;  %v3292_v38 = vshll.u32 %v6470_v32, 16 }
 0x231   : > { %v2565_v0 = vpop.f32.mrf.mxu1  ;;  %v3746_v25 = vunpack.c.l.b16 %v3698_v17  ;;  %v3280_v8 = vrot.slane %v3279_v41, 4  ;;  %v6498_v17 = vld [vmem:[%s5255_s8 + $0xb8] sm:$0xf] }
 0x232   : > { %4902 = vst [vmem:[%s6376_s7 + $0x10] sm:$0xff] %v4834_v21   ;;  %v3918_v58 = vadd.f32 %v3847_v60, %v3540_v26  ;;  %v3387_v18 = vpack.c.b16 %v3368_v46, %v3367_v53  ;;  %v3294_v21 = vrot.slane %v3292_v38, 5  ;;  %v2461_v53 = vunpack.c.l.b16 %v2417_v6 }
 0x233   : > { %v2633_v56 = vadd.f32 %v2565_v0, %v5857_v36  ;;  %v3765_v46 = vpack.c.b16 %v3746_v25, %v3745_v22  ;;  %v3285_v4 = vsel %vm5279_vm3, %v3280_v8, %v6465_v39  ;;  %v3703_v39 = vrot.slane %v6470_v32, 5  ;;  %v4509_v22 = vld [vmem:[%s5255_s8 + $0xa0] sm:$0xe] }
 0x234   : > { %v2853_v47 = vpop.f32.mrf.mxu2  ;;  %4536 = vmatmul.msk.bf16.gmra.mxu1 %vm652_vm2, %v2478_v30  ;;  %v3954_v60 = vadd.f32 %v6340_v54, %v3918_v58  ;;  %v3295_v34 = vsel %vm5279_vm3, %v3290_v45, %v3294_v21  ;;  %v3306_v50 = vshll.u32 %v6498_v17, 16  ;;  %v3310_v38 = vshrl.u32 %v6498_v17, 16 }
 0x235   : > { %v2923_v7 = vadd.f32 %v2853_v47, %v2632_v35  ;;  %v3849_v12 = vpop.f32.mrf.mxu0  ;;  %v2460_v35 = vunpack.c.l.b16 %v2414_v11  ;;  %v3369_v6 = vunpack.c.l.b16 %v3285_v4  ;;  %v3370_v8 = vunpack.c.l.b16 %v3295_v34 }
 0x236   : > { %v3986_v9 = vmax.f32 %v3954_v60, 0.0  ;;  %v3704_v60 = vsel %vm5503_vm6, %v3702_v3, %v3703_v39 }
 0x237   : > { %v3471_v37 = vpop.f32.mrf.mxu3 }
 0x238   : > { %v3541_v52 = vadd.f32 %v3471_v37, %v2923_v7  ;;  %v3699_v7 = vrot.slane %v3697_v33, 4  ;;  %v5039_v37 = vld [vmem:[%s5255_s8 + $0xa4] sm:$0xf] }
 0x239   : > { %4654 = vmatmul.msk.bf16.gmra.mxu2 %vm652_vm2, %v4814_v1  ;;  %v2567_v30 = vpop.f32.mrf.mxu1  ;;  %v3297_v1 = vshrl.u32 %v4693_v63, 16  ;;  %v3312_v63 = vrot.slane %v3310_v38, 4 }
 0x23a   : > { %v3919_v28 = vadd.f32 %v3849_v12, %v3541_v52  ;;  %v2479_v12 = vpack.c.b16 %v2461_v53, %v2460_v35  ;;  %v3302_v52 = vrot.slane %v3300_v10, 5  ;;  %v2634_v32 = vadd.f32 %v2567_v30, %v5871_v14  ;;  %v4815_v35 = vld [vmem:[%s5255_s8 + $0xa8] sm:$0xff]  ;;  %v6521_v30 = vld [vmem:[%s5255_s8 + $0xbc] sm:$0xf] }
 0x23b   : > { %v3299_v25 = vrot.slane %v3297_v1, 4  ;;  %v3701_v21 = vsel %vm5503_vm6, %v3699_v7, %v3700_v61  ;;  %v4517_v53 = vrot.slane %v4509_v22, 9  ;;  %v3388_v61 = vpack.c.b16 %v3370_v8, %v3369_v6 }
 0x23c   : > { %v2856_v26 = vpop.f32.mrf.mxu2  ;;  %v3955_v47 = vadd.f32 %v6340_v54, %v3919_v28  ;;  %4716 = vmatmul.msk.bf16.gmra.mxu3 %vm652_vm2, %v3387_v18  ;;  %v2420_v18 = vrot.slane %v5039_v37, 5  ;;  %v3308_v28 = vrot.slane %v3306_v50, 5  ;;  %v3747_v7 = vunpack.c.l.b16 %v3701_v21 }
 0x23d   : > { %v3852_v41 = vpop.f32.mrf.mxu0  ;;  %v2924_v0 = vadd.f32 %v2856_v26, %v2633_v56  ;;  %v6517_v56 = vld [vmem:[%s5255_s8 + $0xa8] sm:$0xf]  ;;  %v3303_v4 = vor.u32 %v3302_v52, %v3299_v25  ;;  %v3748_v10 = vunpack.c.l.b16 %v3704_v60  ;;  %v4727_v25 = vld [vmem:[%s5255_s8 + $0xb4] sm:$0xe]  ;;  %v3707_v52 = vrot.slane %v6498_v17, 5 }
 0x23e   : > { %v3987_v36 = vmax.f32 %v3955_v47, 0.0  ;;  %v2422_v47 = vrot.slane %v2420_v18, 4  ;;  %v2423_v14 = vrot.slane %v6517_v56, 5  ;;  %v2421_v3 = vsel %vm5503_vm6, %v4517_v53, %v2420_v18  ;;  %v6540_v17 = vld [vmem:[%s5255_s8 + $0xc0] sm:$0xf] }
 0x23f   : > { %v3474_v19 = vpop.f32.mrf.mxu3  ;;  %v3304_v39 = vrot.slane %v3303_v4, 4  ;;  %v3766_v38 = vpack.c.b16 %v3748_v10, %v3747_v7  ;;  %v2462_v37 = vunpack.c.l.b16 %v2421_v3  ;;  %v3710_v56 = vrot.slane %v6521_v30, 5 }
 0x240   : > { %v4839_v58 = vpack.c.bf16 %v3987_v36, %v3986_v9  ;;  %4754 = vmatmul.msk.bf16.gmra.mxu0 %vm652_vm2, %v3765_v46  ;;  %v3542_v11 = vadd.f32 %v3474_v19, %v2924_v0  ;;  %v3316_v9 = vshll.u32 %v6521_v30, 16  ;;  %v2424_v19 = vsel %vm5503_vm6, %v2422_v47, %v2423_v14 }
 0x241   : > { %v2570_v33 = vpop.f32.mrf.mxu1  ;;  %v2463_v22 = vunpack.c.l.b16 %v2424_v19  ;;  %v3309_v21 = vsel %vm5279_vm3, %v3304_v39, %v3308_v28  ;;  %v3326_v7 = vshll.u32 %v6540_v17, 16  ;;  %v3330_v10 = vshrl.u32 %v6540_v17, 16 }
 0x242   : > { %4903 = vst [vmem:[%s6376_s7 + $0x18] sm:$0xff] %v4839_v58   ;;  %v3920_v34 = vadd.f32 %v3852_v41, %v3542_v11  ;;  %v6535_v8 = vrot.slane %v3316_v9, 5  ;;  %v3371_v3 = vunpack.c.l.b16 %v3309_v21 }
 0x243   : > { %v2480_v47 = vpack.c.b16 %v2463_v22, %v2462_v37  ;;  %v2425_v37 = vrot.slane %v2423_v14, 4 }
 0x244   : > { %v2858_v45 = vpop.f32.mrf.mxu2  ;;  %4537 = vmatmul.msk.bf16.gmra.mxu1 %vm652_vm2, %v2479_v12  ;;  %v3313_v12 = vor.u32 %v3312_v63, %v3308_v28  ;;  %v3956_v41 = vadd.f32 %v6340_v54, %v3920_v34 }
 0x245   : > { %v2925_v26 = vadd.f32 %v2858_v45, %v2634_v32  ;;  %v3854_v46 = vpop.f32.mrf.mxu0  ;;  %v6707_v32 = vld [vmem:[#allocation5_spill] sm:$0xff] }
 0x246   : > { %v2635_v18 = vadd.f32 %v2570_v33, %v6707_v32  ;;  %v3314_v6 = vrot.slane %v3313_v12, 4  ;;  %v3988_v60 = vmax.f32 %v3956_v41, 0.0  ;;  %v3709_v33 = vrot.slane %v3707_v52, 4 }
 0x247   : > { %v3476_v1 = vpop.f32.mrf.mxu3  ;;  %v3332_v32 = vrot.slane %v3330_v10, 4 }
 0x248   : > { %v3543_v36 = vadd.f32 %v3476_v1, %v2925_v26  ;;  %v3319_v28 = vsel %vm5279_vm3, %v3314_v6, %v6535_v8  ;;  %v5041_v1 = vld [vmem:[%s5255_s8 + $0xac] sm:$0xf]  ;;  %v3711_v41 = vsel %vm5503_vm6, %v3709_v33, %v3710_v56  ;;  %v4697_v6 = vld [vmem:[%s5255_s8 + $0xc4] sm:$0x1] }
 0x249   : > { %4655 = vmatmul.msk.bf16.gmra.mxu2 %vm652_vm2, %v4815_v35  ;;  %v2572_v0 = vpop.f32.mrf.mxu1  ;;  %v4735_v35 = vrot.slane %v4727_v25, 9  ;;  %v3372_v12 = vunpack.c.l.b16 %v3319_v28 }
 0x24a   : > { %v3921_v50 = vadd.f32 %v3854_v46, %v3543_v36  ;;  %v3320_v46 = vshrl.u32 %v6521_v30, 16  ;;  %v2636_v36 = vadd.f32 %v2572_v0, %v5916_v42  ;;  %v5042_v42 = vld [vmem:[%s5255_s8 + $0xb0] sm:$0x1] }
 0x24b   : > { %v3708_v39 = vsel %vm5503_vm6, %v4735_v35, %v3707_v52  ;;  %v2429_v0 = vrot.slane %v5042_v42, 5  ;;  %v3712_v42 = vrot.slane %v3710_v56, 4 }
 0x24c   : > { %v2861_v58 = vpop.f32.mrf.mxu2  ;;  %v3957_v11 = vadd.f32 %v6340_v54, %v3921_v50  ;;  %4717 = vmatmul.msk.bf16.gmra.mxu3 %vm652_vm2, %v3388_v61  ;;  %v2426_v61 = vrot.slane %v5041_v1, 5  ;;  %v3322_v50 = vrot.slane %v3320_v46, 4  ;;  %v3749_v52 = vunpack.c.l.b16 %v3708_v39 }
 0x24d   : > { %v3857_v45 = vpop.f32.mrf.mxu0  ;;  %v2926_v26 = vadd.f32 %v2861_v58, %v2635_v18  ;;  %v4816_v58 = vld [vmem:[%s5255_s8 + $0xb4] sm:$0xff]  ;;  %v3336_v46 = vshll.u32 %v4697_v6, 16 }
 0x24e   : > { %v3989_v63 = vmax.f32 %v3957_v11, 0.0  ;;  %v2428_v22 = vrot.slane %v2426_v61, 4  ;;  %v3328_v11 = vrot.slane %v3326_v7, 5 }
 0x24f   : > { %v3479_v53 = vpop.f32.mrf.mxu3 }
 0x250   : > { %v4844_v4 = vpack.c.bf16 %v3989_v63, %v3988_v60  ;;  %4755 = vmatmul.msk.bf16.gmra.mxu0 %vm652_vm2, %v3766_v38  ;;  %v3544_v9 = vadd.f32 %v3479_v53, %v2926_v26  ;;  %v3389_v60 = vpack.c.b16 %v3372_v12, %v3371_v3  ;;  %v3750_v63 = vunpack.c.l.b16 %v3711_v41 }
 0x251   : > { %v2575_v34 = vpop.f32.mrf.mxu1  ;;  %v2427_v53 = vsel %vm5503_vm6, %v2425_v37, %v2426_v61  ;;  %v2430_v14 = vsel %vm5503_vm6, %v2428_v22, %v2429_v0  ;;  %v3333_v33 = vor.u32 %v3332_v32, %v3328_v11  ;;  %v3713_v12 = vrot.slane %v6540_v17, 5 }
 0x252   : > { %4904 = vst [vmem:[%s6376_s7 + $0x20] sm:$0xff] %v4844_v4   ;;  %v3922_v18 = vadd.f32 %v3857_v45, %v3544_v9  ;;  %v2464_v1 = vunpack.c.l.b16 %v2427_v53  ;;  %v2465_v7 = vunpack.c.l.b16 %v2430_v14  ;;  %v2637_v9 = vadd.f32 %v2575_v34, %v5928_v5 }
 0x253   : > { %v3767_v61 = vpack.c.b16 %v3750_v63, %v3749_v52  ;;  %v3715_v17 = vrot.slane %v3713_v12, 4  ;;  %v3716_v0 = vrot.slane %v4697_v6, 5  ;;  %v3714_v31 = vsel %vm5503_vm6, %v3712_v42, %v3713_v12 }
 0x254   : > { %v2863_v19 = vpop.f32.mrf.mxu2  ;;  %4538 = vmatmul.msk.bf16.gmra.mxu1 %vm652_vm2, %v2480_v47  ;;  %v3323_v47 = vor.u32 %v3322_v50, %v6535_v8  ;;  %v3958_v45 = vadd.f32 %v6340_v54, %v3922_v18  ;;  %v3338_v8 = vrot.slane %v3336_v46, 5 }
 0x255   : > { %v2927_v38 = vadd.f32 %v2863_v19, %v2636_v36  ;;  %v3859_v25 = vpop.f32.mrf.mxu0  ;;  %v3334_v19 = vrot.slane %v3333_v33, 4  ;;  %v3717_v30 = vsel %vm5503_vm6, %v3715_v17, %v3716_v0 }
 0x256   : > { %v3324_v36 = vrot.slane %v3323_v47, 4  ;;  %v3990_v39 = vmax.f32 %v3958_v45, 0.0  ;;  %v3752_v53 = vunpack.c.l.b16 %v3717_v30 }
 0x257   : > { %v3481_v21 = vpop.f32.mrf.mxu3  ;;  %v3339_v22 = vsel %vm5279_vm3, %v3334_v19, %v3338_v8 }
 0x258   : > { %v3545_v26 = vadd.f32 %v3481_v21, %v2927_v38  ;;  %v3329_v34 = vsel %vm5279_vm3, %v3324_v36, %v3328_v11  ;;  %v3374_v63 = vunpack.c.l.b16 %v3339_v22 }
 0x259   : > { %4656 = vmatmul.msk.bf16.gmra.mxu2 %vm652_vm2, %v4816_v58  ;;  %v2577_v35 = vpop.f32.mrf.mxu1  ;;  %v2481_v58 = vpack.c.b16 %v2465_v7, %v2464_v1  ;;  %v3373_v52 = vunpack.c.l.b16 %v3329_v34 }
 0x25a   : > { %v3923_v4 = vadd.f32 %v3859_v25, %v3545_v26  ;;  %v2638_v32 = vadd.f32 %v2577_v35, %v5957_v16  ;;  %v3751_v35 = vunpack.c.l.b16 %v3714_v31 }
 0x25b   : > { %v3390_v16 = vpack.c.b16 %v3374_v63, %v3373_v52 }
 0x25c   : > { %v2866_v28 = vpop.f32.mrf.mxu2  ;;  %v3959_v10 = vadd.f32 %v6340_v54, %v3923_v4  ;;  %4718 = vmatmul.msk.bf16.gmra.mxu3 %vm652_vm2, %v3389_v60  ;;  %v4817_v60 = vld [vmem:[%s5255_s8 + $0xbc] sm:$0xff]  ;;  %v3768_v24 = vpack.c.b16 %v3752_v53, %v3751_v35 }
 0x25d   : > { %v3862_v3 = vpop.f32.mrf.mxu0  ;;  %v2928_v50 = vadd.f32 %v2866_v28, %v2637_v9 }
 0x25e   : > { %v3991_v41 = vmax.f32 %v3959_v10, 0.0 }
 0x25f   : > { %v3484_v38 = vpop.f32.mrf.mxu3 }
 0x260   : > { %v4849_v37 = vpack.c.bf16 %v3991_v41, %v3990_v39  ;;  %4756 = vmatmul.msk.bf16.gmra.mxu0 %vm652_vm2, %v3767_v61  ;;  %v3546_v25 = vadd.f32 %v3484_v38, %v2928_v50 }
 0x261   : > { %v2580_v5 = vpop.f32.mrf.mxu1 }
 0x262   : > { %4905 = vst [vmem:[%s6376_s7 + $0x28] sm:$0xff] %v4849_v37   ;;  %v3924_v56 = vadd.f32 %v3862_v3, %v3546_v25  ;;  %v2639_v4 = vadd.f32 %v2580_v5, %v5971_v59 }
 0x264   : > { %v2868_v18 = vpop.f32.mrf.mxu2  ;;  %4539 = vmatmul.msk.bf16.gmra.mxu1 %vm652_vm2, %v2481_v58  ;;  %v3960_v47 = vadd.f32 %v6340_v54, %v3924_v56 }
 0x265   : > { %v2929_v21 = vadd.f32 %v2868_v18, %v2638_v32  ;;  %v3864_v11 = vpop.f32.mrf.mxu0 }
 0x266   : > { %v3992_v1 = vmax.f32 %v3960_v47, 0.0 }
 0x267   : > { %v3486_v6 = vpop.f32.mrf.mxu3 }
 0x268   : > { %v3547_v26 = vadd.f32 %v3486_v6, %v2929_v21 }
 0x269   : > { %4657 = vmatmul.msk.bf16.gmra.mxu2 %vm652_vm2, %v4817_v60  ;;  %v2582_v14 = vpop.f32.mrf.mxu1  ;;  %v6708_v60 = vld [vmem:[#allocation6_spill] sm:$0xff] }
 0x26a   : > { %v3925_v33 = vadd.f32 %v3864_v11, %v3547_v26  ;;  %v2640_v19 = vadd.f32 %v2582_v14, %v5989_v57 }
 0x26c   : > { %v2871_v46 = vpop.f32.mrf.mxu2  ;;  %v3961_v45 = vadd.f32 %v6340_v54, %v3925_v33  ;;  %4719 = vmatmul.msk.bf16.gmra.mxu3 %vm652_vm2, %v3390_v16 }
 0x26d   : > { %v3867_v28 = vpop.f32.mrf.mxu0  ;;  %v2930_v10 = vadd.f32 %v2871_v46, %v2639_v4 }
 0x26e   : > { %v3993_v7 = vmax.f32 %v3961_v45, 0.0 }
 0x26f   : > { %v3489_v9 = vpop.f32.mrf.mxu3 }
 0x270   : > { %v4854_v61 = vpack.c.bf16 %v3993_v7, %v3992_v1  ;;  %4757 = vmatmul.msk.bf16.gmra.mxu0 %vm652_vm2, %v3768_v24  ;;  %v3548_v3 = vadd.f32 %v3489_v9, %v2930_v10 }
 0x271   : > { %v2585_v36 = vpop.f32.mrf.mxu1 }
 0x272   : > { %4906 = vst [vmem:[%s6376_s7 + $0x30] sm:$0xff] %v4854_v61   ;;  %v3926_v59 = vadd.f32 %v3867_v28, %v3548_v3  ;;  %v2641_v22 = vadd.f32 %v2585_v36, %v6005_v51 }
 0x274   : > { %v2873_v8 = vpop.f32.mrf.mxu2  ;;  %v3962_v58 = vadd.f32 %v6340_v54, %v3926_v59 }
 0x275   : > { %v2931_v12 = vadd.f32 %v2873_v8, %v2640_v19  ;;  %v3869_v39 = vpop.f32.mrf.mxu0 }
 0x276   : > { %v3994_v17 = vmax.f32 %v3962_v58, 0.0 }
 0x277   : > { %v3491_v41 = vpop.f32.mrf.mxu3 }
 0x278   : > { %v3549_v50 = vadd.f32 %v3491_v41, %v2931_v12 }
 0x279   : > { %v2587_v38 = vpop.f32.mrf.mxu1 }
 0x27a   : > { %v3927_v37 = vadd.f32 %v3869_v39, %v3549_v50  ;;  %v2642_v52 = vadd.f32 %v2587_v38, %v6708_v60 }
 0x27c   : > { %v2876_v5 = vpop.f32.mrf.mxu2  ;;  %v3963_v34 = vadd.f32 %v6340_v54, %v3927_v37 }
 0x27d   : > { %v3872_v42 = vpop.f32.mrf.mxu0  ;;  %v2932_v57 = vadd.f32 %v2876_v5, %v2641_v22 }
 0x27e   : > { %v3995_v0 = vmax.f32 %v3963_v34, 0.0 }
 0x27f   : > { %v3494_v25 = vpop.f32.mrf.mxu3 }
 0x280   : > { %v4859_v32 = vpack.c.bf16 %v3995_v0, %v3994_v17  ;;  %v3550_v21 = vadd.f32 %v3494_v25, %v2932_v57 }
 0x281   : > { %v2590_v18 = vpop.f32.mrf.mxu1 }
 0x282   : > { %4907 = vst [vmem:[%s6376_s7 + $0x38] sm:$0xff] %v4859_v32   ;;  %v3928_v30 = vadd.f32 %v3872_v42, %v3550_v21  ;;  %v2643_v14 = vadd.f32 %v2590_v18, %v6047_v23 }
 0x284   : > { %v2878_v63 = vpop.f32.mrf.mxu2  ;;  %v3964_v51 = vadd.f32 %v6340_v54, %v3928_v30 }
 0x285   : > { %v2933_v11 = vadd.f32 %v2878_v63, %v2642_v52  ;;  %v3874_v31 = vpop.f32.mrf.mxu0 }
 0x286   : > { %v3996_v33 = vmax.f32 %v3964_v51, 0.0 }
 0x287   : > { %v3496_v56 = vpop.f32.mrf.mxu3 }
 0x288   : > { %v3551_v6 = vadd.f32 %v3496_v56, %v2933_v11 }
 0x289   : > { %v2592_v26 = vpop.f32.mrf.mxu1 }
 0x28a   : > { %v3929_v16 = vadd.f32 %v3874_v31, %v3551_v6  ;;  %v2644_v7 = vadd.f32 %v2592_v26, %v6069_v40 }
 0x28c   : > { %v2881_v35 = vpop.f32.mrf.mxu2  ;;  %v3965_v53 = vadd.f32 %v6340_v54, %v3929_v16 }
 0x28d   : > { %v3877_v47 = vpop.f32.mrf.mxu0  ;;  %v2934_v45 = vadd.f32 %v2881_v35, %v2643_v14 }
 0x28e   : > { %v3997_v46 = vmax.f32 %v3965_v53, 0.0 }
 0x28f   : > { %v3499_v4 = vpop.f32.mrf.mxu3 }
 0x290   : > { %v4864_v24 = vpack.c.bf16 %v3997_v46, %v3996_v33  ;;  %v3552_v1 = vadd.f32 %v3499_v4, %v2934_v45 }
 0x291   : > { %v2595_v28 = vpop.f32.mrf.mxu1 }
 0x292   : > { %4908 = vst [vmem:[%s6376_s7 + $0x40] sm:$0xff] %v4864_v24   ;;  %v3930_v36 = vadd.f32 %v3877_v47, %v3552_v1  ;;  %v2645_v41 = vadd.f32 %v2595_v28, %v6086_v27 }
 0x294   : > { %v2883_v10 = vpop.f32.mrf.mxu2  ;;  %v3966_v23 = vadd.f32 %v6340_v54, %v3930_v36 }
 0x295   : > { %v2935_v9 = vadd.f32 %v2883_v10, %v2644_v7  ;;  %v3879_v61 = vpop.f32.mrf.mxu0 }
 0x296   : > { %v3998_v38 = vmax.f32 %v3966_v23, 0.0 }
 0x297   : > { %v3501_v3 = vpop.f32.mrf.mxu3 }
 0x298   : > { %v3553_v19 = vadd.f32 %v3501_v3, %v2935_v9 }
 0x299   : > { %v2597_v8 = vpop.f32.mrf.mxu1 }
 0x29a   : > { %v3931_v12 = vadd.f32 %v3879_v61, %v3553_v19  ;;  %v2646_v42 = vadd.f32 %v2597_v8, %v6109_v2 }
 0x29c   : > { %v2886_v39 = vpop.f32.mrf.mxu2  ;;  %v3967_v59 = vadd.f32 %v6340_v54, %v3931_v12 }
 0x29d   : > { %v3882_v50 = vpop.f32.mrf.mxu0  ;;  %v2936_v40 = vadd.f32 %v2886_v39, %v2645_v41 }
 0x29e   : > { %v3999_v58 = vmax.f32 %v3967_v59, 0.0 }
 0x29f   : > { %v3504_v37 = vpop.f32.mrf.mxu3 }
 0x2a0   : > { %v4869_v5 = vpack.c.bf16 %v3999_v58, %v3998_v38  ;;  %v3554_v22 = vadd.f32 %v3504_v37, %v2936_v40 }
 0x2a1   : > { %v2600_v34 = vpop.f32.mrf.mxu1 }
 0x2a2   : > { %4909 = vst [vmem:[%s6376_s7 + $0x48] sm:$0xff] %v4869_v5   ;;  %v3932_v25 = vadd.f32 %v3882_v50, %v3554_v22  ;;  %v2647_v11 = vadd.f32 %v2600_v34, %v6127_v29 }
 0x2a4   : > { %v2888_v17 = vpop.f32.mrf.mxu2  ;;  %v3968_v27 = vadd.f32 %v6340_v54, %v3932_v25 }
 0x2a5   : > { %v2937_v0 = vadd.f32 %v2888_v17, %v2646_v42  ;;  %v3884_v57 = vpop.f32.mrf.mxu0 }
 0x2a6   : > { %v4000_v30 = vmax.f32 %v3968_v27, 0.0 }
 0x2a7   : > { %v3506_v32 = vpop.f32.mrf.mxu3 }
 0x2a8   : > { %v3555_v18 = vadd.f32 %v3506_v32, %v2937_v0 }
 0x2a9   : > { %v2602_v21 = vpop.f32.mrf.mxu1 }
 0x2aa   : > { %v3933_v60 = vadd.f32 %v3884_v57, %v3555_v18  ;;  %v2648_v35 = vadd.f32 %v2602_v21, %v6149_v49 }
 0x2ac   : > { %v2891_v52 = vpop.f32.mrf.mxu2  ;;  %v3969_v63 = vadd.f32 %v6340_v54, %v3933_v60 }
 0x2ad   : > { %v3887_v31 = vpop.f32.mrf.mxu0  ;;  %v2938_v2 = vadd.f32 %v2891_v52, %v2647_v11 }
 0x2ae   : > { %v4001_v56 = vmax.f32 %v3969_v63, 0.0 }
 0x2af   : > { %v3509_v6 = vpop.f32.mrf.mxu3 }
 0x2b0   : > { %v4874_v26 = vpack.c.bf16 %v4001_v56, %v4000_v30  ;;  %v3556_v16 = vadd.f32 %v3509_v6, %v2938_v2 }
 0x2b1   : > { %v2605_v51 = vpop.f32.mrf.mxu1 }
 0x2b2   : > { %4910 = vst [vmem:[%s6376_s7 + $0x50] sm:$0xff] %v4874_v26   ;;  %v3934_v33 = vadd.f32 %v3887_v31, %v3556_v16  ;;  %v2649_v7 = vadd.f32 %v2605_v51, %v6166_v15  ;;  %v6625_v15 = vld [vmem:[%s6693_s2] ss:$0 sm:$0xff] }
 0x2b4   : > { %v2893_v53 = vpop.f32.mrf.mxu2  ;;  %v3970_v29 = vadd.f32 %v6340_v54, %v3934_v33 }
 0x2b5   : > { %v2939_v14 = vadd.f32 %v2893_v53, %v2648_v35  ;;  %v3889_v47 = vpop.f32.mrf.mxu0 }
 0x2b6   : > { %v4002_v9 = vmax.f32 %v3970_v29, 0.0 }
 0x2b7   : > { %v3511_v46 = vpop.f32.mrf.mxu3 }
 0x2b8   : > { %v3557_v45 = vadd.f32 %v3511_v46, %v2939_v14 }
 0x2b9   : > { %v2607_v4 = vpop.f32.mrf.mxu1 }
 0x2ba   : > { %v3935_v24 = vadd.f32 %v3889_v47, %v3557_v45  ;;  %v2650_v23 = vadd.f32 %v2607_v4, %v6189_v55 }
 0x2bc   : > { %v2896_v28 = vpop.f32.mrf.mxu2  ;;  %v3971_v1 = vadd.f32 %v6340_v54, %v3935_v24 }
 0x2bd   : > { %v3892_v10 = vpop.f32.mrf.mxu0  ;;  %v2940_v49 = vadd.f32 %v2896_v28, %v2649_v7 }
 0x2be   : > { %v4003_v61 = vmax.f32 %v3971_v1, 0.0 }
 0x2bf   : > { %v3514_v36 = vpop.f32.mrf.mxu3 }
 0x2c0   : > { %v4879_v3 = vpack.c.bf16 %v4003_v61, %v4002_v9  ;;  %v3558_v8 = vadd.f32 %v3514_v36, %v2940_v49 }
 0x2c1   : > { %v2610_v19 = vpop.f32.mrf.mxu1 }
 0x2c2   : > { %4911 = vst [vmem:[%s6376_s7 + $0x58] sm:$0xff] %v4879_v3   ;;  %v3936_v41 = vadd.f32 %v3892_v10, %v3558_v8  ;;  %v2651_v55 = vadd.f32 %v2610_v19, %v6207_v13 }
 0x2c4   : > { %v2898_v12 = vpop.f32.mrf.mxu2  ;;  %v3972_v58 = vadd.f32 %v6625_v15, %v3936_v41 }
 0x2c5   : > { %v2941_v39 = vadd.f32 %v2898_v12, %v2650_v23  ;;  %v3894_v59 = vpop.f32.mrf.mxu0 }
 0x2c6   : > { %v4004_v22 = vmax.f32 %v3972_v58, 0.0 }
 0x2c7   : > { %v3516_v50 = vpop.f32.mrf.mxu3 }
 0x2c8   : > { %v3559_v54 = vadd.f32 %v3516_v50, %v2941_v39 }
 0x2c9   : > { %v2612_v38 = vpop.f32.mrf.mxu1 }
 0x2ca   : > { %v3937_v40 = vadd.f32 %v3894_v59, %v3559_v54  ;;  %v2652_v18 = vadd.f32 %v2612_v38, %v6229_v44 }
 0x2cc   : > { %v2901_v37 = vpop.f32.mrf.mxu2  ;;  %v3973_v5 = vadd.f32 %v6625_v15, %v3937_v40 }
 0x2cd   : > { %v3897_v34 = vpop.f32.mrf.mxu0  ;;  %v2942_v17 = vadd.f32 %v2901_v37, %v2651_v55 }
 0x2ce   : > { %v4005_v42 = vmax.f32 %v3973_v5, 0.0 }
 0x2cf   : > { %v3519_v0 = vpop.f32.mrf.mxu3 }
 0x2d0   : > { %v4884_v57 = vpack.c.bf16 %v4005_v42, %v4004_v22  ;;  %v3560_v32 = vadd.f32 %v3519_v0, %v2942_v17 }
 0x2d1   : > { %v2615_v25 = vpop.f32.mrf.mxu1 }
 0x2d2   : > { %4912 = vst [vmem:[%s6376_s7 + $0x60] sm:$0xff] %v4884_v57   ;;  %v3938_v52 = vadd.f32 %v3897_v34, %v3560_v32  ;;  %v2653_v6 = vadd.f32 %v2615_v25, %v6246_v20 }
 0x2d4   : > { %v2903_v21 = vpop.f32.mrf.mxu2  ;;  %v3974_v13 = vadd.f32 %v6625_v15, %v3938_v52 }
 0x2d5   : > { %v2943_v27 = vadd.f32 %v2903_v21, %v2652_v18  ;;  %v3899_v60 = vpop.f32.mrf.mxu0 }
 0x2d6   : > { %v4006_v51 = vmax.f32 %v3974_v13, 0.0 }
 0x2d7   : > { %v3521_v63 = vpop.f32.mrf.mxu3 }
 0x2d8   : > { %v3561_v11 = vadd.f32 %v3521_v63, %v2943_v27 }
 0x2d9   : > { %v2617_v30 = vpop.f32.mrf.mxu1 }
 0x2da   : > { %v3939_v31 = vadd.f32 %v3899_v60, %v3561_v11  ;;  %v2654_v47 = vadd.f32 %v2617_v30, %v6266_v62 }
 0x2dc   : > { %v2906_v56 = vpop.f32.mrf.mxu2  ;;  %v3975_v2 = vadd.f32 %v6625_v15, %v3939_v31 }
 0x2dd   : > { %v3902_v26 = vpop.f32.mrf.mxu0  ;;  %v2944_v44 = vadd.f32 %v2906_v56, %v2653_v6 }
 0x2de   : > { %v4007_v16 = vmax.f32 %v3975_v2, 0.0 }
 0x2df   : > { %v3524_v35 = vpop.f32.mrf.mxu3 }
 0x2e0   : > { %v4889_v53 = vpack.c.bf16 %v4007_v16, %v4006_v51  ;;  %v3562_v14 = vadd.f32 %v3524_v35, %v2944_v44 }
 0x2e1   : > { %v2620_v45 = vpop.f32.mrf.mxu1 }
 0x2e2   : > { %4913 = vst [vmem:[%s6376_s7 + $0x68] sm:$0xff] %v4889_v53   ;;  %v3940_v29 = vadd.f32 %v3902_v26, %v3562_v14  ;;  %v2655_v9 = vadd.f32 %v2620_v45, %v6282_v43 }
 0x2e4   : > { %v2908_v33 = vpop.f32.mrf.mxu2  ;;  %v3976_v28 = vadd.f32 %v6625_v15, %v3940_v29 }
 0x2e5   : > { %v2945_v46 = vadd.f32 %v2908_v33, %v2654_v47  ;;  %v3904_v4 = vpop.f32.mrf.mxu0 }
 0x2e6   : > { %v4008_v61 = vmax.f32 %v3976_v28, 0.0 }
 0x2e7   : > { %v3526_v24 = vpop.f32.mrf.mxu3 }
 0x2e8   : > { %v3563_v20 = vadd.f32 %v3526_v24, %v2945_v46 }
 0x2e9   : > { %v2622_v36 = vpop.f32.mrf.mxu1 }
 0x2ea   : > { %v3941_v1 = vadd.f32 %v3904_v4, %v3563_v20  ;;  %v2656_v12 = vadd.f32 %v2622_v36, %v6308_v48 }
 0x2ec   : > { %v2911_v7 = vpop.f32.mrf.mxu2  ;;  %v3977_v10 = vadd.f32 %v6625_v15, %v3941_v1 }
 0x2ed   : > { %v2946_v49 = vadd.f32 %v2911_v7, %v2655_v9  ;;  %v3907_v3 = vpop.f32.mrf.mxu0 }
 0x2ee   : > { %v4009_v62 = vmax.f32 %v3977_v10, 0.0 }
 0x2ef   : > { %v3529_v19 = vpop.f32.mrf.mxu3 }
 0x2f0   : > { %v4894_v8 = vpack.c.bf16 %v4009_v62, %v4008_v61  ;;  %v3564_v23 = vadd.f32 %v3529_v19, %v2946_v49 }
 0x2f2   : > { %4914 = vst [vmem:[%s6376_s7 + $0x70] sm:$0xff] %v4894_v8   ;;  %v3942_v41 = vadd.f32 %v3907_v3, %v3564_v23 }
 0x2f4   : > { %v2913_v39 = vpop.f32.mrf.mxu2  ;;  %v3978_v38 = vadd.f32 %v6625_v15, %v3942_v41 }
 0x2f5   : > { %v2947_v59 = vadd.f32 %v2913_v39, %v2656_v12  ;;  %v3909_v54 = vpop.f32.mrf.mxu0 }
 0x2f6   : > { %v4010_v40 = vmax.f32 %v3978_v38, 0.0 }
 0x2f7   : > { %v3531_v43 = vpop.f32.mrf.mxu3 }
 0x2f8   : > { %v3565_v50 = vadd.f32 %v3531_v43, %v2947_v59 }
 0x2fa   : > { %v3943_v58 = vadd.f32 %v3909_v54, %v3565_v50 }
 0x2fc   : > { %v3979_v48 = vadd.f32 %v6625_v15, %v3943_v58 }
 0x2fe   : > { %v4011_v37 = vmax.f32 %v3979_v48, 0.0 }
 0x300   : > { %v4899_v5 = vpack.c.bf16 %v4011_v37, %v4010_v40 }
 0x302   : > { %4915 = vst [vmem:[%s6376_s7 + $0x78] sm:$0xff] %v4899_v5  }
 0x303   : > { %5071 = shalt.err (!%p5068_p7)
}
 0x304   : > { %s5140_s5 = smov 64   ;;  %s5141_s7 = smov 4  }
 0x305   : > { %4921 = dma.vmem_to_hbm [thread:$0]  (%p5213_p3), %s4092_s27, 2048, %s4094_s28, %s4077_s29, %s5140_s5, %s5140_s5, %s5141_s7  }
 0x306 PF: > { %p4927_p9 = scmp.ge.s32.totalorder %s5138_s19, 2  ;;  %s4108_s21 = sand.u32 1, %s5110_s12  }
 0x307   : > { %s4109_s15 = scalar_lea.sflag [#allocation3], %s4108_s21 }
 0x308   : > { %p4924_p10 = pnand %p4927_p9, %p5222_p8 }
 0x30a   : > { %p4925_p11 = pneg %p4924_p10 }
 0x30c   : > { %5105 = dma.done.wait (%p4925_p11), %s4109_s15, 2048  }
 0x30d   : > { %5107 = vsyncadd (%p4925_p11), %s4109_s15, 4294965248  ;;  %s16_s19 = sadd.s32 1, %s5138_s19   ;;  %s6709_s12 = smov %s5114_s13 }
 0x30e   : > { %p13_p12 = scmp.ge.s32.totalorder %s16_s19, 10   ;;  %s6710_s13 = smov %s5118_s14 }
 0x30f   : > { %s6711_s14 = smov %s5231_s30  ;;  %s6712_s15 = smov %s5130_s17 }
 0x310   : > { %s6713_s16 = smov %s5134_s18  ;;  %s6714_s17 = smov %s6717_s22 }
 0x311   : > { %s6715_s18 = smov %s6721_s23  ;;  %15 = sbr.rel (!%p13_p12) target bundleno = 5 (0x5), region = 77 }
 0x316   :  { %4115 = vsyncpa [#allocation3], 1 }
 0x317   :  { %4117 = vsyncpa [#allocation3 + $0x1], 1 }

</bundles_post_ra>
